<compile_context>
chip_gen: v6e
topology: v6e:2x2x1
jax: 0.10.0
libtpu: 0.0.40
codegen_flags: <defaults>
</compile_context>

<pallas_src>
import functools

import jax
import jax.numpy as jnp
from jax import lax
from jax.experimental import pallas as pl
from jax.experimental.pallas import tpu as pltpu


_TAPS = tuple((dh, dw) for dh in (-1, 0, 1) for dw in (-1, 0, 1))   # k = 0..8


# ----------------------------------------------------------------------------
# Kernel
# ----------------------------------------------------------------------------
def _diffusion_kernel(t_ref,                                     # scalar prefetch
                      clean_ref, noisy_ref, masks_ref,
                      w1xt_ref, w1t_ref, b1_ref, w2all_ref, b2_ref,
                      out_ref,
                      tapx_scr,
                      *, timesteps, img_w):
    c, hw = clean_ref.shape
    inv_t = 1.0 / float(timesteps)
    offs = [dh * img_w + dw for dh, dw in _TAPS]                 # center at k=4

    # -- forward_diffusion: interpolate clean/noisy once per batch element ----
    a0 = t_ref[0].astype(jnp.float32) * inv_t
    ns = a0 * noisy_ref[...] + (1.0 - a0) * clean_ref[...]       # noisy_step

    # Loop-invariant operands hoisted out of the timestep loop.
    w1xt = w1xt_ref[...]                                         # (hid, 9*C)
    w1t = w1t_ref[...]                                           # (hid, 1)
    b1 = b1_ref[...]                                             # (hid, 1)
    w2all = w2all_ref[...]                                       # (9*C, hid)
    #  -(1-a_t)*b2 + (1-a_p)*b2 - ns/T  ==  (b2 - ns)/T : constant over steps.
    const = inv_t * (b2_ref[...] - ns)                           # (C, HW)

    def conv1(x):
        """Input-side 3x3 conv: assemble (9*Cin, HW) taps, single K=9*Cin matmul."""
        for k, off in enumerate(offs):
            if off == 0:                       # center tap: mask is all ones
                tapx_scr[k * c:(k + 1) * c, :] = x
            else:
                shifted = pltpu.roll(x, shift=(-off) % hw, axis=1)
                tapx_scr[k * c:(k + 1) * c, :] = shifted * masks_ref[k]
        return jnp.dot(w1xt, tapx_scr[...], preferred_element_type=jnp.float32)

    def conv2(h):
        """Output-side 3x3 conv (Cout << Cin): one matmul -> (9*Cout, HW),
        then roll + mask accumulation in vregs (no tap scratch)."""
        y = jnp.dot(w2all, h, preferred_element_type=jnp.float32)  # (9*C, HW)
        acc = y[4 * c:5 * c, :]                                    # center tap
        for k, off in enumerate(offs):
            if off == 0:
                continue
            yk = pltpu.roll(y[k * c:(k + 1) * c, :], shift=(-off) % hw, axis=1)
            acc = acc + yk * masks_ref[k]
        return acc

    def step(s, x):
        # reverse-diffusion index s = 0..T-1  <->  tt = T - s
        a_t = (timesteps - s) * inv_t
        a_p = a_t - inv_t
        pre = conv1(x) + b1                          # shared between u1 and u2
        h1 = jnp.maximum(pre + a_t * w1t, 0.0)       # hidden of unet(x_t, t)
        h2 = jnp.maximum(pre + a_p * w1t, 0.0)       # hidden of unet(x_t, t-1)
        # Linearity of conv2:  -(1-a_t)*u1 + (1-a_p)*u2
        #   = conv2((1-a_p)*h2 - (1-a_t)*h1) + b2/T   (b2/T folded into `const`)
        h_comb = (1.0 - a_p) * h2 - (1.0 - a_t) * h1
        # x_new = x - (1-a_t)*u1 + (1-a_p)*u2 - ns/T
        return x + conv2(h_comb) + const

    # improved_sampling: full T-step recurrence in-kernel, x stays on-chip.
    x_final = lax.fori_loop(0, timesteps, step, ns, unroll=(timesteps <= 8))
    out_ref[...] = x_final


# ----------------------------------------------------------------------------
# Wrapper
# ----------------------------------------------------------------------------
def diffusion_forward(clean_nchw, noisy_nchw, t, params, timesteps):
    """DiffusionModel.forward (forward_diffusion + improved_sampling), fused."""
    b, c, h, w = clean_nchw.shape
    hw = h * w
    hidden = params["w1"].shape[2]

    clean = clean_nchw.reshape(b, c, hw).astype(jnp.float32)
    noisy = noisy_nchw.reshape(b, c, hw).astype(jnp.float32)

    # conv1 weights flattened so the conv is one (hid, 9*C) @ (9*C, HW) matmul.
    w1 = params["w1"].astype(jnp.float32)                        # (9, C+1, HID)
    w1xt = jnp.transpose(w1[:, :c, :], (2, 0, 1)).reshape(hidden, 9 * c)
    w1t = jnp.sum(w1[:, c, :], axis=0).reshape(hidden, 1)        # t-channel bias
    b1 = params["b1"].astype(jnp.float32).reshape(hidden, 1)
    # conv2 weights in output-side layout: (9*Cout, hidden).
    w2 = params["w2"].astype(jnp.float32)                        # (9, HID, C)
    w2all = jnp.transpose(w2, (0, 2, 1)).reshape(9 * c, hidden)
    b2 = params["b2"].astype(jnp.float32).reshape(c, 1)

    # Zero-padding validity masks, pre-broadcast to (9, C, HW) so the kernel
    # reads a ready (C, HW) slab per tap (no in-loop broadcast_in_dim copies).
    ii = jnp.arange(hw, dtype=jnp.int32) // w
    jj = jnp.arange(hw, dtype=jnp.int32) % w
    rows = []
    for dh, dw in _TAPS:
        valid = (ii + dh >= 0) & (ii + dh < h) & (jj + dw >= 0) & (jj + dw < w)
        rows.append(valid.astype(jnp.float32))
    masks = jnp.broadcast_to(jnp.stack(rows, axis=0)[:, None, :], (9, c, hw))

    t_arr = jnp.full((1,), t, dtype=jnp.int32)

    kernel = functools.partial(_diffusion_kernel, timesteps=timesteps, img_w=w)

    grid_spec = pltpu.PrefetchScalarGridSpec(
        num_scalar_prefetch=1,
        grid=(b,),
        in_specs=[
            pl.BlockSpec((None, c, hw), lambda bi, t_s: (bi, 0, 0)),   # clean
            pl.BlockSpec((None, c, hw), lambda bi, t_s: (bi, 0, 0)),   # noisy
            pl.BlockSpec((9, c, hw), lambda bi, t_s: (0, 0, 0)),       # masks
            pl.BlockSpec((hidden, 9 * c), lambda bi, t_s: (0, 0)),     # w1xt
            pl.BlockSpec((hidden, 1), lambda bi, t_s: (0, 0)),         # w1t
            pl.BlockSpec((hidden, 1), lambda bi, t_s: (0, 0)),         # b1
            pl.BlockSpec((9 * c, hidden), lambda bi, t_s: (0, 0)),     # w2all
            pl.BlockSpec((c, 1), lambda bi, t_s: (0, 0)),              # b2
        ],
        out_specs=pl.BlockSpec((None, c, hw), lambda bi, t_s: (bi, 0, 0)),
        scratch_shapes=[
            pltpu.VMEM((9 * c, hw), jnp.float32),     # conv1 tap matrix
        ],
    )

    # Cost hint: the fused call encloses the whole T-step loop.
    flops = 2 * b * timesteps * (2 * 9 * c * hidden) * hw
    bytes_accessed = 4 * (3 * b * c * hw + 9 * c * hw
                          + 2 * 9 * c * hidden + 2 * hidden + 2 * c)

    out = pl.pallas_call(
        kernel,
        out_shape=jax.ShapeDtypeStruct((b, c, hw), jnp.float32),
        grid_spec=grid_spec,
        compiler_params=pltpu.CompilerParams(
            dimension_semantics=("parallel",),
            vmem_limit_bytes=32 * 1024 * 1024,
        ),
        cost_estimate=pl.CostEstimate(
            flops=flops, transcendentals=0, bytes_accessed=bytes_accessed),
    )(t_arr, clean, noisy, masks, w1xt, w1t, b1, w2all, b2)

    return out.reshape(b, c, h, w)


# ----------------------------------------------------------------------------
# Pure-JAX reference (same stand-in UNet semantics), for self-checking
# ----------------------------------------------------------------------------
def _conv3x3_ref(x_nhwc, wk, bias):
    bsz, h, w, _ = x_nhwc.shape
    cout = wk.shape[2]
    xpad = jnp.pad(x_nhwc, ((0, 0), (1, 1), (1, 1), (0, 0)))
    out = jnp.zeros((bsz, h, w, cout), jnp.float32)
    k = 0
    for dh in range(3):
        for dw in range(3):
            out = out + jnp.einsum("bhwc,co->bhwo",
                                   xpad[:, dh:dh + h, dw:dw + w, :], wk[k],
                                   precision=lax.Precision.HIGHEST)
            k += 1
    return out + bias.reshape(1, 1, 1, -1)


def _unet_ref(x_nhwc, t_val, params):
    c = x_nhwc.shape[-1]
    pre = _conv3x3_ref(x_nhwc, params["w1"][:, :c, :], params["b1"])
    t_bias = t_val * jnp.sum(params["w1"][:, c, :], axis=0)
    hid = jnp.maximum(pre + t_bias, 0.0)
    return _conv3x3_ref(hid, params["w2"], params["b2"])


def _diffusion_forward_ref(clean_nchw, noisy_nchw, t, params, timesteps):
    clean = jnp.transpose(clean_nchw, (0, 2, 3, 1)).astype(jnp.float32)
    noisy = jnp.transpose(noisy_nchw, (0, 2, 3, 1)).astype(jnp.float32)
    alpha = t / timesteps
    noisy_step = alpha * noisy + (1.0 - alpha) * clean
    x_t = noisy_step
    for tt in reversed(range(1, timesteps + 1)):
        a_t = tt / timesteps
        a_p = (tt - 1) / timesteps
        u1 = _unet_ref(x_t, tt / timesteps, params)
        u2 = _unet_ref(x_t, (tt - 1) / timesteps, params)
        x_tilde = (1.0 - a_t) * u1 + a_t * noisy_step
        x_tilde_prev = (1.0 - a_p) * u2 + a_p * noisy_step
        x_t = x_t - x_tilde + x_tilde_prev
    return jnp.transpose(x_t, (0, 3, 1, 2))


# ----------------------------------------------------------------------------
# Driver
# ----------------------------------------------------------------------------
if __name__ == "__main__":
    B, C, H, W = 2, 4, 16, 16
    TIMESTEPS = 4
    HIDDEN = 8

    key = jax.random.PRNGKey(0)
    kc, kn, kw1, kb1, kw2, kb2 = jax.random.split(key, 6)

    clean_image = jax.random.normal(kc, (B, C, H, W), dtype=jnp.float32)
    noisy_image = clean_image + 0.1 * jax.random.normal(
        kn, (B, C, H, W), dtype=jnp.float32)

    # Deterministic stand-in UNet parameters (conv3x3 -> ReLU -> conv3x3;
    # channel index C of w1 is the t-conditioning channel).
    params = {
        "w1": 0.1 * jax.random.normal(kw1, (9, C + 1, HIDDEN), dtype=jnp.float32),
        "b1": 0.01 * jax.random.normal(kb1, (1, HIDDEN), dtype=jnp.float32),
        "w2": 0.1 * jax.random.normal(kw2, (9, HIDDEN, C), dtype=jnp.float32),
        "b2": 0.01 * jax.random.normal(kb2, (1, C), dtype=jnp.float32),
    }

    t = 3  # diffusion step index, as in the torch training loop

    fwd = jax.jit(diffusion_forward, static_argnames=("timesteps",))
    out = fwd(clean_image, noisy_image, t, params, timesteps=TIMESTEPS)
    jax.block_until_ready(out)
    assert out.shape == (B, C, H, W) and out.dtype == jnp.float32

    # Self-check against a pure-JAX reference of the same forward pass.
    # Tight tolerance (f32 accumulation everywhere) so roll/mask/indexing bugs
    # cannot hide.
    ref = _diffusion_forward_ref(clean_image, noisy_image, t, params, TIMESTEPS)
    assert bool(jnp.allclose(out, ref, rtol=1e-4, atol=1e-4)), (
        "Pallas kernel output mismatch vs pure-JAX reference: max abs diff = "
        f"{float(jnp.max(jnp.abs(out - ref)))}")

    print("KERNEL_OK")
</pallas_src>

<mosaic_0001>
module attributes {stable_mosaic.version = 11 : i64} {
  func.func @_diffusion_kernel(%arg0: i32, %arg1: memref<1xi32, #tpu.memory_space<smem>>, %arg2: memref<1x4x256xf32, #tpu.memory_space<vmem>>, %arg3: memref<1x4x256xf32, #tpu.memory_space<vmem>>, %arg4: memref<9x4x256xf32, #tpu.memory_space<vmem>>, %arg5: memref<8x36xf32, #tpu.memory_space<vmem>>, %arg6: memref<8x1xf32, #tpu.memory_space<vmem>>, %arg7: memref<8x1xf32, #tpu.memory_space<vmem>>, %arg8: memref<36x8xf32, #tpu.memory_space<vmem>>, %arg9: memref<4x1xf32, #tpu.memory_space<vmem>>, %arg10: memref<1x4x256xf32, #tpu.memory_space<vmem>>, %arg11: memref<36x256xf32, #tpu.memory_space<vmem>>) attributes {dimension_semantics = [#tpu.dimension_semantics<parallel>], iteration_bounds = array<i64: 2>, scalar_prefetch = 1 : i64, scratch_operands = 1 : i64, tpu.core_type = #tpu.core_type<tc>, window_params = [{transform_indices = @transform_0, window_bounds = array<i64: 1, 4, 256>}, {transform_indices = @transform_1, window_bounds = array<i64: 1, 4, 256>}, {pipeline_mode = #tpu.pipeline_mode<synchronous>, transform_indices = @transform_2, window_bounds = array<i64: 9, 4, 256>}, {pipeline_mode = #tpu.pipeline_mode<synchronous>, transform_indices = @transform_3, window_bounds = array<i64: 8, 36>}, {pipeline_mode = #tpu.pipeline_mode<synchronous>, transform_indices = @transform_4, window_bounds = array<i64: 8, 1>}, {pipeline_mode = #tpu.pipeline_mode<synchronous>, transform_indices = @transform_5, window_bounds = array<i64: 8, 1>}, {pipeline_mode = #tpu.pipeline_mode<synchronous>, transform_indices = @transform_6, window_bounds = array<i64: 36, 8>}, {pipeline_mode = #tpu.pipeline_mode<synchronous>, transform_indices = @transform_7, window_bounds = array<i64: 4, 1>}, {transform_indices = @transform_8, window_bounds = array<i64: 1, 4, 256>}]} {
    %c0 = arith.constant 0 : index
    %0 = memref.load %arg1[%c0] : memref<1xi32, #tpu.memory_space<smem>>
    %1 = arith.sitofp %0 : i32 to f32
    %cst = arith.constant 2.500000e-01 : f32
    %2 = arith.mulf %1, %cst : f32
    %c0_0 = arith.constant 0 : index
    %c0_1 = arith.constant 0 : index
    %c0_2 = arith.constant 0 : index
    %3 = vector.load %arg3[%c0_0, %c0_1, %c0_2] : memref<1x4x256xf32, #tpu.memory_space<vmem>>, vector<1x4x256xf32>
    %4 = vector.shape_cast %3 : vector<1x4x256xf32> to vector<4x256xf32>
    %5 = vector.broadcast %2 : f32 to vector<4x256xf32>
    %6 = arith.mulf %5, %4 : vector<4x256xf32>
    %cst_3 = arith.constant 1.000000e+00 : f32
    %7 = arith.subf %cst_3, %2 : f32
    %c0_4 = arith.constant 0 : index
    %c0_5 = arith.constant 0 : index
    %c0_6 = arith.constant 0 : index
    %8 = vector.load %arg2[%c0_4, %c0_5, %c0_6] : memref<1x4x256xf32, #tpu.memory_space<vmem>>, vector<1x4x256xf32>
    %9 = vector.shape_cast %8 : vector<1x4x256xf32> to vector<4x256xf32>
    %10 = vector.broadcast %7 : f32 to vector<4x256xf32>
    %11 = arith.mulf %10, %9 : vector<4x256xf32>
    %12 = arith.addf %6, %11 : vector<4x256xf32>
    %c0_7 = arith.constant 0 : index
    %c0_8 = arith.constant 0 : index
    %13 = vector.load %arg5[%c0_7, %c0_8] : memref<8x36xf32, #tpu.memory_space<vmem>>, vector<8x36xf32>
    %c0_9 = arith.constant 0 : index
    %c0_10 = arith.constant 0 : index
    %14 = vector.load %arg6[%c0_9, %c0_10] : memref<8x1xf32, #tpu.memory_space<vmem>>, vector<8x1xf32>
    %c0_11 = arith.constant 0 : index
    %c0_12 = arith.constant 0 : index
    %15 = vector.load %arg7[%c0_11, %c0_12] : memref<8x1xf32, #tpu.memory_space<vmem>>, vector<8x1xf32>
    %c0_13 = arith.constant 0 : index
    %c0_14 = arith.constant 0 : index
    %16 = vector.load %arg8[%c0_13, %c0_14] : memref<36x8xf32, #tpu.memory_space<vmem>>, vector<36x8xf32>
    %c0_15 = arith.constant 0 : index
    %c0_16 = arith.constant 0 : index
    %17 = vector.load %arg9[%c0_15, %c0_16] : memref<4x1xf32, #tpu.memory_space<vmem>>, vector<4x1xf32>
    %18 = vector.broadcast %17 : vector<4x1xf32> to vector<4x256xf32>
    %19 = arith.subf %18, %12 : vector<4x256xf32>
    %cst_17 = arith.constant 2.500000e-01 : f32
    %20 = vector.broadcast %cst_17 : f32 to vector<4x256xf32>
    %21 = arith.mulf %20, %19 : vector<4x256xf32>
    %c0_i32 = arith.constant 0 : i32
    %c4_i32 = arith.constant 4 : i32
    %22 = arith.subi %c4_i32, %c0_i32 : i32
    %23 = arith.sitofp %22 : i32 to f32
    %cst_18 = arith.constant 2.500000e-01 : f32
    %24 = arith.mulf %23, %cst_18 : f32
    %cst_19 = arith.constant 2.500000e-01 : f32
    %25 = arith.subf %24, %cst_19 : f32
    %c17_i32 = arith.constant 17 : i32
    %26 = tpu.dynamic_rotate %12 by %c17_i32 dim 1 : vector<4x256xf32>, i32 -> vector<4x256xf32>
    %c0_20 = arith.constant 0 : index
    %c0_21 = arith.constant 0 : index
    %c0_22 = arith.constant 0 : index
    %27 = vector.load %arg4[%c0_20, %c0_21, %c0_22] : memref<9x4x256xf32, #tpu.memory_space<vmem>>, vector<1x4x256xf32>
    %28 = vector.shape_cast %27 : vector<1x4x256xf32> to vector<4x256xf32>
    %29 = arith.mulf %26, %28 : vector<4x256xf32>
    %c0_23 = arith.constant 0 : index
    %c0_24 = arith.constant 0 : index
    %30 = vector.load %arg11[%c0_23, %c0_24] : memref<36x256xf32, #tpu.memory_space<vmem>>, vector<4x256xf32>
    tpu.vector_store %arg11[%c0_23, %c0_24], %29 {strides = array<i32>} : memref<36x256xf32, #tpu.memory_space<vmem>>, vector<4x256xf32>,
    %c16_i32 = arith.constant 16 : i32
    %31 = tpu.dynamic_rotate %12 by %c16_i32 dim 1 : vector<4x256xf32>, i32 -> vector<4x256xf32>
    %c1 = arith.constant 1 : index
    %c0_25 = arith.constant 0 : index
    %c0_26 = arith.constant 0 : index
    %32 = vector.load %arg4[%c1, %c0_25, %c0_26] : memref<9x4x256xf32, #tpu.memory_space<vmem>>, vector<1x4x256xf32>
    %33 = vector.shape_cast %32 : vector<1x4x256xf32> to vector<4x256xf32>
    %34 = arith.mulf %31, %33 : vector<4x256xf32>
    %c4 = arith.constant 4 : index
    %c0_27 = arith.constant 0 : index
    %35 = vector.load %arg11[%c4, %c0_27] : memref<36x256xf32, #tpu.memory_space<vmem>>, vector<4x256xf32>
    tpu.vector_store %arg11[%c4, %c0_27], %34 {strides = array<i32>} : memref<36x256xf32, #tpu.memory_space<vmem>>, vector<4x256xf32>,
    %c15_i32 = arith.constant 15 : i32
    %36 = tpu.dynamic_rotate %12 by %c15_i32 dim 1 : vector<4x256xf32>, i32 -> vector<4x256xf32>
    %c2 = arith.constant 2 : index
    %c0_28 = arith.constant 0 : index
    %c0_29 = arith.constant 0 : index
    %37 = vector.load %arg4[%c2, %c0_28, %c0_29] : memref<9x4x256xf32, #tpu.memory_space<vmem>>, vector<1x4x256xf32>
    %38 = vector.shape_cast %37 : vector<1x4x256xf32> to vector<4x256xf32>
    %39 = arith.mulf %36, %38 : vector<4x256xf32>
    %c8 = arith.constant 8 : index
    %c0_30 = arith.constant 0 : index
    %40 = vector.load %arg11[%c8, %c0_30] : memref<36x256xf32, #tpu.memory_space<vmem>>, vector<4x256xf32>
    tpu.vector_store %arg11[%c8, %c0_30], %39 {strides = array<i32>} : memref<36x256xf32, #tpu.memory_space<vmem>>, vector<4x256xf32>,
    %c1_i32 = arith.constant 1 : i32
    %41 = tpu.dynamic_rotate %12 by %c1_i32 dim 1 : vector<4x256xf32>, i32 -> vector<4x256xf32>
    %c3 = arith.constant 3 : index
    %c0_31 = arith.constant 0 : index
    %c0_32 = arith.constant 0 : index
    %42 = vector.load %arg4[%c3, %c0_31, %c0_32] : memref<9x4x256xf32, #tpu.memory_space<vmem>>, vector<1x4x256xf32>
    %43 = vector.shape_cast %42 : vector<1x4x256xf32> to vector<4x256xf32>
    %44 = arith.mulf %41, %43 : vector<4x256xf32>
    %c12 = arith.constant 12 : index
    %c0_33 = arith.constant 0 : index
    %45 = vector.load %arg11[%c12, %c0_33] : memref<36x256xf32, #tpu.memory_space<vmem>>, vector<4x256xf32>
    tpu.vector_store %arg11[%c12, %c0_33], %44 {strides = array<i32>} : memref<36x256xf32, #tpu.memory_space<vmem>>, vector<4x256xf32>,
    %c16 = arith.constant 16 : index
    %c0_34 = arith.constant 0 : index
    %46 = vector.load %arg11[%c16, %c0_34] : memref<36x256xf32, #tpu.memory_space<vmem>>, vector<4x256xf32>
    tpu.vector_store %arg11[%c16, %c0_34], %12 {strides = array<i32>} : memref<36x256xf32, #tpu.memory_space<vmem>>, vector<4x256xf32>,
    %c255_i32 = arith.constant 255 : i32
    %47 = tpu.dynamic_rotate %12 by %c255_i32 dim 1 : vector<4x256xf32>, i32 -> vector<4x256xf32>
    %c5 = arith.constant 5 : index
    %c0_35 = arith.constant 0 : index
    %c0_36 = arith.constant 0 : index
    %48 = vector.load %arg4[%c5, %c0_35, %c0_36] : memref<9x4x256xf32, #tpu.memory_space<vmem>>, vector<1x4x256xf32>
    %49 = vector.shape_cast %48 : vector<1x4x256xf32> to vector<4x256xf32>
    %50 = arith.mulf %47, %49 : vector<4x256xf32>
    %c20 = arith.constant 20 : index
    %c0_37 = arith.constant 0 : index
    %51 = vector.load %arg11[%c20, %c0_37] : memref<36x256xf32, #tpu.memory_space<vmem>>, vector<4x256xf32>
    tpu.vector_store %arg11[%c20, %c0_37], %50 {strides = array<i32>} : memref<36x256xf32, #tpu.memory_space<vmem>>, vector<4x256xf32>,
    %c241_i32 = arith.constant 241 : i32
    %52 = tpu.dynamic_rotate %12 by %c241_i32 dim 1 : vector<4x256xf32>, i32 -> vector<4x256xf32>
    %c6 = arith.constant 6 : index
    %c0_38 = arith.constant 0 : index
    %c0_39 = arith.constant 0 : index
    %53 = vector.load %arg4[%c6, %c0_38, %c0_39] : memref<9x4x256xf32, #tpu.memory_space<vmem>>, vector<1x4x256xf32>
    %54 = vector.shape_cast %53 : vector<1x4x256xf32> to vector<4x256xf32>
    %55 = arith.mulf %52, %54 : vector<4x256xf32>
    %c24 = arith.constant 24 : index
    %c0_40 = arith.constant 0 : index
    %56 = vector.load %arg11[%c24, %c0_40] : memref<36x256xf32, #tpu.memory_space<vmem>>, vector<4x256xf32>
    tpu.vector_store %arg11[%c24, %c0_40], %55 {strides = array<i32>} : memref<36x256xf32, #tpu.memory_space<vmem>>, vector<4x256xf32>,
    %c240_i32 = arith.constant 240 : i32
    %57 = tpu.dynamic_rotate %12 by %c240_i32 dim 1 : vector<4x256xf32>, i32 -> vector<4x256xf32>
    %c7 = arith.constant 7 : index
    %c0_41 = arith.constant 0 : index
    %c0_42 = arith.constant 0 : index
    %58 = vector.load %arg4[%c7, %c0_41, %c0_42] : memref<9x4x256xf32, #tpu.memory_space<vmem>>, vector<1x4x256xf32>
    %59 = vector.shape_cast %58 : vector<1x4x256xf32> to vector<4x256xf32>
    %60 = arith.mulf %57, %59 : vector<4x256xf32>
    %c28 = arith.constant 28 : index
    %c0_43 = arith.constant 0 : index
    %61 = vector.load %arg11[%c28, %c0_43] : memref<36x256xf32, #tpu.memory_space<vmem>>, vector<4x256xf32>
    tpu.vector_store %arg11[%c28, %c0_43], %60 {strides = array<i32>} : memref<36x256xf32, #tpu.memory_space<vmem>>, vector<4x256xf32>,
    %c239_i32 = arith.constant 239 : i32
    %62 = tpu.dynamic_rotate %12 by %c239_i32 dim 1 : vector<4x256xf32>, i32 -> vector<4x256xf32>
    %c8_44 = arith.constant 8 : index
    %c0_45 = arith.constant 0 : index
    %c0_46 = arith.constant 0 : index
    %63 = vector.load %arg4[%c8_44, %c0_45, %c0_46] : memref<9x4x256xf32, #tpu.memory_space<vmem>>, vector<1x4x256xf32>
    %64 = vector.shape_cast %63 : vector<1x4x256xf32> to vector<4x256xf32>
    %65 = arith.mulf %62, %64 : vector<4x256xf32>
    %c32 = arith.constant 32 : index
    %c0_47 = arith.constant 0 : index
    %66 = vector.load %arg11[%c32, %c0_47] : memref<36x256xf32, #tpu.memory_space<vmem>>, vector<4x256xf32>
    tpu.vector_store %arg11[%c32, %c0_47], %65 {strides = array<i32>} : memref<36x256xf32, #tpu.memory_space<vmem>>, vector<4x256xf32>,
    %c0_48 = arith.constant 0 : index
    %c0_49 = arith.constant 0 : index
    %67 = vector.load %arg11[%c0_48, %c0_49] : memref<36x256xf32, #tpu.memory_space<vmem>>, vector<36x256xf32>
    %cst_50 = arith.constant dense<0.000000e+00> : vector<8x256xf32>
    %68 = tpu.matmul %13, %67, %cst_50 {dimension_numbers = #tpu.dot_dimension_numbers<[1], [0], [0], [1], [0, 0, 1, 1], [], []>} : vector<8x36xf32>, vector<36x256xf32>, vector<8x256xf32> -> vector<8x256xf32>
    %69 = vector.broadcast %15 : vector<8x1xf32> to vector<8x256xf32>
    %70 = arith.addf %68, %69 : vector<8x256xf32>
    %71 = vector.broadcast %24 : f32 to vector<8x1xf32>
    %72 = arith.mulf %71, %14 : vector<8x1xf32>
    %73 = vector.broadcast %72 : vector<8x1xf32> to vector<8x256xf32>
    %74 = arith.addf %70, %73 : vector<8x256xf32>
    %cst_51 = arith.constant 0.000000e+00 : f32
    %75 = vector.broadcast %cst_51 : f32 to vector<8x256xf32>
    %76 = arith.maximumf %74, %75 : vector<8x256xf32>
    %77 = vector.broadcast %25 : f32 to vector<8x1xf32>
    %78 = arith.mulf %77, %14 : vector<8x1xf32>
    %79 = vector.broadcast %78 : vector<8x1xf32> to vector<8x256xf32>
    %80 = arith.addf %70, %79 : vector<8x256xf32>
    %cst_52 = arith.constant 0.000000e+00 : f32
    %81 = vector.broadcast %cst_52 : f32 to vector<8x256xf32>
    %82 = arith.maximumf %80, %81 : vector<8x256xf32>
    %cst_53 = arith.constant 1.000000e+00 : f32
    %83 = arith.subf %cst_53, %25 : f32
    %84 = vector.broadcast %83 : f32 to vector<8x256xf32>
    %85 = arith.mulf %84, %82 : vector<8x256xf32>
    %cst_54 = arith.constant 1.000000e+00 : f32
    %86 = arith.subf %cst_54, %24 : f32
    %87 = vector.broadcast %86 : f32 to vector<8x256xf32>
    %88 = arith.mulf %87, %76 : vector<8x256xf32>
    %89 = arith.subf %85, %88 : vector<8x256xf32>
    %cst_55 = arith.constant dense<0.000000e+00> : vector<36x256xf32>
    %90 = tpu.matmul %16, %89, %cst_55 {dimension_numbers = #tpu.dot_dimension_numbers<[1], [0], [0], [1], [0, 0, 1, 1], [], []>} : vector<36x8xf32>, vector<8x256xf32>, vector<36x256xf32> -> vector<36x256xf32>
    %91 = vector.extract_strided_slice %90 {offsets = [16, 0], sizes = [4, 256], strides = [1, 1]} : vector<36x256xf32> to vector<4x256xf32>
    %92 = vector.extract_strided_slice %90 {offsets = [0, 0], sizes = [4, 256], strides = [1, 1]} : vector<36x256xf32> to vector<4x256xf32>
    %c17_i32_56 = arith.constant 17 : i32
    %93 = tpu.dynamic_rotate %92 by %c17_i32_56 dim 1 : vector<4x256xf32>, i32 -> vector<4x256xf32>
    %c0_57 = arith.constant 0 : index
    %c0_58 = arith.constant 0 : index
    %c0_59 = arith.constant 0 : index
    %94 = vector.load %arg4[%c0_57, %c0_58, %c0_59] : memref<9x4x256xf32, #tpu.memory_space<vmem>>, vector<1x4x256xf32>
    %95 = vector.shape_cast %94 : vector<1x4x256xf32> to vector<4x256xf32>
    %96 = arith.mulf %93, %95 : vector<4x256xf32>
    %97 = arith.addf %91, %96 : vector<4x256xf32>
    %98 = vector.extract_strided_slice %90 {offsets = [4, 0], sizes = [4, 256], strides = [1, 1]} : vector<36x256xf32> to vector<4x256xf32>
    %c16_i32_60 = arith.constant 16 : i32
    %99 = tpu.dynamic_rotate %98 by %c16_i32_60 dim 1 : vector<4x256xf32>, i32 -> vector<4x256xf32>
    %c1_61 = arith.constant 1 : index
    %c0_62 = arith.constant 0 : index
    %c0_63 = arith.constant 0 : index
    %100 = vector.load %arg4[%c1_61, %c0_62, %c0_63] : memref<9x4x256xf32, #tpu.memory_space<vmem>>, vector<1x4x256xf32>
    %101 = vector.shape_cast %100 : vector<1x4x256xf32> to vector<4x256xf32>
    %102 = arith.mulf %99, %101 : vector<4x256xf32>
    %103 = arith.addf %97, %102 : vector<4x256xf32>
    %104 = vector.extract_strided_slice %90 {offsets = [8, 0], sizes = [4, 256], strides = [1, 1]} : vector<36x256xf32> to vector<4x256xf32>
    %c15_i32_64 = arith.constant 15 : i32
    %105 = tpu.dynamic_rotate %104 by %c15_i32_64 dim 1 : vector<4x256xf32>, i32 -> vector<4x256xf32>
    %c2_65 = arith.constant 2 : index
    %c0_66 = arith.constant 0 : index
    %c0_67 = arith.constant 0 : index
    %106 = vector.load %arg4[%c2_65, %c0_66, %c0_67] : memref<9x4x256xf32, #tpu.memory_space<vmem>>, vector<1x4x256xf32>
    %107 = vector.shape_cast %106 : vector<1x4x256xf32> to vector<4x256xf32>
    %108 = arith.mulf %105, %107 : vector<4x256xf32>
    %109 = arith.addf %103, %108 : vector<4x256xf32>
    %110 = vector.extract_strided_slice %90 {offsets = [12, 0], sizes = [4, 256], strides = [1, 1]} : vector<36x256xf32> to vector<4x256xf32>
    %c1_i32_68 = arith.constant 1 : i32
    %111 = tpu.dynamic_rotate %110 by %c1_i32_68 dim 1 : vector<4x256xf32>, i32 -> vector<4x256xf32>
    %c3_69 = arith.constant 3 : index
    %c0_70 = arith.constant 0 : index
    %c0_71 = arith.constant 0 : index
    %112 = vector.load %arg4[%c3_69, %c0_70, %c0_71] : memref<9x4x256xf32, #tpu.memory_space<vmem>>, vector<1x4x256xf32>
    %113 = vector.shape_cast %112 : vector<1x4x256xf32> to vector<4x256xf32>
    %114 = arith.mulf %111, %113 : vector<4x256xf32>
    %115 = arith.addf %109, %114 : vector<4x256xf32>
    %116 = vector.extract_strided_slice %90 {offsets = [20, 0], sizes = [4, 256], strides = [1, 1]} : vector<36x256xf32> to vector<4x256xf32>
    %c255_i32_72 = arith.constant 255 : i32
    %117 = tpu.dynamic_rotate %116 by %c255_i32_72 dim 1 : vector<4x256xf32>, i32 -> vector<4x256xf32>
    %c5_73 = arith.constant 5 : index
    %c0_74 = arith.constant 0 : index
    %c0_75 = arith.constant 0 : index
    %118 = vector.load %arg4[%c5_73, %c0_74, %c0_75] : memref<9x4x256xf32, #tpu.memory_space<vmem>>, vector<1x4x256xf32>
    %119 = vector.shape_cast %118 : vector<1x4x256xf32> to vector<4x256xf32>
    %120 = arith.mulf %117, %119 : vector<4x256xf32>
    %121 = arith.addf %115, %120 : vector<4x256xf32>
    %122 = vector.extract_strided_slice %90 {offsets = [24, 0], sizes = [4, 256], strides = [1, 1]} : vector<36x256xf32> to vector<4x256xf32>
    %c241_i32_76 = arith.constant 241 : i32
    %123 = tpu.dynamic_rotate %122 by %c241_i32_76 dim 1 : vector<4x256xf32>, i32 -> vector<4x256xf32>
    %c6_77 = arith.constant 6 : index
    %c0_78 = arith.constant 0 : index
    %c0_79 = arith.constant 0 : index
    %124 = vector.load %arg4[%c6_77, %c0_78, %c0_79] : memref<9x4x256xf32, #tpu.memory_space<vmem>>, vector<1x4x256xf32>
    %125 = vector.shape_cast %124 : vector<1x4x256xf32> to vector<4x256xf32>
    %126 = arith.mulf %123, %125 : vector<4x256xf32>
    %127 = arith.addf %121, %126 : vector<4x256xf32>
    %128 = vector.extract_strided_slice %90 {offsets = [28, 0], sizes = [4, 256], strides = [1, 1]} : vector<36x256xf32> to vector<4x256xf32>
    %c240_i32_80 = arith.constant 240 : i32
    %129 = tpu.dynamic_rotate %128 by %c240_i32_80 dim 1 : vector<4x256xf32>, i32 -> vector<4x256xf32>
    %c7_81 = arith.constant 7 : index
    %c0_82 = arith.constant 0 : index
    %c0_83 = arith.constant 0 : index
    %130 = vector.load %arg4[%c7_81, %c0_82, %c0_83] : memref<9x4x256xf32, #tpu.memory_space<vmem>>, vector<1x4x256xf32>
    %131 = vector.shape_cast %130 : vector<1x4x256xf32> to vector<4x256xf32>
    %132 = arith.mulf %129, %131 : vector<4x256xf32>
    %133 = arith.addf %127, %132 : vector<4x256xf32>
    %134 = vector.extract_strided_slice %90 {offsets = [32, 0], sizes = [4, 256], strides = [1, 1]} : vector<36x256xf32> to vector<4x256xf32>
    %c239_i32_84 = arith.constant 239 : i32
    %135 = tpu.dynamic_rotate %134 by %c239_i32_84 dim 1 : vector<4x256xf32>, i32 -> vector<4x256xf32>
    %c8_85 = arith.constant 8 : index
    %c0_86 = arith.constant 0 : index
    %c0_87 = arith.constant 0 : index
    %136 = vector.load %arg4[%c8_85, %c0_86, %c0_87] : memref<9x4x256xf32, #tpu.memory_space<vmem>>, vector<1x4x256xf32>
    %137 = vector.shape_cast %136 : vector<1x4x256xf32> to vector<4x256xf32>
    %138 = arith.mulf %135, %137 : vector<4x256xf32>
    %139 = arith.addf %133, %138 : vector<4x256xf32>
    %140 = arith.addf %12, %139 : vector<4x256xf32>
    %141 = arith.addf %140, %21 : vector<4x256xf32>
    %c1_i32_88 = arith.constant 1 : i32
    %c4_i32_89 = arith.constant 4 : i32
    %142 = arith.subi %c4_i32_89, %c1_i32_88 : i32
    %143 = arith.sitofp %142 : i32 to f32
    %cst_90 = arith.constant 2.500000e-01 : f32
    %144 = arith.mulf %143, %cst_90 : f32
    %cst_91 = arith.constant 2.500000e-01 : f32
    %145 = arith.subf %144, %cst_91 : f32
    %c17_i32_92 = arith.constant 17 : i32
    %146 = tpu.dynamic_rotate %141 by %c17_i32_92 dim 1 : vector<4x256xf32>, i32 -> vector<4x256xf32>
    %c0_93 = arith.constant 0 : index
    %c0_94 = arith.constant 0 : index
    %c0_95 = arith.constant 0 : index
    %147 = vector.load %arg4[%c0_93, %c0_94, %c0_95] : memref<9x4x256xf32, #tpu.memory_space<vmem>>, vector<1x4x256xf32>
    %148 = vector.shape_cast %147 : vector<1x4x256xf32> to vector<4x256xf32>
    %149 = arith.mulf %146, %148 : vector<4x256xf32>
    %c0_96 = arith.constant 0 : index
    %c0_97 = arith.constant 0 : index
    %150 = vector.load %arg11[%c0_96, %c0_97] : memref<36x256xf32, #tpu.memory_space<vmem>>, vector<4x256xf32>
    tpu.vector_store %arg11[%c0_96, %c0_97], %149 {strides = array<i32>} : memref<36x256xf32, #tpu.memory_space<vmem>>, vector<4x256xf32>,
    %c16_i32_98 = arith.constant 16 : i32
    %151 = tpu.dynamic_rotate %141 by %c16_i32_98 dim 1 : vector<4x256xf32>, i32 -> vector<4x256xf32>
    %c1_99 = arith.constant 1 : index
    %c0_100 = arith.constant 0 : index
    %c0_101 = arith.constant 0 : index
    %152 = vector.load %arg4[%c1_99, %c0_100, %c0_101] : memref<9x4x256xf32, #tpu.memory_space<vmem>>, vector<1x4x256xf32>
    %153 = vector.shape_cast %152 : vector<1x4x256xf32> to vector<4x256xf32>
    %154 = arith.mulf %151, %153 : vector<4x256xf32>
    %c4_102 = arith.constant 4 : index
    %c0_103 = arith.constant 0 : index
    %155 = vector.load %arg11[%c4_102, %c0_103] : memref<36x256xf32, #tpu.memory_space<vmem>>, vector<4x256xf32>
    tpu.vector_store %arg11[%c4_102, %c0_103], %154 {strides = array<i32>} : memref<36x256xf32, #tpu.memory_space<vmem>>, vector<4x256xf32>,
    %c15_i32_104 = arith.constant 15 : i32
    %156 = tpu.dynamic_rotate %141 by %c15_i32_104 dim 1 : vector<4x256xf32>, i32 -> vector<4x256xf32>
    %c2_105 = arith.constant 2 : index
    %c0_106 = arith.constant 0 : index
    %c0_107 = arith.constant 0 : index
    %157 = vector.load %arg4[%c2_105, %c0_106, %c0_107] : memref<9x4x256xf32, #tpu.memory_space<vmem>>, vector<1x4x256xf32>
    %158 = vector.shape_cast %157 : vector<1x4x256xf32> to vector<4x256xf32>
    %159 = arith.mulf %156, %158 : vector<4x256xf32>
    %c8_108 = arith.constant 8 : index
    %c0_109 = arith.constant 0 : index
    %160 = vector.load %arg11[%c8_108, %c0_109] : memref<36x256xf32, #tpu.memory_space<vmem>>, vector<4x256xf32>
    tpu.vector_store %arg11[%c8_108, %c0_109], %159 {strides = array<i32>} : memref<36x256xf32, #tpu.memory_space<vmem>>, vector<4x256xf32>,
    %c1_i32_110 = arith.constant 1 : i32
    %161 = tpu.dynamic_rotate %141 by %c1_i32_110 dim 1 : vector<4x256xf32>, i32 -> vector<4x256xf32>
    %c3_111 = arith.constant 3 : index
    %c0_112 = arith.constant 0 : index
    %c0_113 = arith.constant 0 : index
    %162 = vector.load %arg4[%c3_111, %c0_112, %c0_113] : memref<9x4x256xf32, #tpu.memory_space<vmem>>, vector<1x4x256xf32>
    %163 = vector.shape_cast %162 : vector<1x4x256xf32> to vector<4x256xf32>
    %164 = arith.mulf %161, %163 : vector<4x256xf32>
    %c12_114 = arith.constant 12 : index
    %c0_115 = arith.constant 0 : index
    %165 = vector.load %arg11[%c12_114, %c0_115] : memref<36x256xf32, #tpu.memory_space<vmem>>, vector<4x256xf32>
    tpu.vector_store %arg11[%c12_114, %c0_115], %164 {strides = array<i32>} : memref<36x256xf32, #tpu.memory_space<vmem>>, vector<4x256xf32>,
    %c16_116 = arith.constant 16 : index
    %c0_117 = arith.constant 0 : index
    %166 = vector.load %arg11[%c16_116, %c0_117] : memref<36x256xf32, #tpu.memory_space<vmem>>, vector<4x256xf32>
    tpu.vector_store %arg11[%c16_116, %c0_117], %141 {strides = array<i32>} : memref<36x256xf32, #tpu.memory_space<vmem>>, vector<4x256xf32>,
    %c255_i32_118 = arith.constant 255 : i32
    %167 = tpu.dynamic_rotate %141 by %c255_i32_118 dim 1 : vector<4x256xf32>, i32 -> vector<4x256xf32>
    %c5_119 = arith.constant 5 : index
    %c0_120 = arith.constant 0 : index
    %c0_121 = arith.constant 0 : index
    %168 = vector.load %arg4[%c5_119, %c0_120, %c0_121] : memref<9x4x256xf32, #tpu.memory_space<vmem>>, vector<1x4x256xf32>
    %169 = vector.shape_cast %168 : vector<1x4x256xf32> to vector<4x256xf32>
    %170 = arith.mulf %167, %169 : vector<4x256xf32>
    %c20_122 = arith.constant 20 : index
    %c0_123 = arith.constant 0 : index
    %171 = vector.load %arg11[%c20_122, %c0_123] : memref<36x256xf32, #tpu.memory_space<vmem>>, vector<4x256xf32>
    tpu.vector_store %arg11[%c20_122, %c0_123], %170 {strides = array<i32>} : memref<36x256xf32, #tpu.memory_space<vmem>>, vector<4x256xf32>,
    %c241_i32_124 = arith.constant 241 : i32
    %172 = tpu.dynamic_rotate %141 by %c241_i32_124 dim 1 : vector<4x256xf32>, i32 -> vector<4x256xf32>
    %c6_125 = arith.constant 6 : index
    %c0_126 = arith.constant 0 : index
    %c0_127 = arith.constant 0 : index
    %173 = vector.load %arg4[%c6_125, %c0_126, %c0_127] : memref<9x4x256xf32, #tpu.memory_space<vmem>>, vector<1x4x256xf32>
    %174 = vector.shape_cast %173 : vector<1x4x256xf32> to vector<4x256xf32>
    %175 = arith.mulf %172, %174 : vector<4x256xf32>
    %c24_128 = arith.constant 24 : index
    %c0_129 = arith.constant 0 : index
    %176 = vector.load %arg11[%c24_128, %c0_129] : memref<36x256xf32, #tpu.memory_space<vmem>>, vector<4x256xf32>
    tpu.vector_store %arg11[%c24_128, %c0_129], %175 {strides = array<i32>} : memref<36x256xf32, #tpu.memory_space<vmem>>, vector<4x256xf32>,
    %c240_i32_130 = arith.constant 240 : i32
    %177 = tpu.dynamic_rotate %141 by %c240_i32_130 dim 1 : vector<4x256xf32>, i32 -> vector<4x256xf32>
    %c7_131 = arith.constant 7 : index
    %c0_132 = arith.constant 0 : index
    %c0_133 = arith.constant 0 : index
    %178 = vector.load %arg4[%c7_131, %c0_132, %c0_133] : memref<9x4x256xf32, #tpu.memory_space<vmem>>, vector<1x4x256xf32>
    %179 = vector.shape_cast %178 : vector<1x4x256xf32> to vector<4x256xf32>
    %180 = arith.mulf %177, %179 : vector<4x256xf32>
    %c28_134 = arith.constant 28 : index
    %c0_135 = arith.constant 0 : index
    %181 = vector.load %arg11[%c28_134, %c0_135] : memref<36x256xf32, #tpu.memory_space<vmem>>, vector<4x256xf32>
    tpu.vector_store %arg11[%c28_134, %c0_135], %180 {strides = array<i32>} : memref<36x256xf32, #tpu.memory_space<vmem>>, vector<4x256xf32>,
    %c239_i32_136 = arith.constant 239 : i32
    %182 = tpu.dynamic_rotate %141 by %c239_i32_136 dim 1 : vector<4x256xf32>, i32 -> vector<4x256xf32>
    %c8_137 = arith.constant 8 : index
    %c0_138 = arith.constant 0 : index
    %c0_139 = arith.constant 0 : index
    %183 = vector.load %arg4[%c8_137, %c0_138, %c0_139] : memref<9x4x256xf32, #tpu.memory_space<vmem>>, vector<1x4x256xf32>
    %184 = vector.shape_cast %183 : vector<1x4x256xf32> to vector<4x256xf32>
    %185 = arith.mulf %182, %184 : vector<4x256xf32>
    %c32_140 = arith.constant 32 : index
    %c0_141 = arith.constant 0 : index
    %186 = vector.load %arg11[%c32_140, %c0_141] : memref<36x256xf32, #tpu.memory_space<vmem>>, vector<4x256xf32>
    tpu.vector_store %arg11[%c32_140, %c0_141], %185 {strides = array<i32>} : memref<36x256xf32, #tpu.memory_space<vmem>>, vector<4x256xf32>,
    %c0_142 = arith.constant 0 : index
    %c0_143 = arith.constant 0 : index
    %187 = vector.load %arg11[%c0_142, %c0_143] : memref<36x256xf32, #tpu.memory_space<vmem>>, vector<36x256xf32>
    %cst_144 = arith.constant dense<0.000000e+00> : vector<8x256xf32>
    %188 = tpu.matmul %13, %187, %cst_144 {dimension_numbers = #tpu.dot_dimension_numbers<[1], [0], [0], [1], [0, 0, 1, 1], [], []>} : vector<8x36xf32>, vector<36x256xf32>, vector<8x256xf32> -> vector<8x256xf32>
    %189 = vector.broadcast %15 : vector<8x1xf32> to vector<8x256xf32>
    %190 = arith.addf %188, %189 : vector<8x256xf32>
    %191 = vector.broadcast %144 : f32 to vector<8x1xf32>
    %192 = arith.mulf %191, %14 : vector<8x1xf32>
    %193 = vector.broadcast %192 : vector<8x1xf32> to vector<8x256xf32>
    %194 = arith.addf %190, %193 : vector<8x256xf32>
    %cst_145 = arith.constant 0.000000e+00 : f32
    %195 = vector.broadcast %cst_145 : f32 to vector<8x256xf32>
    %196 = arith.maximumf %194, %195 : vector<8x256xf32>
    %197 = vector.broadcast %145 : f32 to vector<8x1xf32>
    %198 = arith.mulf %197, %14 : vector<8x1xf32>
    %199 = vector.broadcast %198 : vector<8x1xf32> to vector<8x256xf32>
    %200 = arith.addf %190, %199 : vector<8x256xf32>
    %cst_146 = arith.constant 0.000000e+00 : f32
    %201 = vector.broadcast %cst_146 : f32 to vector<8x256xf32>
    %202 = arith.maximumf %200, %201 : vector<8x256xf32>
    %cst_147 = arith.constant 1.000000e+00 : f32
    %203 = arith.subf %cst_147, %145 : f32
    %204 = vector.broadcast %203 : f32 to vector<8x256xf32>
    %205 = arith.mulf %204, %202 : vector<8x256xf32>
    %cst_148 = arith.constant 1.000000e+00 : f32
    %206 = arith.subf %cst_148, %144 : f32
    %207 = vector.broadcast %206 : f32 to vector<8x256xf32>
    %208 = arith.mulf %207, %196 : vector<8x256xf32>
    %209 = arith.subf %205, %208 : vector<8x256xf32>
    %cst_149 = arith.constant dense<0.000000e+00> : vector<36x256xf32>
    %210 = tpu.matmul %16, %209, %cst_149 {dimension_numbers = #tpu.dot_dimension_numbers<[1], [0], [0], [1], [0, 0, 1, 1], [], []>} : vector<36x8xf32>, vector<8x256xf32>, vector<36x256xf32> -> vector<36x256xf32>
    %211 = vector.extract_strided_slice %210 {offsets = [16, 0], sizes = [4, 256], strides = [1, 1]} : vector<36x256xf32> to vector<4x256xf32>
    %212 = vector.extract_strided_slice %210 {offsets = [0, 0], sizes = [4, 256], strides = [1, 1]} : vector<36x256xf32> to vector<4x256xf32>
    %c17_i32_150 = arith.constant 17 : i32
    %213 = tpu.dynamic_rotate %212 by %c17_i32_150 dim 1 : vector<4x256xf32>, i32 -> vector<4x256xf32>
    %c0_151 = arith.constant 0 : index
    %c0_152 = arith.constant 0 : index
    %c0_153 = arith.constant 0 : index
    %214 = vector.load %arg4[%c0_151, %c0_152, %c0_153] : memref<9x4x256xf32, #tpu.memory_space<vmem>>, vector<1x4x256xf32>
    %215 = vector.shape_cast %214 : vector<1x4x256xf32> to vector<4x256xf32>
    %216 = arith.mulf %213, %215 : vector<4x256xf32>
    %217 = arith.addf %211, %216 : vector<4x256xf32>
    %218 = vector.extract_strided_slice %210 {offsets = [4, 0], sizes = [4, 256], strides = [1, 1]} : vector<36x256xf32> to vector<4x256xf32>
    %c16_i32_154 = arith.constant 16 : i32
    %219 = tpu.dynamic_rotate %218 by %c16_i32_154 dim 1 : vector<4x256xf32>, i32 -> vector<4x256xf32>
    %c1_155 = arith.constant 1 : index
    %c0_156 = arith.constant 0 : index
    %c0_157 = arith.constant 0 : index
    %220 = vector.load %arg4[%c1_155, %c0_156, %c0_157] : memref<9x4x256xf32, #tpu.memory_space<vmem>>, vector<1x4x256xf32>
    %221 = vector.shape_cast %220 : vector<1x4x256xf32> to vector<4x256xf32>
    %222 = arith.mulf %219, %221 : vector<4x256xf32>
    %223 = arith.addf %217, %222 : vector<4x256xf32>
    %224 = vector.extract_strided_slice %210 {offsets = [8, 0], sizes = [4, 256], strides = [1, 1]} : vector<36x256xf32> to vector<4x256xf32>
    %c15_i32_158 = arith.constant 15 : i32
    %225 = tpu.dynamic_rotate %224 by %c15_i32_158 dim 1 : vector<4x256xf32>, i32 -> vector<4x256xf32>
    %c2_159 = arith.constant 2 : index
    %c0_160 = arith.constant 0 : index
    %c0_161 = arith.constant 0 : index
    %226 = vector.load %arg4[%c2_159, %c0_160, %c0_161] : memref<9x4x256xf32, #tpu.memory_space<vmem>>, vector<1x4x256xf32>
    %227 = vector.shape_cast %226 : vector<1x4x256xf32> to vector<4x256xf32>
    %228 = arith.mulf %225, %227 : vector<4x256xf32>
    %229 = arith.addf %223, %228 : vector<4x256xf32>
    %230 = vector.extract_strided_slice %210 {offsets = [12, 0], sizes = [4, 256], strides = [1, 1]} : vector<36x256xf32> to vector<4x256xf32>
    %c1_i32_162 = arith.constant 1 : i32
    %231 = tpu.dynamic_rotate %230 by %c1_i32_162 dim 1 : vector<4x256xf32>, i32 -> vector<4x256xf32>
    %c3_163 = arith.constant 3 : index
    %c0_164 = arith.constant 0 : index
    %c0_165 = arith.constant 0 : index
    %232 = vector.load %arg4[%c3_163, %c0_164, %c0_165] : memref<9x4x256xf32, #tpu.memory_space<vmem>>, vector<1x4x256xf32>
    %233 = vector.shape_cast %232 : vector<1x4x256xf32> to vector<4x256xf32>
    %234 = arith.mulf %231, %233 : vector<4x256xf32>
    %235 = arith.addf %229, %234 : vector<4x256xf32>
    %236 = vector.extract_strided_slice %210 {offsets = [20, 0], sizes = [4, 256], strides = [1, 1]} : vector<36x256xf32> to vector<4x256xf32>
    %c255_i32_166 = arith.constant 255 : i32
    %237 = tpu.dynamic_rotate %236 by %c255_i32_166 dim 1 : vector<4x256xf32>, i32 -> vector<4x256xf32>
    %c5_167 = arith.constant 5 : index
    %c0_168 = arith.constant 0 : index
    %c0_169 = arith.constant 0 : index
    %238 = vector.load %arg4[%c5_167, %c0_168, %c0_169] : memref<9x4x256xf32, #tpu.memory_space<vmem>>, vector<1x4x256xf32>
    %239 = vector.shape_cast %238 : vector<1x4x256xf32> to vector<4x256xf32>
    %240 = arith.mulf %237, %239 : vector<4x256xf32>
    %241 = arith.addf %235, %240 : vector<4x256xf32>
    %242 = vector.extract_strided_slice %210 {offsets = [24, 0], sizes = [4, 256], strides = [1, 1]} : vector<36x256xf32> to vector<4x256xf32>
    %c241_i32_170 = arith.constant 241 : i32
    %243 = tpu.dynamic_rotate %242 by %c241_i32_170 dim 1 : vector<4x256xf32>, i32 -> vector<4x256xf32>
    %c6_171 = arith.constant 6 : index
    %c0_172 = arith.constant 0 : index
    %c0_173 = arith.constant 0 : index
    %244 = vector.load %arg4[%c6_171, %c0_172, %c0_173] : memref<9x4x256xf32, #tpu.memory_space<vmem>>, vector<1x4x256xf32>
    %245 = vector.shape_cast %244 : vector<1x4x256xf32> to vector<4x256xf32>
    %246 = arith.mulf %243, %245 : vector<4x256xf32>
    %247 = arith.addf %241, %246 : vector<4x256xf32>
    %248 = vector.extract_strided_slice %210 {offsets = [28, 0], sizes = [4, 256], strides = [1, 1]} : vector<36x256xf32> to vector<4x256xf32>
    %c240_i32_174 = arith.constant 240 : i32
    %249 = tpu.dynamic_rotate %248 by %c240_i32_174 dim 1 : vector<4x256xf32>, i32 -> vector<4x256xf32>
    %c7_175 = arith.constant 7 : index
    %c0_176 = arith.constant 0 : index
    %c0_177 = arith.constant 0 : index
    %250 = vector.load %arg4[%c7_175, %c0_176, %c0_177] : memref<9x4x256xf32, #tpu.memory_space<vmem>>, vector<1x4x256xf32>
    %251 = vector.shape_cast %250 : vector<1x4x256xf32> to vector<4x256xf32>
    %252 = arith.mulf %249, %251 : vector<4x256xf32>
    %253 = arith.addf %247, %252 : vector<4x256xf32>
    %254 = vector.extract_strided_slice %210 {offsets = [32, 0], sizes = [4, 256], strides = [1, 1]} : vector<36x256xf32> to vector<4x256xf32>
    %c239_i32_178 = arith.constant 239 : i32
    %255 = tpu.dynamic_rotate %254 by %c239_i32_178 dim 1 : vector<4x256xf32>, i32 -> vector<4x256xf32>
    %c8_179 = arith.constant 8 : index
    %c0_180 = arith.constant 0 : index
    %c0_181 = arith.constant 0 : index
    %256 = vector.load %arg4[%c8_179, %c0_180, %c0_181] : memref<9x4x256xf32, #tpu.memory_space<vmem>>, vector<1x4x256xf32>
    %257 = vector.shape_cast %256 : vector<1x4x256xf32> to vector<4x256xf32>
    %258 = arith.mulf %255, %257 : vector<4x256xf32>
    %259 = arith.addf %253, %258 : vector<4x256xf32>
    %260 = arith.addf %141, %259 : vector<4x256xf32>
    %261 = arith.addf %260, %21 : vector<4x256xf32>
    %c2_i32 = arith.constant 2 : i32
    %c4_i32_182 = arith.constant 4 : i32
    %262 = arith.subi %c4_i32_182, %c2_i32 : i32
    %263 = arith.sitofp %262 : i32 to f32
    %cst_183 = arith.constant 2.500000e-01 : f32
    %264 = arith.mulf %263, %cst_183 : f32
    %cst_184 = arith.constant 2.500000e-01 : f32
    %265 = arith.subf %264, %cst_184 : f32
    %c17_i32_185 = arith.constant 17 : i32
    %266 = tpu.dynamic_rotate %261 by %c17_i32_185 dim 1 : vector<4x256xf32>, i32 -> vector<4x256xf32>
    %c0_186 = arith.constant 0 : index
    %c0_187 = arith.constant 0 : index
    %c0_188 = arith.constant 0 : index
    %267 = vector.load %arg4[%c0_186, %c0_187, %c0_188] : memref<9x4x256xf32, #tpu.memory_space<vmem>>, vector<1x4x256xf32>
    %268 = vector.shape_cast %267 : vector<1x4x256xf32> to vector<4x256xf32>
    %269 = arith.mulf %266, %268 : vector<4x256xf32>
    %c0_189 = arith.constant 0 : index
    %c0_190 = arith.constant 0 : index
    %270 = vector.load %arg11[%c0_189, %c0_190] : memref<36x256xf32, #tpu.memory_space<vmem>>, vector<4x256xf32>
    tpu.vector_store %arg11[%c0_189, %c0_190], %269 {strides = array<i32>} : memref<36x256xf32, #tpu.memory_space<vmem>>, vector<4x256xf32>,
    %c16_i32_191 = arith.constant 16 : i32
    %271 = tpu.dynamic_rotate %261 by %c16_i32_191 dim 1 : vector<4x256xf32>, i32 -> vector<4x256xf32>
    %c1_192 = arith.constant 1 : index
    %c0_193 = arith.constant 0 : index
    %c0_194 = arith.constant 0 : index
    %272 = vector.load %arg4[%c1_192, %c0_193, %c0_194] : memref<9x4x256xf32, #tpu.memory_space<vmem>>, vector<1x4x256xf32>
    %273 = vector.shape_cast %272 : vector<1x4x256xf32> to vector<4x256xf32>
    %274 = arith.mulf %271, %273 : vector<4x256xf32>
    %c4_195 = arith.constant 4 : index
    %c0_196 = arith.constant 0 : index
    %275 = vector.load %arg11[%c4_195, %c0_196] : memref<36x256xf32, #tpu.memory_space<vmem>>, vector<4x256xf32>
    tpu.vector_store %arg11[%c4_195, %c0_196], %274 {strides = array<i32>} : memref<36x256xf32, #tpu.memory_space<vmem>>, vector<4x256xf32>,
    %c15_i32_197 = arith.constant 15 : i32
    %276 = tpu.dynamic_rotate %261 by %c15_i32_197 dim 1 : vector<4x256xf32>, i32 -> vector<4x256xf32>
    %c2_198 = arith.constant 2 : index
    %c0_199 = arith.constant 0 : index
    %c0_200 = arith.constant 0 : index
    %277 = vector.load %arg4[%c2_198, %c0_199, %c0_200] : memref<9x4x256xf32, #tpu.memory_space<vmem>>, vector<1x4x256xf32>
    %278 = vector.shape_cast %277 : vector<1x4x256xf32> to vector<4x256xf32>
    %279 = arith.mulf %276, %278 : vector<4x256xf32>
    %c8_201 = arith.constant 8 : index
    %c0_202 = arith.constant 0 : index
    %280 = vector.load %arg11[%c8_201, %c0_202] : memref<36x256xf32, #tpu.memory_space<vmem>>, vector<4x256xf32>
    tpu.vector_store %arg11[%c8_201, %c0_202], %279 {strides = array<i32>} : memref<36x256xf32, #tpu.memory_space<vmem>>, vector<4x256xf32>,
    %c1_i32_203 = arith.constant 1 : i32
    %281 = tpu.dynamic_rotate %261 by %c1_i32_203 dim 1 : vector<4x256xf32>, i32 -> vector<4x256xf32>
    %c3_204 = arith.constant 3 : index
    %c0_205 = arith.constant 0 : index
    %c0_206 = arith.constant 0 : index
    %282 = vector.load %arg4[%c3_204, %c0_205, %c0_206] : memref<9x4x256xf32, #tpu.memory_space<vmem>>, vector<1x4x256xf32>
    %283 = vector.shape_cast %282 : vector<1x4x256xf32> to vector<4x256xf32>
    %284 = arith.mulf %281, %283 : vector<4x256xf32>
    %c12_207 = arith.constant 12 : index
    %c0_208 = arith.constant 0 : index
    %285 = vector.load %arg11[%c12_207, %c0_208] : memref<36x256xf32, #tpu.memory_space<vmem>>, vector<4x256xf32>
    tpu.vector_store %arg11[%c12_207, %c0_208], %284 {strides = array<i32>} : memref<36x256xf32, #tpu.memory_space<vmem>>, vector<4x256xf32>,
    %c16_209 = arith.constant 16 : index
    %c0_210 = arith.constant 0 : index
    %286 = vector.load %arg11[%c16_209, %c0_210] : memref<36x256xf32, #tpu.memory_space<vmem>>, vector<4x256xf32>
    tpu.vector_store %arg11[%c16_209, %c0_210], %261 {strides = array<i32>} : memref<36x256xf32, #tpu.memory_space<vmem>>, vector<4x256xf32>,
    %c255_i32_211 = arith.constant 255 : i32
    %287 = tpu.dynamic_rotate %261 by %c255_i32_211 dim 1 : vector<4x256xf32>, i32 -> vector<4x256xf32>
    %c5_212 = arith.constant 5 : index
    %c0_213 = arith.constant 0 : index
    %c0_214 = arith.constant 0 : index
    %288 = vector.load %arg4[%c5_212, %c0_213, %c0_214] : memref<9x4x256xf32, #tpu.memory_space<vmem>>, vector<1x4x256xf32>
    %289 = vector.shape_cast %288 : vector<1x4x256xf32> to vector<4x256xf32>
    %290 = arith.mulf %287, %289 : vector<4x256xf32>
    %c20_215 = arith.constant 20 : index
    %c0_216 = arith.constant 0 : index
    %291 = vector.load %arg11[%c20_215, %c0_216] : memref<36x256xf32, #tpu.memory_space<vmem>>, vector<4x256xf32>
    tpu.vector_store %arg11[%c20_215, %c0_216], %290 {strides = array<i32>} : memref<36x256xf32, #tpu.memory_space<vmem>>, vector<4x256xf32>,
    %c241_i32_217 = arith.constant 241 : i32
    %292 = tpu.dynamic_rotate %261 by %c241_i32_217 dim 1 : vector<4x256xf32>, i32 -> vector<4x256xf32>
    %c6_218 = arith.constant 6 : index
    %c0_219 = arith.constant 0 : index
    %c0_220 = arith.constant 0 : index
    %293 = vector.load %arg4[%c6_218, %c0_219, %c0_220] : memref<9x4x256xf32, #tpu.memory_space<vmem>>, vector<1x4x256xf32>
    %294 = vector.shape_cast %293 : vector<1x4x256xf32> to vector<4x256xf32>
    %295 = arith.mulf %292, %294 : vector<4x256xf32>
    %c24_221 = arith.constant 24 : index
    %c0_222 = arith.constant 0 : index
    %296 = vector.load %arg11[%c24_221, %c0_222] : memref<36x256xf32, #tpu.memory_space<vmem>>, vector<4x256xf32>
    tpu.vector_store %arg11[%c24_221, %c0_222], %295 {strides = array<i32>} : memref<36x256xf32, #tpu.memory_space<vmem>>, vector<4x256xf32>,
    %c240_i32_223 = arith.constant 240 : i32
    %297 = tpu.dynamic_rotate %261 by %c240_i32_223 dim 1 : vector<4x256xf32>, i32 -> vector<4x256xf32>
    %c7_224 = arith.constant 7 : index
    %c0_225 = arith.constant 0 : index
    %c0_226 = arith.constant 0 : index
    %298 = vector.load %arg4[%c7_224, %c0_225, %c0_226] : memref<9x4x256xf32, #tpu.memory_space<vmem>>, vector<1x4x256xf32>
    %299 = vector.shape_cast %298 : vector<1x4x256xf32> to vector<4x256xf32>
    %300 = arith.mulf %297, %299 : vector<4x256xf32>
    %c28_227 = arith.constant 28 : index
    %c0_228 = arith.constant 0 : index
    %301 = vector.load %arg11[%c28_227, %c0_228] : memref<36x256xf32, #tpu.memory_space<vmem>>, vector<4x256xf32>
    tpu.vector_store %arg11[%c28_227, %c0_228], %300 {strides = array<i32>} : memref<36x256xf32, #tpu.memory_space<vmem>>, vector<4x256xf32>,
    %c239_i32_229 = arith.constant 239 : i32
    %302 = tpu.dynamic_rotate %261 by %c239_i32_229 dim 1 : vector<4x256xf32>, i32 -> vector<4x256xf32>
    %c8_230 = arith.constant 8 : index
    %c0_231 = arith.constant 0 : index
    %c0_232 = arith.constant 0 : index
    %303 = vector.load %arg4[%c8_230, %c0_231, %c0_232] : memref<9x4x256xf32, #tpu.memory_space<vmem>>, vector<1x4x256xf32>
    %304 = vector.shape_cast %303 : vector<1x4x256xf32> to vector<4x256xf32>
    %305 = arith.mulf %302, %304 : vector<4x256xf32>
    %c32_233 = arith.constant 32 : index
    %c0_234 = arith.constant 0 : index
    %306 = vector.load %arg11[%c32_233, %c0_234] : memref<36x256xf32, #tpu.memory_space<vmem>>, vector<4x256xf32>
    tpu.vector_store %arg11[%c32_233, %c0_234], %305 {strides = array<i32>} : memref<36x256xf32, #tpu.memory_space<vmem>>, vector<4x256xf32>,
    %c0_235 = arith.constant 0 : index
    %c0_236 = arith.constant 0 : index
    %307 = vector.load %arg11[%c0_235, %c0_236] : memref<36x256xf32, #tpu.memory_space<vmem>>, vector<36x256xf32>
    %cst_237 = arith.constant dense<0.000000e+00> : vector<8x256xf32>
    %308 = tpu.matmul %13, %307, %cst_237 {dimension_numbers = #tpu.dot_dimension_numbers<[1], [0], [0], [1], [0, 0, 1, 1], [], []>} : vector<8x36xf32>, vector<36x256xf32>, vector<8x256xf32> -> vector<8x256xf32>
    %309 = vector.broadcast %15 : vector<8x1xf32> to vector<8x256xf32>
    %310 = arith.addf %308, %309 : vector<8x256xf32>
    %311 = vector.broadcast %264 : f32 to vector<8x1xf32>
    %312 = arith.mulf %311, %14 : vector<8x1xf32>
    %313 = vector.broadcast %312 : vector<8x1xf32> to vector<8x256xf32>
    %314 = arith.addf %310, %313 : vector<8x256xf32>
    %cst_238 = arith.constant 0.000000e+00 : f32
    %315 = vector.broadcast %cst_238 : f32 to vector<8x256xf32>
    %316 = arith.maximumf %314, %315 : vector<8x256xf32>
    %317 = vector.broadcast %265 : f32 to vector<8x1xf32>
    %318 = arith.mulf %317, %14 : vector<8x1xf32>
    %319 = vector.broadcast %318 : vector<8x1xf32> to vector<8x256xf32>
    %320 = arith.addf %310, %319 : vector<8x256xf32>
    %cst_239 = arith.constant 0.000000e+00 : f32
    %321 = vector.broadcast %cst_239 : f32 to vector<8x256xf32>
    %322 = arith.maximumf %320, %321 : vector<8x256xf32>
    %cst_240 = arith.constant 1.000000e+00 : f32
    %323 = arith.subf %cst_240, %265 : f32
    %324 = vector.broadcast %323 : f32 to vector<8x256xf32>
    %325 = arith.mulf %324, %322 : vector<8x256xf32>
    %cst_241 = arith.constant 1.000000e+00 : f32
    %326 = arith.subf %cst_241, %264 : f32
    %327 = vector.broadcast %326 : f32 to vector<8x256xf32>
    %328 = arith.mulf %327, %316 : vector<8x256xf32>
    %329 = arith.subf %325, %328 : vector<8x256xf32>
    %cst_242 = arith.constant dense<0.000000e+00> : vector<36x256xf32>
    %330 = tpu.matmul %16, %329, %cst_242 {dimension_numbers = #tpu.dot_dimension_numbers<[1], [0], [0], [1], [0, 0, 1, 1], [], []>} : vector<36x8xf32>, vector<8x256xf32>, vector<36x256xf32> -> vector<36x256xf32>
    %331 = vector.extract_strided_slice %330 {offsets = [16, 0], sizes = [4, 256], strides = [1, 1]} : vector<36x256xf32> to vector<4x256xf32>
    %332 = vector.extract_strided_slice %330 {offsets = [0, 0], sizes = [4, 256], strides = [1, 1]} : vector<36x256xf32> to vector<4x256xf32>
    %c17_i32_243 = arith.constant 17 : i32
    %333 = tpu.dynamic_rotate %332 by %c17_i32_243 dim 1 : vector<4x256xf32>, i32 -> vector<4x256xf32>
    %c0_244 = arith.constant 0 : index
    %c0_245 = arith.constant 0 : index
    %c0_246 = arith.constant 0 : index
    %334 = vector.load %arg4[%c0_244, %c0_245, %c0_246] : memref<9x4x256xf32, #tpu.memory_space<vmem>>, vector<1x4x256xf32>
    %335 = vector.shape_cast %334 : vector<1x4x256xf32> to vector<4x256xf32>
    %336 = arith.mulf %333, %335 : vector<4x256xf32>
    %337 = arith.addf %331, %336 : vector<4x256xf32>
    %338 = vector.extract_strided_slice %330 {offsets = [4, 0], sizes = [4, 256], strides = [1, 1]} : vector<36x256xf32> to vector<4x256xf32>
    %c16_i32_247 = arith.constant 16 : i32
    %339 = tpu.dynamic_rotate %338 by %c16_i32_247 dim 1 : vector<4x256xf32>, i32 -> vector<4x256xf32>
    %c1_248 = arith.constant 1 : index
    %c0_249 = arith.constant 0 : index
    %c0_250 = arith.constant 0 : index
    %340 = vector.load %arg4[%c1_248, %c0_249, %c0_250] : memref<9x4x256xf32, #tpu.memory_space<vmem>>, vector<1x4x256xf32>
    %341 = vector.shape_cast %340 : vector<1x4x256xf32> to vector<4x256xf32>
    %342 = arith.mulf %339, %341 : vector<4x256xf32>
    %343 = arith.addf %337, %342 : vector<4x256xf32>
    %344 = vector.extract_strided_slice %330 {offsets = [8, 0], sizes = [4, 256], strides = [1, 1]} : vector<36x256xf32> to vector<4x256xf32>
    %c15_i32_251 = arith.constant 15 : i32
    %345 = tpu.dynamic_rotate %344 by %c15_i32_251 dim 1 : vector<4x256xf32>, i32 -> vector<4x256xf32>
    %c2_252 = arith.constant 2 : index
    %c0_253 = arith.constant 0 : index
    %c0_254 = arith.constant 0 : index
    %346 = vector.load %arg4[%c2_252, %c0_253, %c0_254] : memref<9x4x256xf32, #tpu.memory_space<vmem>>, vector<1x4x256xf32>
    %347 = vector.shape_cast %346 : vector<1x4x256xf32> to vector<4x256xf32>
    %348 = arith.mulf %345, %347 : vector<4x256xf32>
    %349 = arith.addf %343, %348 : vector<4x256xf32>
    %350 = vector.extract_strided_slice %330 {offsets = [12, 0], sizes = [4, 256], strides = [1, 1]} : vector<36x256xf32> to vector<4x256xf32>
    %c1_i32_255 = arith.constant 1 : i32
    %351 = tpu.dynamic_rotate %350 by %c1_i32_255 dim 1 : vector<4x256xf32>, i32 -> vector<4x256xf32>
    %c3_256 = arith.constant 3 : index
    %c0_257 = arith.constant 0 : index
    %c0_258 = arith.constant 0 : index
    %352 = vector.load %arg4[%c3_256, %c0_257, %c0_258] : memref<9x4x256xf32, #tpu.memory_space<vmem>>, vector<1x4x256xf32>
    %353 = vector.shape_cast %352 : vector<1x4x256xf32> to vector<4x256xf32>
    %354 = arith.mulf %351, %353 : vector<4x256xf32>
    %355 = arith.addf %349, %354 : vector<4x256xf32>
    %356 = vector.extract_strided_slice %330 {offsets = [20, 0], sizes = [4, 256], strides = [1, 1]} : vector<36x256xf32> to vector<4x256xf32>
    %c255_i32_259 = arith.constant 255 : i32
    %357 = tpu.dynamic_rotate %356 by %c255_i32_259 dim 1 : vector<4x256xf32>, i32 -> vector<4x256xf32>
    %c5_260 = arith.constant 5 : index
    %c0_261 = arith.constant 0 : index
    %c0_262 = arith.constant 0 : index
    %358 = vector.load %arg4[%c5_260, %c0_261, %c0_262] : memref<9x4x256xf32, #tpu.memory_space<vmem>>, vector<1x4x256xf32>
    %359 = vector.shape_cast %358 : vector<1x4x256xf32> to vector<4x256xf32>
    %360 = arith.mulf %357, %359 : vector<4x256xf32>
    %361 = arith.addf %355, %360 : vector<4x256xf32>
    %362 = vector.extract_strided_slice %330 {offsets = [24, 0], sizes = [4, 256], strides = [1, 1]} : vector<36x256xf32> to vector<4x256xf32>
    %c241_i32_263 = arith.constant 241 : i32
    %363 = tpu.dynamic_rotate %362 by %c241_i32_263 dim 1 : vector<4x256xf32>, i32 -> vector<4x256xf32>
    %c6_264 = arith.constant 6 : index
    %c0_265 = arith.constant 0 : index
    %c0_266 = arith.constant 0 : index
    %364 = vector.load %arg4[%c6_264, %c0_265, %c0_266] : memref<9x4x256xf32, #tpu.memory_space<vmem>>, vector<1x4x256xf32>
    %365 = vector.shape_cast %364 : vector<1x4x256xf32> to vector<4x256xf32>
    %366 = arith.mulf %363, %365 : vector<4x256xf32>
    %367 = arith.addf %361, %366 : vector<4x256xf32>
    %368 = vector.extract_strided_slice %330 {offsets = [28, 0], sizes = [4, 256], strides = [1, 1]} : vector<36x256xf32> to vector<4x256xf32>
    %c240_i32_267 = arith.constant 240 : i32
    %369 = tpu.dynamic_rotate %368 by %c240_i32_267 dim 1 : vector<4x256xf32>, i32 -> vector<4x256xf32>
    %c7_268 = arith.constant 7 : index
    %c0_269 = arith.constant 0 : index
    %c0_270 = arith.constant 0 : index
    %370 = vector.load %arg4[%c7_268, %c0_269, %c0_270] : memref<9x4x256xf32, #tpu.memory_space<vmem>>, vector<1x4x256xf32>
    %371 = vector.shape_cast %370 : vector<1x4x256xf32> to vector<4x256xf32>
    %372 = arith.mulf %369, %371 : vector<4x256xf32>
    %373 = arith.addf %367, %372 : vector<4x256xf32>
    %374 = vector.extract_strided_slice %330 {offsets = [32, 0], sizes = [4, 256], strides = [1, 1]} : vector<36x256xf32> to vector<4x256xf32>
    %c239_i32_271 = arith.constant 239 : i32
    %375 = tpu.dynamic_rotate %374 by %c239_i32_271 dim 1 : vector<4x256xf32>, i32 -> vector<4x256xf32>
    %c8_272 = arith.constant 8 : index
    %c0_273 = arith.constant 0 : index
    %c0_274 = arith.constant 0 : index
    %376 = vector.load %arg4[%c8_272, %c0_273, %c0_274] : memref<9x4x256xf32, #tpu.memory_space<vmem>>, vector<1x4x256xf32>
    %377 = vector.shape_cast %376 : vector<1x4x256xf32> to vector<4x256xf32>
    %378 = arith.mulf %375, %377 : vector<4x256xf32>
    %379 = arith.addf %373, %378 : vector<4x256xf32>
    %380 = arith.addf %261, %379 : vector<4x256xf32>
    %381 = arith.addf %380, %21 : vector<4x256xf32>
    %c3_i32 = arith.constant 3 : i32
    %c4_i32_275 = arith.constant 4 : i32
    %382 = arith.subi %c4_i32_275, %c3_i32 : i32
    %383 = arith.sitofp %382 : i32 to f32
    %cst_276 = arith.constant 2.500000e-01 : f32
    %384 = arith.mulf %383, %cst_276 : f32
    %cst_277 = arith.constant 2.500000e-01 : f32
    %385 = arith.subf %384, %cst_277 : f32
    %c17_i32_278 = arith.constant 17 : i32
    %386 = tpu.dynamic_rotate %381 by %c17_i32_278 dim 1 : vector<4x256xf32>, i32 -> vector<4x256xf32>
    %c0_279 = arith.constant 0 : index
    %c0_280 = arith.constant 0 : index
    %c0_281 = arith.constant 0 : index
    %387 = vector.load %arg4[%c0_279, %c0_280, %c0_281] : memref<9x4x256xf32, #tpu.memory_space<vmem>>, vector<1x4x256xf32>
    %388 = vector.shape_cast %387 : vector<1x4x256xf32> to vector<4x256xf32>
    %389 = arith.mulf %386, %388 : vector<4x256xf32>
    %c0_282 = arith.constant 0 : index
    %c0_283 = arith.constant 0 : index
    %390 = vector.load %arg11[%c0_282, %c0_283] : memref<36x256xf32, #tpu.memory_space<vmem>>, vector<4x256xf32>
    tpu.vector_store %arg11[%c0_282, %c0_283], %389 {strides = array<i32>} : memref<36x256xf32, #tpu.memory_space<vmem>>, vector<4x256xf32>,
    %c16_i32_284 = arith.constant 16 : i32
    %391 = tpu.dynamic_rotate %381 by %c16_i32_284 dim 1 : vector<4x256xf32>, i32 -> vector<4x256xf32>
    %c1_285 = arith.constant 1 : index
    %c0_286 = arith.constant 0 : index
    %c0_287 = arith.constant 0 : index
    %392 = vector.load %arg4[%c1_285, %c0_286, %c0_287] : memref<9x4x256xf32, #tpu.memory_space<vmem>>, vector<1x4x256xf32>
    %393 = vector.shape_cast %392 : vector<1x4x256xf32> to vector<4x256xf32>
    %394 = arith.mulf %391, %393 : vector<4x256xf32>
    %c4_288 = arith.constant 4 : index
    %c0_289 = arith.constant 0 : index
    %395 = vector.load %arg11[%c4_288, %c0_289] : memref<36x256xf32, #tpu.memory_space<vmem>>, vector<4x256xf32>
    tpu.vector_store %arg11[%c4_288, %c0_289], %394 {strides = array<i32>} : memref<36x256xf32, #tpu.memory_space<vmem>>, vector<4x256xf32>,
    %c15_i32_290 = arith.constant 15 : i32
    %396 = tpu.dynamic_rotate %381 by %c15_i32_290 dim 1 : vector<4x256xf32>, i32 -> vector<4x256xf32>
    %c2_291 = arith.constant 2 : index
    %c0_292 = arith.constant 0 : index
    %c0_293 = arith.constant 0 : index
    %397 = vector.load %arg4[%c2_291, %c0_292, %c0_293] : memref<9x4x256xf32, #tpu.memory_space<vmem>>, vector<1x4x256xf32>
    %398 = vector.shape_cast %397 : vector<1x4x256xf32> to vector<4x256xf32>
    %399 = arith.mulf %396, %398 : vector<4x256xf32>
    %c8_294 = arith.constant 8 : index
    %c0_295 = arith.constant 0 : index
    %400 = vector.load %arg11[%c8_294, %c0_295] : memref<36x256xf32, #tpu.memory_space<vmem>>, vector<4x256xf32>
    tpu.vector_store %arg11[%c8_294, %c0_295], %399 {strides = array<i32>} : memref<36x256xf32, #tpu.memory_space<vmem>>, vector<4x256xf32>,
    %c1_i32_296 = arith.constant 1 : i32
    %401 = tpu.dynamic_rotate %381 by %c1_i32_296 dim 1 : vector<4x256xf32>, i32 -> vector<4x256xf32>
    %c3_297 = arith.constant 3 : index
    %c0_298 = arith.constant 0 : index
    %c0_299 = arith.constant 0 : index
    %402 = vector.load %arg4[%c3_297, %c0_298, %c0_299] : memref<9x4x256xf32, #tpu.memory_space<vmem>>, vector<1x4x256xf32>
    %403 = vector.shape_cast %402 : vector<1x4x256xf32> to vector<4x256xf32>
    %404 = arith.mulf %401, %403 : vector<4x256xf32>
    %c12_300 = arith.constant 12 : index
    %c0_301 = arith.constant 0 : index
    %405 = vector.load %arg11[%c12_300, %c0_301] : memref<36x256xf32, #tpu.memory_space<vmem>>, vector<4x256xf32>
    tpu.vector_store %arg11[%c12_300, %c0_301], %404 {strides = array<i32>} : memref<36x256xf32, #tpu.memory_space<vmem>>, vector<4x256xf32>,
    %c16_302 = arith.constant 16 : index
    %c0_303 = arith.constant 0 : index
    %406 = vector.load %arg11[%c16_302, %c0_303] : memref<36x256xf32, #tpu.memory_space<vmem>>, vector<4x256xf32>
    tpu.vector_store %arg11[%c16_302, %c0_303], %381 {strides = array<i32>} : memref<36x256xf32, #tpu.memory_space<vmem>>, vector<4x256xf32>,
    %c255_i32_304 = arith.constant 255 : i32
    %407 = tpu.dynamic_rotate %381 by %c255_i32_304 dim 1 : vector<4x256xf32>, i32 -> vector<4x256xf32>
    %c5_305 = arith.constant 5 : index
    %c0_306 = arith.constant 0 : index
    %c0_307 = arith.constant 0 : index
    %408 = vector.load %arg4[%c5_305, %c0_306, %c0_307] : memref<9x4x256xf32, #tpu.memory_space<vmem>>, vector<1x4x256xf32>
    %409 = vector.shape_cast %408 : vector<1x4x256xf32> to vector<4x256xf32>
    %410 = arith.mulf %407, %409 : vector<4x256xf32>
    %c20_308 = arith.constant 20 : index
    %c0_309 = arith.constant 0 : index
    %411 = vector.load %arg11[%c20_308, %c0_309] : memref<36x256xf32, #tpu.memory_space<vmem>>, vector<4x256xf32>
    tpu.vector_store %arg11[%c20_308, %c0_309], %410 {strides = array<i32>} : memref<36x256xf32, #tpu.memory_space<vmem>>, vector<4x256xf32>,
    %c241_i32_310 = arith.constant 241 : i32
    %412 = tpu.dynamic_rotate %381 by %c241_i32_310 dim 1 : vector<4x256xf32>, i32 -> vector<4x256xf32>
    %c6_311 = arith.constant 6 : index
    %c0_312 = arith.constant 0 : index
    %c0_313 = arith.constant 0 : index
    %413 = vector.load %arg4[%c6_311, %c0_312, %c0_313] : memref<9x4x256xf32, #tpu.memory_space<vmem>>, vector<1x4x256xf32>
    %414 = vector.shape_cast %413 : vector<1x4x256xf32> to vector<4x256xf32>
    %415 = arith.mulf %412, %414 : vector<4x256xf32>
    %c24_314 = arith.constant 24 : index
    %c0_315 = arith.constant 0 : index
    %416 = vector.load %arg11[%c24_314, %c0_315] : memref<36x256xf32, #tpu.memory_space<vmem>>, vector<4x256xf32>
    tpu.vector_store %arg11[%c24_314, %c0_315], %415 {strides = array<i32>} : memref<36x256xf32, #tpu.memory_space<vmem>>, vector<4x256xf32>,
    %c240_i32_316 = arith.constant 240 : i32
    %417 = tpu.dynamic_rotate %381 by %c240_i32_316 dim 1 : vector<4x256xf32>, i32 -> vector<4x256xf32>
    %c7_317 = arith.constant 7 : index
    %c0_318 = arith.constant 0 : index
    %c0_319 = arith.constant 0 : index
    %418 = vector.load %arg4[%c7_317, %c0_318, %c0_319] : memref<9x4x256xf32, #tpu.memory_space<vmem>>, vector<1x4x256xf32>
    %419 = vector.shape_cast %418 : vector<1x4x256xf32> to vector<4x256xf32>
    %420 = arith.mulf %417, %419 : vector<4x256xf32>
    %c28_320 = arith.constant 28 : index
    %c0_321 = arith.constant 0 : index
    %421 = vector.load %arg11[%c28_320, %c0_321] : memref<36x256xf32, #tpu.memory_space<vmem>>, vector<4x256xf32>
    tpu.vector_store %arg11[%c28_320, %c0_321], %420 {strides = array<i32>} : memref<36x256xf32, #tpu.memory_space<vmem>>, vector<4x256xf32>,
    %c239_i32_322 = arith.constant 239 : i32
    %422 = tpu.dynamic_rotate %381 by %c239_i32_322 dim 1 : vector<4x256xf32>, i32 -> vector<4x256xf32>
    %c8_323 = arith.constant 8 : index
    %c0_324 = arith.constant 0 : index
    %c0_325 = arith.constant 0 : index
    %423 = vector.load %arg4[%c8_323, %c0_324, %c0_325] : memref<9x4x256xf32, #tpu.memory_space<vmem>>, vector<1x4x256xf32>
    %424 = vector.shape_cast %423 : vector<1x4x256xf32> to vector<4x256xf32>
    %425 = arith.mulf %422, %424 : vector<4x256xf32>
    %c32_326 = arith.constant 32 : index
    %c0_327 = arith.constant 0 : index
    %426 = vector.load %arg11[%c32_326, %c0_327] : memref<36x256xf32, #tpu.memory_space<vmem>>, vector<4x256xf32>
    tpu.vector_store %arg11[%c32_326, %c0_327], %425 {strides = array<i32>} : memref<36x256xf32, #tpu.memory_space<vmem>>, vector<4x256xf32>,
    %c0_328 = arith.constant 0 : index
    %c0_329 = arith.constant 0 : index
    %427 = vector.load %arg11[%c0_328, %c0_329] : memref<36x256xf32, #tpu.memory_space<vmem>>, vector<36x256xf32>
    %cst_330 = arith.constant dense<0.000000e+00> : vector<8x256xf32>
    %428 = tpu.matmul %13, %427, %cst_330 {dimension_numbers = #tpu.dot_dimension_numbers<[1], [0], [0], [1], [0, 0, 1, 1], [], []>} : vector<8x36xf32>, vector<36x256xf32>, vector<8x256xf32> -> vector<8x256xf32>
    %429 = vector.broadcast %15 : vector<8x1xf32> to vector<8x256xf32>
    %430 = arith.addf %428, %429 : vector<8x256xf32>
    %431 = vector.broadcast %384 : f32 to vector<8x1xf32>
    %432 = arith.mulf %431, %14 : vector<8x1xf32>
    %433 = vector.broadcast %432 : vector<8x1xf32> to vector<8x256xf32>
    %434 = arith.addf %430, %433 : vector<8x256xf32>
    %cst_331 = arith.constant 0.000000e+00 : f32
    %435 = vector.broadcast %cst_331 : f32 to vector<8x256xf32>
    %436 = arith.maximumf %434, %435 : vector<8x256xf32>
    %437 = vector.broadcast %385 : f32 to vector<8x1xf32>
    %438 = arith.mulf %437, %14 : vector<8x1xf32>
    %439 = vector.broadcast %438 : vector<8x1xf32> to vector<8x256xf32>
    %440 = arith.addf %430, %439 : vector<8x256xf32>
    %cst_332 = arith.constant 0.000000e+00 : f32
    %441 = vector.broadcast %cst_332 : f32 to vector<8x256xf32>
    %442 = arith.maximumf %440, %441 : vector<8x256xf32>
    %cst_333 = arith.constant 1.000000e+00 : f32
    %443 = arith.subf %cst_333, %385 : f32
    %444 = vector.broadcast %443 : f32 to vector<8x256xf32>
    %445 = arith.mulf %444, %442 : vector<8x256xf32>
    %cst_334 = arith.constant 1.000000e+00 : f32
    %446 = arith.subf %cst_334, %384 : f32
    %447 = vector.broadcast %446 : f32 to vector<8x256xf32>
    %448 = arith.mulf %447, %436 : vector<8x256xf32>
    %449 = arith.subf %445, %448 : vector<8x256xf32>
    %cst_335 = arith.constant dense<0.000000e+00> : vector<36x256xf32>
    %450 = tpu.matmul %16, %449, %cst_335 {dimension_numbers = #tpu.dot_dimension_numbers<[1], [0], [0], [1], [0, 0, 1, 1], [], []>} : vector<36x8xf32>, vector<8x256xf32>, vector<36x256xf32> -> vector<36x256xf32>
    %451 = vector.extract_strided_slice %450 {offsets = [16, 0], sizes = [4, 256], strides = [1, 1]} : vector<36x256xf32> to vector<4x256xf32>
    %452 = vector.extract_strided_slice %450 {offsets = [0, 0], sizes = [4, 256], strides = [1, 1]} : vector<36x256xf32> to vector<4x256xf32>
    %c17_i32_336 = arith.constant 17 : i32
    %453 = tpu.dynamic_rotate %452 by %c17_i32_336 dim 1 : vector<4x256xf32>, i32 -> vector<4x256xf32>
    %c0_337 = arith.constant 0 : index
    %c0_338 = arith.constant 0 : index
    %c0_339 = arith.constant 0 : index
    %454 = vector.load %arg4[%c0_337, %c0_338, %c0_339] : memref<9x4x256xf32, #tpu.memory_space<vmem>>, vector<1x4x256xf32>
    %455 = vector.shape_cast %454 : vector<1x4x256xf32> to vector<4x256xf32>
    %456 = arith.mulf %453, %455 : vector<4x256xf32>
    %457 = arith.addf %451, %456 : vector<4x256xf32>
    %458 = vector.extract_strided_slice %450 {offsets = [4, 0], sizes = [4, 256], strides = [1, 1]} : vector<36x256xf32> to vector<4x256xf32>
    %c16_i32_340 = arith.constant 16 : i32
    %459 = tpu.dynamic_rotate %458 by %c16_i32_340 dim 1 : vector<4x256xf32>, i32 -> vector<4x256xf32>
    %c1_341 = arith.constant 1 : index
    %c0_342 = arith.constant 0 : index
    %c0_343 = arith.constant 0 : index
    %460 = vector.load %arg4[%c1_341, %c0_342, %c0_343] : memref<9x4x256xf32, #tpu.memory_space<vmem>>, vector<1x4x256xf32>
    %461 = vector.shape_cast %460 : vector<1x4x256xf32> to vector<4x256xf32>
    %462 = arith.mulf %459, %461 : vector<4x256xf32>
    %463 = arith.addf %457, %462 : vector<4x256xf32>
    %464 = vector.extract_strided_slice %450 {offsets = [8, 0], sizes = [4, 256], strides = [1, 1]} : vector<36x256xf32> to vector<4x256xf32>
    %c15_i32_344 = arith.constant 15 : i32
    %465 = tpu.dynamic_rotate %464 by %c15_i32_344 dim 1 : vector<4x256xf32>, i32 -> vector<4x256xf32>
    %c2_345 = arith.constant 2 : index
    %c0_346 = arith.constant 0 : index
    %c0_347 = arith.constant 0 : index
    %466 = vector.load %arg4[%c2_345, %c0_346, %c0_347] : memref<9x4x256xf32, #tpu.memory_space<vmem>>, vector<1x4x256xf32>
    %467 = vector.shape_cast %466 : vector<1x4x256xf32> to vector<4x256xf32>
    %468 = arith.mulf %465, %467 : vector<4x256xf32>
    %469 = arith.addf %463, %468 : vector<4x256xf32>
    %470 = vector.extract_strided_slice %450 {offsets = [12, 0], sizes = [4, 256], strides = [1, 1]} : vector<36x256xf32> to vector<4x256xf32>
    %c1_i32_348 = arith.constant 1 : i32
    %471 = tpu.dynamic_rotate %470 by %c1_i32_348 dim 1 : vector<4x256xf32>, i32 -> vector<4x256xf32>
    %c3_349 = arith.constant 3 : index
    %c0_350 = arith.constant 0 : index
    %c0_351 = arith.constant 0 : index
    %472 = vector.load %arg4[%c3_349, %c0_350, %c0_351] : memref<9x4x256xf32, #tpu.memory_space<vmem>>, vector<1x4x256xf32>
    %473 = vector.shape_cast %472 : vector<1x4x256xf32> to vector<4x256xf32>
    %474 = arith.mulf %471, %473 : vector<4x256xf32>
    %475 = arith.addf %469, %474 : vector<4x256xf32>
    %476 = vector.extract_strided_slice %450 {offsets = [20, 0], sizes = [4, 256], strides = [1, 1]} : vector<36x256xf32> to vector<4x256xf32>
    %c255_i32_352 = arith.constant 255 : i32
    %477 = tpu.dynamic_rotate %476 by %c255_i32_352 dim 1 : vector<4x256xf32>, i32 -> vector<4x256xf32>
    %c5_353 = arith.constant 5 : index
    %c0_354 = arith.constant 0 : index
    %c0_355 = arith.constant 0 : index
    %478 = vector.load %arg4[%c5_353, %c0_354, %c0_355] : memref<9x4x256xf32, #tpu.memory_space<vmem>>, vector<1x4x256xf32>
    %479 = vector.shape_cast %478 : vector<1x4x256xf32> to vector<4x256xf32>
    %480 = arith.mulf %477, %479 : vector<4x256xf32>
    %481 = arith.addf %475, %480 : vector<4x256xf32>
    %482 = vector.extract_strided_slice %450 {offsets = [24, 0], sizes = [4, 256], strides = [1, 1]} : vector<36x256xf32> to vector<4x256xf32>
    %c241_i32_356 = arith.constant 241 : i32
    %483 = tpu.dynamic_rotate %482 by %c241_i32_356 dim 1 : vector<4x256xf32>, i32 -> vector<4x256xf32>
    %c6_357 = arith.constant 6 : index
    %c0_358 = arith.constant 0 : index
    %c0_359 = arith.constant 0 : index
    %484 = vector.load %arg4[%c6_357, %c0_358, %c0_359] : memref<9x4x256xf32, #tpu.memory_space<vmem>>, vector<1x4x256xf32>
    %485 = vector.shape_cast %484 : vector<1x4x256xf32> to vector<4x256xf32>
    %486 = arith.mulf %483, %485 : vector<4x256xf32>
    %487 = arith.addf %481, %486 : vector<4x256xf32>
    %488 = vector.extract_strided_slice %450 {offsets = [28, 0], sizes = [4, 256], strides = [1, 1]} : vector<36x256xf32> to vector<4x256xf32>
    %c240_i32_360 = arith.constant 240 : i32
    %489 = tpu.dynamic_rotate %488 by %c240_i32_360 dim 1 : vector<4x256xf32>, i32 -> vector<4x256xf32>
    %c7_361 = arith.constant 7 : index
    %c0_362 = arith.constant 0 : index
    %c0_363 = arith.constant 0 : index
    %490 = vector.load %arg4[%c7_361, %c0_362, %c0_363] : memref<9x4x256xf32, #tpu.memory_space<vmem>>, vector<1x4x256xf32>
    %491 = vector.shape_cast %490 : vector<1x4x256xf32> to vector<4x256xf32>
    %492 = arith.mulf %489, %491 : vector<4x256xf32>
    %493 = arith.addf %487, %492 : vector<4x256xf32>
    %494 = vector.extract_strided_slice %450 {offsets = [32, 0], sizes = [4, 256], strides = [1, 1]} : vector<36x256xf32> to vector<4x256xf32>
    %c239_i32_364 = arith.constant 239 : i32
    %495 = tpu.dynamic_rotate %494 by %c239_i32_364 dim 1 : vector<4x256xf32>, i32 -> vector<4x256xf32>
    %c8_365 = arith.constant 8 : index
    %c0_366 = arith.constant 0 : index
    %c0_367 = arith.constant 0 : index
    %496 = vector.load %arg4[%c8_365, %c0_366, %c0_367] : memref<9x4x256xf32, #tpu.memory_space<vmem>>, vector<1x4x256xf32>
    %497 = vector.shape_cast %496 : vector<1x4x256xf32> to vector<4x256xf32>
    %498 = arith.mulf %495, %497 : vector<4x256xf32>
    %499 = arith.addf %493, %498 : vector<4x256xf32>
    %500 = arith.addf %381, %499 : vector<4x256xf32>
    %501 = arith.addf %500, %21 : vector<4x256xf32>
    %c4_i32_368 = arith.constant 4 : i32
    %c0_369 = arith.constant 0 : index
    %c0_370 = arith.constant 0 : index
    %c0_371 = arith.constant 0 : index
    %502 = vector.load %arg10[%c0_369, %c0_370, %c0_371] : memref<1x4x256xf32, #tpu.memory_space<vmem>>, vector<1x4x256xf32>
    %503 = vector.shape_cast %502 : vector<1x4x256xf32> to vector<4x256xf32>
    %504 = vector.shape_cast %501 : vector<4x256xf32> to vector<1x4x256xf32>
    tpu.vector_store %arg10[%c0_369, %c0_370, %c0_371], %504 {strides = array<i32>} : memref<1x4x256xf32, #tpu.memory_space<vmem>>, vector<1x4x256xf32>,
    return
  }
  func.func @transform_0(%arg0: i32, %arg1: memref<1xi32, #tpu.memory_space<smem>>) -> (i32, i32, i32) {
    %c0_i32 = arith.constant 0 : i32
    %c0_i32_0 = arith.constant 0 : i32
    %c0_i32_1 = arith.constant 0 : i32
    return %arg0, %c0_i32, %c0_i32_0 : i32, i32, i32
  }
  func.func @transform_1(%arg0: i32, %arg1: memref<1xi32, #tpu.memory_space<smem>>) -> (i32, i32, i32) {
    %c0_i32 = arith.constant 0 : i32
    %c0_i32_0 = arith.constant 0 : i32
    %c0_i32_1 = arith.constant 0 : i32
    return %arg0, %c0_i32, %c0_i32_0 : i32, i32, i32
  }
  func.func @transform_2(%arg0: i32, %arg1: memref<1xi32, #tpu.memory_space<smem>>) -> (i32, i32, i32) {
    %c0_i32 = arith.constant 0 : i32
    %c0_i32_0 = arith.constant 0 : i32
    %c0_i32_1 = arith.constant 0 : i32
    %c0_i32_2 = arith.constant 0 : i32
    return %c0_i32, %c0_i32_0, %c0_i32_1 : i32, i32, i32
  }
  func.func @transform_3(%arg0: i32, %arg1: memref<1xi32, #tpu.memory_space<smem>>) -> (i32, i32) {
    %c0_i32 = arith.constant 0 : i32
    %c0_i32_0 = arith.constant 0 : i32
    %c0_i32_1 = arith.constant 0 : i32
    return %c0_i32, %c0_i32_0 : i32, i32
  }
  func.func @transform_4(%arg0: i32, %arg1: memref<1xi32, #tpu.memory_space<smem>>) -> (i32, i32) {
    %c0_i32 = arith.constant 0 : i32
    %c0_i32_0 = arith.constant 0 : i32
    %c0_i32_1 = arith.constant 0 : i32
    return %c0_i32, %c0_i32_0 : i32, i32
  }
  func.func @transform_5(%arg0: i32, %arg1: memref<1xi32, #tpu.memory_space<smem>>) -> (i32, i32) {
    %c0_i32 = arith.constant 0 : i32
    %c0_i32_0 = arith.constant 0 : i32
    %c0_i32_1 = arith.constant 0 : i32
    return %c0_i32, %c0_i32_0 : i32, i32
  }
  func.func @transform_6(%arg0: i32, %arg1: memref<1xi32, #tpu.memory_space<smem>>) -> (i32, i32) {
    %c0_i32 = arith.constant 0 : i32
    %c0_i32_0 = arith.constant 0 : i32
    %c0_i32_1 = arith.constant 0 : i32
    return %c0_i32, %c0_i32_0 : i32, i32
  }
  func.func @transform_7(%arg0: i32, %arg1: memref<1xi32, #tpu.memory_space<smem>>) -> (i32, i32) {
    %c0_i32 = arith.constant 0 : i32
    %c0_i32_0 = arith.constant 0 : i32
    %c0_i32_1 = arith.constant 0 : i32
    return %c0_i32, %c0_i32_0 : i32, i32
  }
  func.func @transform_8(%arg0: i32, %arg1: memref<1xi32, #tpu.memory_space<smem>>) -> (i32, i32, i32) {
    %c0_i32 = arith.constant 0 : i32
    %c0_i32_0 = arith.constant 0 : i32
    %c0_i32_1 = arith.constant 0 : i32
    return %arg0, %c0_i32, %c0_i32_0 : i32, i32, i32
  }
}

</mosaic_0001>

<bundles_post_ra>
// kernel: diffusion_forward.1
= control target key start
LH: loop header
LB: loop body
LE: loop exit
PB: predicated region body
PF: predicated region fallthrough
CT: control target
= control target key end

     0   :  { %s2625_s11 = smov 0   ;;  %s3587_s0 = inlined_call_operand.<no memory space> [shape: s32[1], index: 0, kind: input, shape index: {}]   ;;  %s3588_s1 = inlined_call_operand.vmem [shape: f32[2,4,256], index: 1, kind: input, shape index: {}]   ;;  %s3589_s2 = inlined_call_operand.vmem [shape: f32[2,4,256], index: 2, kind: input, shape index: {}]   ;;  %s3590_s3 = inlined_call_operand.vmem [shape: f32[9,4,256], index: 3, kind: input, shape index: {}]   ;;  %s3591_s4 = inlined_call_operand.vmem [shape: f32[8,36], index: 4, kind: input, shape index: {}]   ;;  %s3592_s5 = inlined_call_operand.vmem [shape: f32[8,1], index: 5, kind: input, shape index: {}]   ;;  %s3593_s6 = inlined_call_operand.vmem [shape: f32[8,1], index: 6, kind: input, shape index: {}]   ;;  %s3594_s7 = inlined_call_operand.vmem [shape: f32[36,8], index: 7, kind: input, shape index: {}]   ;;  %s3595_s8 = inlined_call_operand.vmem [shape: f32[4,1], index: 8, kind: input, shape index: {}]   ;;  %s3596_s9 = inlined_call_operand.vmem [shape: f32[2,4,256], index: 9, kind: output, shape index: {}]  }
   0x1   :  { %14 = sst [smem:[#allocation4]] %s3587_s0 }
   0x2 LB: > { %s2403_s12 = sadd.s32 4294967295, %s2560_s11   ;;  %p2407_p0 = scmp.ge.s32.totalorder %s2560_s11, 1  ;;  %s2560_s11 = sphi %s2625_s11, %s20_s11  }
   0x3   : > { %p274_p1 = scmp.lt.s32.totalorder %s2560_s11, 3 }
   0x5   : > { %p275_p2 = pnand %p2407_p0, %p274_p1 }
   0x6   : > { %p313_p3 = scmp.lt.s32.totalorder (!%p275_p2), %s2403_s12, 1  ;;  %s328_s13 = sld [smem:[#allocation4]] (!%p275_p2) }
   0x7   : > { %278 = sbr.rel (%p275_p2) target bundleno = 2879 (0xb3f), region = 52  ;;  %s2562_s23 = smov (!%p275_p2), 111  }
   0x8   : > { %s2563_s24 = smov (!%p275_p2), 112   ;;  %s2564_s25 = smov (!%p275_p2), 127  }
   0x9   : > { %s2565_s26 = smov (!%p275_p2), 113   ;;  %s2566_s27 = smov (!%p275_p2), 1  }
   0xa   : > { %s2567_s28 = smov (!%p275_p2), 16   ;;  %s2568_s29 = smov (!%p275_p2), 15  }
   0xb   : > { %s2570_s30 = smov (!%p275_p2), 17  }
   0xc   : > { %s3598_s12 = smov (!%p313_p3, %s2403_s12), 1  ;;  %s329_s17 = scvt.s32.f32 %s328_s13  ;;  %v2569_v8 = vmov 0.0   ;;  %v2571_v9 = vmov 0   ;;  %v2688_v10 = vld [vmem:[%s3592_s5] sm:$0xff]  ;;  %v364_v14 = vlaneseq  ;;  %v2713_v20 = vld [vmem:[%s3590_s3 + $0x28] sm:$0xff]  ;;  %v2729_v28 = vld [vmem:[%s3590_s3 + $0x30] sm:$0xff] }
   0xd   : > { %s2633_s14 = sshll.u32 %s3598_s12, 3  ;;  %605 = vmatprep.mubr.f32.mxu0 %v2569_v8  ;;  %717 = vmatprep.mubr.f32.mxu1 %v2569_v8  ;;  %v341_v11 = vld [vmem:[%s3593_s6] sm:$0xff]  ;;  %v621_v12 = vmul.f32 0.75, %v2688_v10  ;;  %v2724_v27 = vcombine.high %v2713_v20, %v2713_v20  ;;  %v2740_v35 = vcombine.high %v2729_v28, %v2729_v28  ;;  %v2745_v36 = vld [vmem:[%s3590_s3 + $0x18] sm:$0xff]  ;;  %vm534_vm3 = vcmask 1043456   ;;  %v2764_v45 = vld [vmem:[%s3590_s3 + $0x8] sm:$0xff] }
   0xe   : > { %s322_s16 = scalar_lea.vmem %s3589_s2, %s2633_s14  ;;  %s317_s20 = scalar_lea.vmem %s3588_s1, %s2633_s14  ;;  %2528 = vset.pattern.permute.xlu1 %v2571_v9  ;;  %2527 = vset.pattern.permute.xlu0 %v2571_v9  ;;  %v347_v13 = vld [vmem:[%s3595_s8] sm:$0xf]  ;;  %v2698_v15 = vand.u32 127, %v364_v14  ;;  %v2750_v37 = vld [vmem:[%s3590_s3 + $0x38] sm:$0xff]  ;;  %v2759_v44 = vcombine.high %v2745_v36, %v2745_v36  ;;  %v2777_v53 = vcombine.high %v2764_v45, %v2764_v45  ;;  %v2795_v62 = vld [vmem:[%s3590_s3 + $0x10] sm:$0xff]  ;;  %vm530_vm9 = vcmask 293888  }
   0xf   : > { %s330_s21 = smul.f32 0.25, %s329_s17  ;;  %v331_v0 = vld [vmem:[%s322_s16] sm:$0xff]  ;;  %v2771_v48 = vcombine.high %v2750_v37, %v2750_v37  ;;  %vm637_vm10 = vcmask 64512  }
  0x10   : > { %v335_v2 = vld [vmem:[%s317_s20] sm:$0xff]  ;;  %vm503_vm0 = vcmp.lt.s32.totalorder %v2698_v15, 111  ;;  %vm443_vm1 = vcmp.lt.s32.totalorder %v2698_v15, 127  ;;  %vm465_vm2 = vcmp.lt.s32.totalorder %v2698_v15, 113  ;;  %vm419_vm4 = vcmp.lt.s32.totalorder %v2698_v15, 1 }
  0x11   : > { %v332_v1 = vstv %s330_s21  ;;  %s334_s22 = ssub.f32 1.0, %s330_s21  ;;  %v2703_v16 = vld [vmem:[%s3590_s3 + $0x40] sm:$0xff]  ;;  %vm481_vm5 = vcmp.lt.s32.totalorder %v2698_v15, 112  ;;  %vm381_vm6 = vcmp.lt.s32.totalorder %v2698_v15, 16  ;;  %vm403_vm7 = vcmp.lt.s32.totalorder %v2698_v15, 15 }
  0x12   : > { %v333_v3 = vmul.f32 %v332_v1, %v331_v0  ;;  %v2708_v19 = vcombine.high %v2703_v16, %v2703_v16  ;;  %v2811_v14 = vld [vmem:[%s3590_s3] sm:$0xff]  ;;  %vm366_vm8 = vcmp.lt.s32.totalorder %v2698_v15, 17 }
  0x13   : > { %v336_v4 = vstv %s334_s22 }
  0x14   : > { %v337_v5 = vmul.f32 %v336_v4, %v335_v2 }
  0x16   : > { %v2643_v6 = vadd.f32 %v337_v5, %v333_v3 }
  0x18   : > { %499 = vrot.lane.b32.xlu1 %v2643_v6, %s2562_s23  ;;  %437 = vst [vmem:[#allocation2 + $0x48] sm:$0xf] %v2643_v6  ;;  %477 = vrot.lane.b32.xlu0 %v2643_v6, %s2563_s24  ;;  %v2652_v7 = vcombine.high %v2643_v6, %v2643_v6 }
  0x1a   : > { %438 = vst [vmem:[#allocation2 + $0x28] sm:$0xf] %v2652_v7 }
  0x1c   : > { %439 = vrot.lane.b32.xlu0 %v2643_v6, %s2564_s25  ;;  %501 = vrot.lane.b32.xlu1 %v2652_v7, %s2562_s23 }
  0x20   : > { %461 = vrot.lane.b32.xlu0 %v2643_v6, %s2565_s26  ;;  %441 = vrot.lane.b32.xlu1 %v2652_v7, %s2564_s25 }
  0x24   : > { %415 = vrot.lane.b32.xlu0 %v2643_v6, %s2566_s27  ;;  %463 = vrot.lane.b32.xlu1 %v2652_v7, %s2565_s26 }
  0x28   : > { %417 = vrot.lane.b32.xlu1 %v2652_v7, %s2566_s27  ;;  %479 = vrot.lane.b32.xlu0 %v2652_v7, %s2563_s24 }
  0x2c   : > { %379 = vrot.lane.b32.xlu1 %v2652_v7, %s2567_s28  ;;  %377 = vrot.lane.b32.xlu0 %v2643_v6, %s2567_s28 }
  0x30   : > { %401 = vrot.lane.b32.xlu1 %v2652_v7, %s2568_s29  ;;  %399 = vrot.lane.b32.xlu0 %v2643_v6, %s2568_s29 }
  0x34   : > { %362 = vrot.lane.b32.xlu1 %v2652_v7, %s2570_s30  ;;  %360 = vrot.lane.b32.xlu0 %v2643_v6, %s2570_s30 }
  0x38   : > { %614 = vperm.xlu1 %2528, %v2688_v10   ;;  %527 = vperm.xlu0 %2527, %v341_v11  }
  0x3c   : > { %624 = vperm.xlu1 %2528, %v621_v12   ;;  %350 = vperm.xlu0 %2527, %v347_v13   ;;  %v2806_v13 = vcombine.high %v2795_v62, %v2795_v62 }
  0x8a   : > { %v500_v17 = vpop.permute.xlu1 %499  ;;  %v478_v18 = vpop.permute.xlu0 %477 }
  0x8e   : > { %v440_v21 = vpop.permute.xlu0 %439  ;;  %v502_v22 = vpop.permute.xlu1 %501 }
  0x8f   : > { %v504_v23 = vsel %vm503_vm0, %v500_v17, %v502_v22  ;;  %v505_v24 = vsel %vm503_vm0, %v502_v22, %v500_v17 }
  0x90   : > { %v511_v25 = vmul.f32 %v2703_v16, %v504_v23  ;;  %v512_v26 = vmul.f32 %v2708_v19, %v505_v24 }
  0x92   : > { %513 = vst [vmem:[#allocation2 + $0x40] sm:$0xf] %v511_v25  ;;  %514 = vst [vmem:[#allocation2 + $0x38] sm:$0xf] %v512_v26  ;;  %v462_v29 = vpop.permute.xlu0 %461  ;;  %v442_v30 = vpop.permute.xlu1 %441 }
  0x93   : > { %v444_v31 = vsel %vm443_vm1, %v440_v21, %v442_v30  ;;  %v445_v32 = vsel %vm443_vm1, %v442_v30, %v440_v21 }
  0x94   : > { %v451_v33 = vmul.f32 %v2713_v20, %v444_v31  ;;  %v452_v34 = vmul.f32 %v2724_v27, %v445_v32 }
  0x96   : > { %v455_v38 = vrot.slane %v451_v33, 4  ;;  %v456_v39 = vrot.slane %v452_v34, 4  ;;  %v416_v40 = vpop.permute.xlu0 %415  ;;  %v464_v41 = vpop.permute.xlu1 %463 }
  0x97   : > { %v466_v42 = vsel %vm465_vm2, %v462_v29, %v464_v41  ;;  %v467_v43 = vsel %vm465_vm2, %v464_v41, %v462_v29  ;;  %v2822_v29 = vcombine.high %v2811_v14, %v2811_v14 }
  0x98   : > { %459 = vst [vmem:[#allocation2 + $0x48] sm:$0xf0] %v455_v38  ;;  %460 = vst [vmem:[#allocation2 + $0x28] sm:$0xf0] %v456_v39  ;;  %v473_v46 = vmul.f32 %v2729_v28, %v466_v42  ;;  %v474_v47 = vmul.f32 %v2740_v35, %v467_v43 }
  0x99   : > { %v524_v49 = vld [vmem:[#allocation2 + $0x38] sm:$0xf]  ;;  %v523_v50 = vld [vmem:[#allocation2 + $0x40] sm:$0xf] }
  0x9a   : > { %475 = vst [vmem:[#allocation2 + $0x8] sm:$0xf] %v473_v46  ;;  %476 = vst [vmem:[#allocation2 + $0x20] sm:$0xf] %v474_v47  ;;  %2421 = vmatprep.subr.msk.mxu0 %vm534_vm3, %v524_v49  ;;  %v418_v51 = vpop.permute.xlu1 %417  ;;  %v480_v52 = vpop.permute.xlu0 %479 }
  0x9b   : > { %v420_v54 = vsel %vm419_vm4, %v416_v40, %v418_v51  ;;  %v421_v55 = vsel %vm419_vm4, %v418_v51, %v416_v40  ;;  %v482_v56 = vsel %vm481_vm5, %v478_v18, %v480_v52  ;;  %v483_v57 = vsel %vm481_vm5, %v480_v52, %v478_v18  ;;  %2422 = vmatpush1.msk.msra.mxu0 %vm534_vm3, %v523_v50  ;;  %v2833_v50 = vld [vmem:[%s3591_s4] sm:$0xff] }
  0x9c   : > { %v427_v58 = vmul.f32 %v2745_v36, %v421_v55  ;;  %v428_v59 = vmul.f32 %v2759_v44, %v420_v54  ;;  %v489_v60 = vmul.f32 %v2750_v37, %v482_v56  ;;  %v490_v61 = vmul.f32 %v2771_v48, %v483_v57 }
  0x9e   : > { %v431_v63 = vrot.slane %v427_v58, 4  ;;  %v432_v0 = vrot.slane %v428_v59, 4  ;;  %v493_v1 = vrot.slane %v489_v60, 4  ;;  %v494_v2 = vrot.slane %v490_v61, 4  ;;  %v380_v3 = vpop.permute.xlu1 %379  ;;  %v378_v4 = vpop.permute.xlu0 %377 }
  0x9f   : > { %v382_v5 = vsel %vm381_vm6, %v378_v4, %v380_v3  ;;  %v383_v9 = vsel %vm381_vm6, %v380_v3, %v378_v4  ;;  %v520_v41 = vld [vmem:[#allocation2 + $0x28] sm:$0xff] }
  0xa0   : > { %435 = vst [vmem:[#allocation2 + $0x18] sm:$0xf0] %v431_v63  ;;  %436 = vst [vmem:[#allocation2 + $0x10] sm:$0xf0] %v432_v0  ;;  %v389_v11 = vmul.f32 %v2764_v45, %v383_v9  ;;  %v390_v12 = vmul.f32 %v2777_v53, %v382_v5  ;;  %v519_v42 = vld [vmem:[#allocation2 + $0x48] sm:$0xff] }
  0xa1   : > { %497 = vst [vmem:[#allocation2 + $0x8] sm:$0xf0] %v493_v1  ;;  %498 = vst [vmem:[#allocation2 + $0x20] sm:$0xf0] %v494_v2 }
  0xa2   : > { %v393_v17 = vrot.slane %v389_v11, 4  ;;  %v394_v18 = vrot.slane %v390_v12, 4  ;;  %v402_v21 = vpop.permute.xlu1 %401  ;;  %v400_v22 = vpop.permute.xlu0 %399 }
  0xa3   : > { %v404_v23 = vsel %vm403_vm7, %v400_v22, %v402_v21  ;;  %v405_v24 = vsel %vm403_vm7, %v402_v21, %v400_v22  ;;  %v2857_v21 = vld [vmem:[%s3594_s7 + $0x8] sm:$0xff]  ;;  %v2865_v22 = vld [vmem:[%s3594_s7 + $0x10] sm:$0xff] }
  0xa4   : > { %397 = vst [vmem:[#allocation2 + $0x30] sm:$0xf0] %v393_v17  ;;  %398 = vst [vmem:[#allocation2] sm:$0xf0] %v394_v18  ;;  %v411_v25 = vmul.f32 %v2795_v62, %v405_v24  ;;  %v412_v26 = vmul.f32 %v2806_v13, %v404_v23  ;;  %v2849_v18 = vld [vmem:[%s3594_s7] sm:$0xff]  ;;  %v2873_v23 = vld [vmem:[%s3594_s7 + $0x18] sm:$0xff] }
  0xa5   : > { %v2881_v24 = vld [vmem:[%s3594_s7 + $0x20] sm:$0xf] }
  0xa6   : > { %413 = vst [vmem:[#allocation2 + $0x18] sm:$0xf] %v411_v25  ;;  %414 = vst [vmem:[#allocation2 + $0x10] sm:$0xf] %v412_v26  ;;  %v363_v30 = vpop.permute.xlu1 %362  ;;  %v361_v31 = vpop.permute.xlu0 %360 }
  0xa7   : > { %v367_v32 = vsel %vm366_vm8, %v361_v31, %v363_v30  ;;  %v368_v33 = vsel %vm366_vm8, %v363_v30, %v361_v31 }
  0xa8   : > { %v522_v34 = vld [vmem:[#allocation2 + $0x20] sm:$0xff]  ;;  %v521_v38 = vld [vmem:[#allocation2 + $0x8] sm:$0xff]  ;;  %v373_v39 = vmul.f32 %v2811_v14, %v368_v33  ;;  %v374_v40 = vmul.f32 %v2822_v29, %v367_v32 }
  0xa9   : > { %565 = vmatprep.subr.mxu0 %v522_v34 }
  0xaa   : > { %566 = vmatpush1.msra.mxu0 %v521_v38  ;;  %375 = vst [vmem:[#allocation2 + $0x30] sm:$0xf] %v373_v39  ;;  %376 = vst [vmem:[#allocation2] sm:$0xf] %v374_v40 }
  0xab   : > { %567 = vmatprep.subr.mxu0 %v520_v41 }
  0xac   : > { %568 = vmatpush1.msra.mxu0 %v519_v42 }
  0xad   : > { %v518_v43 = vld [vmem:[#allocation2 + $0x10] sm:$0xff]  ;;  %v517_v46 = vld [vmem:[#allocation2 + $0x18] sm:$0xff] }
  0xae   : > { %569 = vmatprep.subr.mxu0 %v518_v43 }
  0xaf   : > { %570 = vmatpush1.msra.mxu0 %v517_v46 }
  0xb1   : > { %v516_v47 = vld [vmem:[#allocation2] sm:$0xff]  ;;  %v515_v49 = vld [vmem:[#allocation2 + $0x30] sm:$0xff] }
  0xb2   : > { %571 = vmatprep.subr.mxu0 %v516_v47 }
  0xb3   : > { %572 = vmatpush1.msra.mxu0 %v515_v49  ;;  %v615_v51 = vpop.permute.xlu1 %614  ;;  %v2838_v52 = vpop.permute.xlu0 %527 }
  0xb4   : > { %2423 = vmatmul.mubr.msk.f32.vlgmr.msra.gmra.mxu0 %vm530_vm9, %v2833_v50 }
  0xb5   : > { %1111 = vmatprep.mubr.f32.mxu0 %v2569_v8 }
  0xb7   : > { %v2841_v56 = vpop.permute.xlu1 %624 }
 0x174   : > { %v607_v54 = vpop.f32.mrf.mxu0 }
 0x175   : > { %v608_v55 = vadd.f32 %v607_v54, %v2838_v52 }
 0x176   : > { %v609_v57 = vpop.f32.mrf.mxu0 }
 0x177   : > { %v617_v58 = vadd.f32 %v615_v51, %v608_v55  ;;  %v627_v59 = vadd.f32 %v2841_v56, %v608_v55  ;;  %v610_v60 = vadd.f32 %v609_v57, %v2838_v52  ;;  %v2902_v55 = vpop.permute.xlu0 %350 }
 0x179   : > { %v619_v61 = vmax.f32 %v617_v58, 0.0  ;;  %v629_v63 = vmax.f32 %v627_v59, 0.0  ;;  %v618_v0 = vadd.f32 %v615_v51, %v610_v60  ;;  %v628_v1 = vadd.f32 %v2841_v56, %v610_v60 }
 0x17b   : > { %v620_v2 = vmax.f32 %v618_v0, 0.0  ;;  %v630_v3 = vmax.f32 %v628_v1, 0.0  ;;  %v631_v4 = vmul.f32 0.25, %v629_v63  ;;  %v633_v5 = vmul.f32 0.0, %v619_v61 }
 0x17d   : > { %v632_v9 = vmul.f32 0.25, %v630_v3  ;;  %v634_v11 = vmul.f32 0.0, %v620_v2  ;;  %v635_v17 = vsub.f32 %v631_v4, %v633_v5 }
 0x17f   : > { %v636_v12 = vsub.f32 %v632_v9, %v634_v11 }
 0x181   : > { %683 = vmatprep.subr.mxu1 %v636_v12 }
 0x182   : > { %684 = vmatpush1.msra.mxu1 %v635_v17 }
 0x183   : > { %2424 = vmatmul.mubr.msk.f32.vlgmr.msra.gmra.mxu1 %vm637_vm10, %v2849_v18 }
 0x184   : > { %723 = vmatprep.mubr.f32.mxu1 %v2569_v8 }
 0x187   : > { %2425 = vmatmul.mubr.msk.f32.gmra.mxu1 %vm637_vm10, %v2857_v21 }
 0x188   : > { %729 = vmatprep.mubr.f32.mxu1 %v2569_v8 }
 0x18b   : > { %2426 = vmatmul.mubr.msk.f32.gmra.mxu1 %vm637_vm10, %v2865_v22 }
 0x18c   : > { %735 = vmatprep.mubr.f32.mxu1 %v2569_v8 }
 0x18f   : > { %2427 = vmatmul.mubr.msk.f32.gmra.mxu1 %vm637_vm10, %v2873_v23 }
 0x190   : > { %741 = vmatprep.mubr.f32.mxu1 %v2569_v8 }
 0x193   : > { %2428 = vmatmul.mubr.msk.f32.gmra.mxu1 %vm637_vm10, %v2881_v24 }
 0x194   : > { %1214 = vmatprep.mubr.f32.mxu1 %v2569_v8 }
 0x243   : > { %v719_v25 = vpop.f32.mrf.mxu1 }
 0x244   : > { %748 = vrot.lane.b32.xlu0 %v719_v25, %s2570_s30  ;;  %v764_v30 = vrot.slane %v719_v25, 4 }
 0x245   : > { %v721_v26 = vpop.f32.mrf.mxu1 }
 0x246   : > { %750 = vrot.lane.b32.xlu1 %v721_v26, %s2570_s30  ;;  %v765_v32 = vrot.slane %v721_v26, 4 }
 0x247   : > { %v725_v31 = vpop.f32.mrf.mxu1 }
 0x248   : > { %768 = vrot.lane.b32.xlu0 %v764_v30, %s2567_s28  ;;  %v798_v38 = vrot.slane %v725_v31, 4 }
 0x249   : > { %v727_v33 = vpop.f32.mrf.mxu1 }
 0x24a   : > { %770 = vrot.lane.b32.xlu1 %v765_v32, %s2567_s28  ;;  %v799_v39 = vrot.slane %v727_v33, 4 }
 0x24b   : > { %v731_v34 = vpop.f32.mrf.mxu1 }
 0x24c   : > { %782 = vrot.lane.b32.xlu0 %v725_v31, %s2568_s29  ;;  %v818_v40 = vrot.slane %v731_v34, 4 }
 0x24d   : > { %v733_v41 = vpop.f32.mrf.mxu1 }
 0x24e   : > { %784 = vrot.lane.b32.xlu1 %v727_v33, %s2568_s29  ;;  %v819_v43 = vrot.slane %v733_v41, 4 }
 0x24f   : > { %v737_v42 = vpop.f32.mrf.mxu1 }
 0x250   : > { %802 = vrot.lane.b32.xlu0 %v798_v38, %s2566_s27  ;;  %v852_v51 = vrot.slane %v737_v42, 4 }
 0x251   : > { %v739_v46 = vpop.f32.mrf.mxu1 }
 0x252   : > { %804 = vrot.lane.b32.xlu1 %v799_v39, %s2566_s27  ;;  %v853_v49 = vrot.slane %v739_v46, 4 }
 0x253   : > { %v743_v47 = vpop.f32.mrf.mxu1 }
 0x254   : > { %822 = vrot.lane.b32.xlu0 %v818_v40, %s2564_s25 }
 0x255   : > { %v745_v54 = vpop.f32.mrf.mxu1 }
 0x256   : > { %824 = vrot.lane.b32.xlu1 %v819_v43, %s2564_s25 }
 0x258   : > { %836 = vrot.lane.b32.xlu0 %v737_v42, %s2565_s26 }
 0x25a   : > { %838 = vrot.lane.b32.xlu1 %v739_v46, %s2565_s26 }
 0x25c   : > { %858 = vrot.lane.b32.xlu0 %v853_v49, %s2563_s24 }
 0x25e   : > { %856 = vrot.lane.b32.xlu1 %v852_v51, %s2563_s24 }
 0x260   : > { %872 = vrot.lane.b32.xlu0 %v745_v54, %s2562_s23 }
 0x262   : > { %870 = vrot.lane.b32.xlu1 %v743_v47, %s2562_s23 }
 0x2b6   : > { %v749_v57 = vpop.permute.xlu0 %748 }
 0x2b8   : > { %v751_v58 = vpop.permute.xlu1 %750 }
 0x2b9   : > { %v752_v1 = vsel %vm366_vm8, %v749_v57, %v751_v58  ;;  %v753_v2 = vsel %vm366_vm8, %v751_v58, %v749_v57 }
 0x2ba   : > { %v769_v59 = vpop.permute.xlu0 %768  ;;  %v758_v9 = vmul.f32 %v753_v2, %v2811_v14  ;;  %v759_v11 = vmul.f32 %v752_v1, %v2822_v29 }
 0x2bc   : > { %v771_v60 = vpop.permute.xlu1 %770  ;;  %v760_v38 = vadd.f32 %v758_v9, %v731_v34  ;;  %v761_v39 = vadd.f32 %v759_v11, %v733_v41 }
 0x2bd   : > { %v772_v4 = vsel %vm381_vm6, %v769_v59, %v771_v60  ;;  %v773_v5 = vsel %vm381_vm6, %v771_v60, %v769_v59 }
 0x2be   : > { %v783_v61 = vpop.permute.xlu0 %782  ;;  %v778_v26 = vmul.f32 %v2764_v45, %v773_v5  ;;  %v779_v30 = vmul.f32 %v772_v4, %v2777_v53 }
 0x2c0   : > { %v785_v63 = vpop.permute.xlu1 %784  ;;  %v780_v49 = vadd.f32 %v778_v26, %v760_v38  ;;  %v781_v51 = vadd.f32 %v779_v30, %v761_v39  ;;  %v356_v30 = vsub.f32 %v2902_v55, %v2643_v6 }
 0x2c1   : > { %v786_v17 = vsel %vm403_vm7, %v783_v61, %v785_v63  ;;  %v787_v25 = vsel %vm403_vm7, %v785_v63, %v783_v61 }
 0x2c2   : > { %v803_v0 = vpop.permute.xlu0 %802  ;;  %v792_v40 = vmul.f32 %v2795_v62, %v787_v25  ;;  %v793_v42 = vmul.f32 %v786_v17, %v2806_v13 }
 0x2c4   : > { %v805_v3 = vpop.permute.xlu1 %804  ;;  %v794_v59 = vadd.f32 %v792_v40, %v780_v49  ;;  %v795_v60 = vadd.f32 %v793_v42, %v781_v51  ;;  %v358_v51 = vmul.f32 0.25, %v356_v30 }
 0x2c5   : > { %v806_v32 = vsel %vm419_vm4, %v803_v0, %v805_v3  ;;  %v807_v33 = vsel %vm419_vm4, %v805_v3, %v803_v0 }
 0x2c6   : > { %v823_v12 = vpop.permute.xlu0 %822  ;;  %v812_v54 = vmul.f32 %v2745_v36, %v807_v33  ;;  %v813_v57 = vmul.f32 %v806_v32, %v2759_v44 }
 0x2c8   : > { %v825_v31 = vpop.permute.xlu1 %824  ;;  %v814_v1 = vadd.f32 %v812_v54, %v794_v59  ;;  %v815_v2 = vadd.f32 %v813_v57, %v795_v60 }
 0x2c9   : > { %v826_v46 = vsel %vm443_vm1, %v823_v12, %v825_v31  ;;  %v827_v47 = vsel %vm443_vm1, %v825_v31, %v823_v12  ;;  %v357_v31 = vsub.f32 %v2902_v55, %v2652_v7 }
 0x2ca   : > { %v837_v43 = vpop.permute.xlu0 %836  ;;  %v832_v61 = vmul.f32 %v2713_v20, %v826_v46  ;;  %v833_v63 = vmul.f32 %v827_v47, %v2724_v27 }
 0x2cb   : > { %v359_v54 = vmul.f32 0.25, %v357_v31 }
 0x2cc   : > { %v839_v58 = vpop.permute.xlu1 %838  ;;  %v834_v12 = vadd.f32 %v832_v61, %v814_v1  ;;  %v835_v17 = vadd.f32 %v833_v63, %v815_v2 }
 0x2cd   : > { %v840_v34 = vsel %vm465_vm2, %v837_v43, %v839_v58  ;;  %v841_v41 = vsel %vm465_vm2, %v839_v58, %v837_v43  ;;  %v2956_v58 = vcombine.low %v358_v51, %v359_v54 }
 0x2ce   : > { %v859_v0 = vpop.permute.xlu0 %858  ;;  %v846_v3 = vmul.f32 %v2729_v28, %v840_v34  ;;  %v847_v4 = vmul.f32 %v841_v41, %v2740_v35 }
 0x2d0   : > { %v857_v5 = vpop.permute.xlu1 %856  ;;  %v848_v32 = vadd.f32 %v846_v3, %v834_v12  ;;  %v849_v33 = vadd.f32 %v847_v4, %v835_v17 }
 0x2d1   : > { %v860_v9 = vsel %vm481_vm5, %v857_v5, %v859_v0  ;;  %v861_v11 = vsel %vm481_vm5, %v859_v0, %v857_v5 }
 0x2d2   : > { %v866_v25 = vmul.f32 %v2750_v37, %v860_v9  ;;  %v867_v26 = vmul.f32 %v861_v11, %v2771_v48  ;;  %v873_v38 = vpop.permute.xlu0 %872 }
 0x2d4   : > { %v871_v39 = vpop.permute.xlu1 %870  ;;  %v868_v43 = vadd.f32 %v866_v25, %v848_v32  ;;  %v869_v46 = vadd.f32 %v867_v26, %v849_v33 }
 0x2d5   : > { %v874_v40 = vsel %vm503_vm0, %v871_v39, %v873_v38  ;;  %v875_v42 = vsel %vm503_vm0, %v873_v38, %v871_v39 }
 0x2d6   : > { %v880_v47 = vmul.f32 %v2703_v16, %v874_v40  ;;  %v881_v49 = vmul.f32 %v875_v42, %v2708_v19 }
 0x2d8   : > { %v882_v57 = vadd.f32 %v880_v47, %v868_v43  ;;  %v883_v7 = vadd.f32 %v881_v49, %v869_v46 }
 0x2da   : > { %v886_v55 = vcombine.low %v882_v57, %v883_v7 }
 0x2dc   : > { %v888_v34 = vadd.f32 %v886_v55, %v2643_v6  ;;  %v1122_v6 = vmul.f32 0.5, %v2688_v10 }
 0x2de   : > { %v2960_v41 = vadd.f32 %v2956_v58, %v888_v34 }
 0x2e0   : > { %961 = vst [vmem:[#allocation2 + $0x48] sm:$0xf] %v2960_v41  ;;  %997 = vrot.lane.b32.xlu1 %v2960_v41, %s2563_s24  ;;  %v895_v59 = vcombine.high %v2960_v41, %v2960_v41 }
 0x2e2   : > { %999 = vrot.lane.b32.xlu0 %v895_v59, %s2563_s24  ;;  %962 = vst [vmem:[#allocation2 + $0x28] sm:$0xf] %v895_v59 }
 0x2e4   : > { %1017 = vrot.lane.b32.xlu1 %v2960_v41, %s2562_s23 }
 0x2e6   : > { %1019 = vrot.lane.b32.xlu0 %v895_v59, %s2562_s23 }
 0x2e8   : > { %963 = vrot.lane.b32.xlu1 %v2960_v41, %s2564_s25 }
 0x2ea   : > { %965 = vrot.lane.b32.xlu0 %v895_v59, %s2564_s25 }
 0x2ec   : > { %983 = vrot.lane.b32.xlu1 %v2960_v41, %s2565_s26 }
 0x2ee   : > { %985 = vrot.lane.b32.xlu0 %v895_v59, %s2565_s26 }
 0x2f0   : > { %941 = vrot.lane.b32.xlu1 %v2960_v41, %s2566_s27 }
 0x2f2   : > { %943 = vrot.lane.b32.xlu0 %v895_v59, %s2566_s27 }
 0x2f4   : > { %907 = vrot.lane.b32.xlu1 %v2960_v41, %s2567_s28 }
 0x2f6   : > { %909 = vrot.lane.b32.xlu0 %v895_v59, %s2567_s28 }
 0x2f8   : > { %927 = vrot.lane.b32.xlu1 %v2960_v41, %s2568_s29 }
 0x2fa   : > { %929 = vrot.lane.b32.xlu0 %v895_v59, %s2568_s29 }
 0x2fc   : > { %897 = vrot.lane.b32.xlu1 %v2960_v41, %s2570_s30 }
 0x2fe   : > { %899 = vrot.lane.b32.xlu0 %v895_v59, %s2570_s30 }
 0x300   : > { %1125 = vperm.xlu1 %2528, %v1122_v6  }
 0x352   : > { %v998_v60 = vpop.permute.xlu1 %997 }
 0x354   : > { %v1000_v61 = vpop.permute.xlu0 %999 }
 0x355   : > { %v1001_v63 = vsel %vm481_vm5, %v998_v60, %v1000_v61  ;;  %v1002_v0 = vsel %vm481_vm5, %v1000_v61, %v998_v60 }
 0x356   : > { %v1007_v1 = vmul.f32 %v2750_v37, %v1001_v63  ;;  %v1008_v2 = vmul.f32 %v1002_v0, %v2771_v48  ;;  %v1018_v3 = vpop.permute.xlu1 %1017 }
 0x358   : > { %v1011_v4 = vrot.slane %v1007_v1, 4  ;;  %v1012_v5 = vrot.slane %v1008_v2, 4  ;;  %v1020_v9 = vpop.permute.xlu0 %1019 }
 0x359   : > { %v1021_v10 = vsel %vm503_vm0, %v1018_v3, %v1020_v9  ;;  %v1022_v11 = vsel %vm503_vm0, %v1020_v9, %v1018_v3 }
 0x35a   : > { %1015 = vst [vmem:[#allocation2 + $0x8] sm:$0xf0] %v1011_v4  ;;  %1016 = vst [vmem:[#allocation2 + $0x20] sm:$0xf0] %v1012_v5  ;;  %v1027_v12 = vmul.f32 %v2703_v16, %v1021_v10  ;;  %v1028_v17 = vmul.f32 %v1022_v11, %v2708_v19  ;;  %v964_v25 = vpop.permute.xlu1 %963 }
 0x35c   : > { %1029 = vst [vmem:[#allocation2 + $0x40] sm:$0xf] %v1027_v12  ;;  %1030 = vst [vmem:[#allocation2 + $0x38] sm:$0xf] %v1028_v17  ;;  %v966_v26 = vpop.permute.xlu0 %965 }
 0x35d   : > { %v967_v30 = vsel %vm443_vm1, %v964_v25, %v966_v26  ;;  %v968_v31 = vsel %vm443_vm1, %v966_v26, %v964_v25 }
 0x35e   : > { %v973_v32 = vmul.f32 %v2713_v20, %v967_v30  ;;  %v974_v33 = vmul.f32 %v968_v31, %v2724_v27  ;;  %v984_v38 = vpop.permute.xlu1 %983 }
 0x360   : > { %v977_v39 = vrot.slane %v973_v32, 4  ;;  %v978_v40 = vrot.slane %v974_v33, 4  ;;  %v986_v16 = vpop.permute.xlu0 %985 }
 0x361   : > { %v987_v19 = vsel %vm465_vm2, %v984_v38, %v986_v16  ;;  %v988_v42 = vsel %vm465_vm2, %v986_v16, %v984_v38 }
 0x362   : > { %981 = vst [vmem:[#allocation2 + $0x48] sm:$0xf0] %v977_v39  ;;  %982 = vst [vmem:[#allocation2 + $0x28] sm:$0xf0] %v978_v40  ;;  %v993_v43 = vmul.f32 %v2729_v28, %v987_v19  ;;  %v994_v46 = vmul.f32 %v988_v42, %v2740_v35  ;;  %v942_v47 = vpop.permute.xlu1 %941 }
 0x363   : > { %v1040_v49 = vld [vmem:[#allocation2 + $0x38] sm:$0xf]  ;;  %v1039_v51 = vld [vmem:[#allocation2 + $0x40] sm:$0xf] }
 0x364   : > { %995 = vst [vmem:[#allocation2 + $0x8] sm:$0xf] %v993_v43  ;;  %996 = vst [vmem:[#allocation2 + $0x20] sm:$0xf] %v994_v46  ;;  %2443 = vmatprep.subr.msk.mxu0 %vm534_vm3, %v1040_v49  ;;  %v944_v54 = vpop.permute.xlu0 %943 }
 0x365   : > { %v945_v57 = vsel %vm419_vm4, %v942_v47, %v944_v54  ;;  %v946_v7 = vsel %vm419_vm4, %v944_v54, %v942_v47  ;;  %2444 = vmatpush1.msk.msra.mxu0 %vm534_vm3, %v1039_v51 }
 0x366   : > { %v951_v55 = vmul.f32 %v2745_v36, %v946_v7  ;;  %v952_v34 = vmul.f32 %v945_v57, %v2759_v44  ;;  %v908_v59 = vpop.permute.xlu1 %907 }
 0x368   : > { %v955_v6 = vrot.slane %v951_v55, 4  ;;  %v956_v60 = vrot.slane %v952_v34, 4  ;;  %v910_v61 = vpop.permute.xlu0 %909 }
 0x369   : > { %v911_v63 = vsel %vm381_vm6, %v908_v59, %v910_v61  ;;  %v912_v0 = vsel %vm381_vm6, %v910_v61, %v908_v59  ;;  %v1036_v25 = vld [vmem:[#allocation2 + $0x28] sm:$0xff] }
 0x36a   : > { %959 = vst [vmem:[#allocation2 + $0x18] sm:$0xf0] %v955_v6  ;;  %960 = vst [vmem:[#allocation2 + $0x10] sm:$0xf0] %v956_v60  ;;  %v917_v1 = vmul.f32 %v2764_v45, %v912_v0  ;;  %v918_v2 = vmul.f32 %v911_v63, %v2777_v53  ;;  %v928_v3 = vpop.permute.xlu1 %927  ;;  %v1035_v31 = vld [vmem:[#allocation2 + $0x48] sm:$0xff] }
 0x36b   : > { %v1038_v4 = vld [vmem:[#allocation2 + $0x20] sm:$0xff]  ;;  %v1037_v5 = vld [vmem:[#allocation2 + $0x8] sm:$0xff] }
 0x36c   : > { %v921_v9 = vrot.slane %v917_v1, 4  ;;  %v922_v10 = vrot.slane %v918_v2, 4  ;;  %1071 = vmatprep.subr.mxu0 %v1038_v4  ;;  %v930_v11 = vpop.permute.xlu0 %929 }
 0x36d   : > { %v931_v12 = vsel %vm403_vm7, %v928_v3, %v930_v11  ;;  %v932_v17 = vsel %vm403_vm7, %v930_v11, %v928_v3  ;;  %1072 = vmatpush1.msra.mxu0 %v1037_v5 }
 0x36e   : > { %925 = vst [vmem:[#allocation2 + $0x30] sm:$0xf0] %v921_v9  ;;  %926 = vst [vmem:[#allocation2] sm:$0xf0] %v922_v10  ;;  %v937_v26 = vmul.f32 %v2795_v62, %v932_v17  ;;  %v938_v30 = vmul.f32 %v931_v12, %v2806_v13  ;;  %1073 = vmatprep.subr.mxu0 %v1036_v25  ;;  %v898_v32 = vpop.permute.xlu1 %897 }
 0x36f   : > { %1074 = vmatpush1.msra.mxu0 %v1035_v31 }
 0x370   : > { %939 = vst [vmem:[#allocation2 + $0x18] sm:$0xf] %v937_v26  ;;  %940 = vst [vmem:[#allocation2 + $0x10] sm:$0xf] %v938_v30  ;;  %v900_v33 = vpop.permute.xlu0 %899 }
 0x371   : > { %v901_v38 = vsel %vm366_vm8, %v898_v32, %v900_v33  ;;  %v902_v39 = vsel %vm366_vm8, %v900_v33, %v898_v32 }
 0x372   : > { %v903_v40 = vmul.f32 %v902_v39, %v2811_v14  ;;  %v904_v16 = vmul.f32 %v901_v38, %v2822_v29 }
 0x374   : > { %905 = vst [vmem:[#allocation2 + $0x30] sm:$0xf] %v903_v40  ;;  %906 = vst [vmem:[#allocation2] sm:$0xf] %v904_v16 }
 0x377   : > { %v1034_v19 = vld [vmem:[#allocation2 + $0x10] sm:$0xff]  ;;  %v1033_v42 = vld [vmem:[#allocation2 + $0x18] sm:$0xff] }
 0x378   : > { %1075 = vmatprep.subr.mxu0 %v1034_v19 }
 0x379   : > { %1076 = vmatpush1.msra.mxu0 %v1033_v42 }
 0x37b   : > { %v1032_v43 = vld [vmem:[#allocation2] sm:$0xff]  ;;  %v1031_v46 = vld [vmem:[#allocation2 + $0x30] sm:$0xff]  ;;  %v3044_v51 = vpop.permute.xlu1 %1125 }
 0x37c   : > { %1077 = vmatprep.subr.mxu0 %v1032_v43 }
 0x37d   : > { %1078 = vmatpush1.msra.mxu0 %v1031_v46 }
 0x37e   : > { %2445 = vmatmul.mubr.msk.f32.vlgmr.msra.gmra.mxu0 %vm530_vm9, %v2833_v50 }
 0x37f   : > { %1202 = vmatprep.mubr.f32.mxu0 %v2569_v8 }
 0x43e   : > { %v1113_v47 = vpop.f32.mrf.mxu0 }
 0x43f   : > { %v1114_v49 = vadd.f32 %v1113_v47, %v2838_v52 }
 0x440   : > { %v1115_v54 = vpop.f32.mrf.mxu0 }
 0x441   : > { %v1118_v57 = vadd.f32 %v1114_v49, %v2841_v56  ;;  %v1128_v7 = vadd.f32 %v3044_v51, %v1114_v49  ;;  %v1116_v55 = vadd.f32 %v1115_v54, %v2838_v52 }
 0x443   : > { %v1120_v34 = vmax.f32 %v1118_v57, 0.0  ;;  %v1130_v59 = vmax.f32 %v1128_v7, 0.0  ;;  %v1119_v6 = vadd.f32 %v1116_v55, %v2841_v56  ;;  %v1129_v50 = vadd.f32 %v3044_v51, %v1116_v55 }
 0x445   : > { %v1121_v60 = vmax.f32 %v1119_v6, 0.0  ;;  %v1131_v61 = vmax.f32 %v1129_v50, 0.0  ;;  %v1132_v63 = vmul.f32 0.5, %v1130_v59  ;;  %v1134_v0 = vmul.f32 0.25, %v1120_v34 }
 0x447   : > { %v1133_v1 = vmul.f32 0.5, %v1131_v61  ;;  %v1135_v2 = vmul.f32 0.25, %v1121_v60  ;;  %v1136_v4 = vsub.f32 %v1132_v63, %v1134_v0 }
 0x449   : > { %v1137_v3 = vsub.f32 %v1133_v1, %v1135_v2 }
 0x44b   : > { %1168 = vmatprep.subr.mxu0 %v1137_v3  ;;  %2507 = vmatprep.subr.mxu1 %v1137_v3 }
 0x44c   : > { %1169 = vmatpush1.msra.mxu0 %v1136_v4  ;;  %2508 = vmatpush1.msra.mxu1 %v1136_v4 }
 0x44d   : > { %2446 = vmatmul.mubr.msk.f32.vlgmr.msra.gmra.mxu0 %vm637_vm10, %v2849_v18  ;;  %2448 = vmatmul.mubr.msk.f32.vlgmr.msra.gmra.mxu1 %vm637_vm10, %v2865_v22 }
 0x44e   : > { %1208 = vmatprep.mubr.f32.mxu0 %v2569_v8  ;;  %1220 = vmatprep.mubr.f32.mxu1 %v2569_v8 }
 0x451   : > { %2447 = vmatmul.mubr.msk.f32.gmra.mxu0 %vm637_vm10, %v2857_v21  ;;  %2449 = vmatmul.mubr.msk.f32.gmra.mxu1 %vm637_vm10, %v2873_v23 }
 0x452   : > { %1226 = vmatprep.mubr.f32.mxu1 %v2569_v8  ;;  %1592 = vmatprep.mubr.f32.mxu0 %v2569_v8 }
 0x455   : > { %2450 = vmatmul.mubr.msk.f32.gmra.mxu1 %vm637_vm10, %v2881_v24 }
 0x456   : > { %2073 = vmatprep.mubr.f32.mxu1 %v2569_v8 }
 0x50d   : > { %v1204_v56 = vpop.f32.mrf.mxu0  ;;  %v1216_v22 = vpop.f32.mrf.mxu1 }
 0x50e   : > { %1233 = vrot.lane.b32.xlu0 %v1204_v56, %s2570_s30  ;;  %v1249_v5 = vrot.slane %v1204_v56, 4  ;;  %v1303_v9 = vrot.slane %v1216_v22, 4 }
 0x50f   : > { %v1206_v18 = vpop.f32.mrf.mxu0  ;;  %v1218_v23 = vpop.f32.mrf.mxu1 }
 0x510   : > { %1235 = vrot.lane.b32.xlu1 %v1206_v18, %s2570_s30  ;;  %v1250_v21 = vrot.slane %v1206_v18, 4  ;;  %v1304_v10 = vrot.slane %v1218_v23, 4 }
 0x511   : > { %v1210_v24 = vpop.f32.mrf.mxu0  ;;  %v1222_v12 = vpop.f32.mrf.mxu1 }
 0x512   : > { %1253 = vrot.lane.b32.xlu0 %v1249_v5, %s2567_s28  ;;  %v1283_v25 = vrot.slane %v1210_v24, 4  ;;  %v1337_v30 = vrot.slane %v1222_v12, 4 }
 0x513   : > { %v1212_v11 = vpop.f32.mrf.mxu0  ;;  %v1224_v17 = vpop.f32.mrf.mxu1 }
 0x514   : > { %1255 = vrot.lane.b32.xlu1 %v1250_v21, %s2567_s28  ;;  %v1284_v26 = vrot.slane %v1212_v11, 4  ;;  %v1338_v31 = vrot.slane %v1224_v17, 4 }
 0x515   : > { %v1228_v32 = vpop.f32.mrf.mxu1 }
 0x516   : > { %1307 = vrot.lane.b32.xlu0 %v1303_v9, %s2564_s25 }
 0x517   : > { %v1230_v33 = vpop.f32.mrf.mxu1 }
 0x518   : > { %1309 = vrot.lane.b32.xlu1 %v1304_v10, %s2564_s25 }
 0x51a   : > { %1267 = vrot.lane.b32.xlu0 %v1210_v24, %s2568_s29 }
 0x51c   : > { %1269 = vrot.lane.b32.xlu1 %v1212_v11, %s2568_s29 }
 0x51e   : > { %1321 = vrot.lane.b32.xlu0 %v1222_v12, %s2565_s26 }
 0x520   : > { %1323 = vrot.lane.b32.xlu1 %v1224_v17, %s2565_s26 }
 0x522   : > { %1287 = vrot.lane.b32.xlu0 %v1283_v25, %s2566_s27 }
 0x524   : > { %1289 = vrot.lane.b32.xlu1 %v1284_v26, %s2566_s27 }
 0x526   : > { %1341 = vrot.lane.b32.xlu0 %v1337_v30, %s2563_s24 }
 0x528   : > { %1343 = vrot.lane.b32.xlu1 %v1338_v31, %s2563_s24 }
 0x52a   : > { %1355 = vrot.lane.b32.xlu0 %v1228_v32, %s2562_s23 }
 0x52c   : > { %1357 = vrot.lane.b32.xlu1 %v1230_v33, %s2562_s23 }
 0x580   : > { %v1234_v38 = vpop.permute.xlu0 %1233 }
 0x582   : > { %v1236_v39 = vpop.permute.xlu1 %1235 }
 0x583   : > { %v1237_v46 = vsel %vm366_vm8, %v1234_v38, %v1236_v39  ;;  %v1238_v47 = vsel %vm366_vm8, %v1236_v39, %v1234_v38 }
 0x584   : > { %v1254_v40 = vpop.permute.xlu0 %1253  ;;  %v1243_v7 = vmul.f32 %v1238_v47, %v2811_v14  ;;  %v1244_v55 = vmul.f32 %v1237_v46, %v2822_v29 }
 0x586   : > { %v1256_v16 = vpop.permute.xlu1 %1255  ;;  %v1245_v63 = vadd.f32 %v1243_v7, %v1216_v22  ;;  %v1246_v0 = vadd.f32 %v1244_v55, %v1218_v23  ;;  %v3113_v23 = vld [vmem:[%s3590_s3 + $0x40] sm:$0xff] }
 0x587   : > { %v1257_v54 = vsel %vm381_vm6, %v1254_v40, %v1256_v16  ;;  %v1258_v57 = vsel %vm381_vm6, %v1256_v16, %v1254_v40  ;;  %v3127_v30 = vcombine.high %v3113_v23, %v3113_v23 }
 0x588   : > { %v1308_v19 = vpop.permute.xlu0 %1307  ;;  %v1263_v50 = vmul.f32 %v2764_v45, %v1258_v57  ;;  %v1264_v60 = vmul.f32 %v1257_v54, %v2777_v53 }
 0x58a   : > { %v1310_v42 = vpop.permute.xlu1 %1309  ;;  %v1265_v3 = vadd.f32 %v1263_v50, %v1245_v63  ;;  %v1266_v4 = vadd.f32 %v1264_v60, %v1246_v0 }
 0x58b   : > { %v1311_v18 = vsel %vm443_vm1, %v1308_v19, %v1310_v42  ;;  %v1312_v5 = vsel %vm443_vm1, %v1310_v42, %v1308_v19 }
 0x58c   : > { %v1268_v43 = vpop.permute.xlu0 %1267  ;;  %v1317_v11 = vmul.f32 %v2713_v20, %v1311_v18  ;;  %v1318_v12 = vmul.f32 %v1312_v5, %v2724_v27 }
 0x58e   : > { %v1270_v49 = vpop.permute.xlu1 %1269 }
 0x58f   : > { %v1271_v59 = vsel %vm403_vm7, %v1268_v43, %v1270_v49  ;;  %v1272_v6 = vsel %vm403_vm7, %v1270_v49, %v1268_v43 }
 0x590   : > { %v1322_v34 = vpop.permute.xlu0 %1321  ;;  %v1277_v1 = vmul.f32 %v2795_v62, %v1272_v6  ;;  %v1278_v14 = vmul.f32 %v1271_v59, %v2806_v13 }
 0x592   : > { %v1324_v61 = vpop.permute.xlu1 %1323  ;;  %v1279_v22 = vadd.f32 %v1277_v1, %v1265_v3  ;;  %v1280_v62 = vadd.f32 %v1278_v14, %v1266_v4  ;;  %v3194_v14 = vld [vmem:[%s3590_s3 + $0x28] sm:$0xff] }
 0x593   : > { %v1325_v10 = vsel %vm465_vm2, %v1322_v34, %v1324_v61  ;;  %v1326_v24 = vsel %vm465_vm2, %v1324_v61, %v1322_v34  ;;  %v3179_v34 = vld [vmem:[%s3590_s3 + $0x38] sm:$0xff] }
 0x594   : > { %v1288_v2 = vpop.permute.xlu0 %1287  ;;  %v1331_v31 = vmul.f32 %v2729_v28, %v1325_v10  ;;  %v1332_v32 = vmul.f32 %v1326_v24, %v2740_v35  ;;  %v3183_v6 = vcombine.high %v3179_v34, %v3179_v34 }
 0x596   : > { %v1290_v56 = vpop.permute.xlu1 %1289 }
 0x597   : > { %v1291_v45 = vsel %vm419_vm4, %v1288_v2, %v1290_v56  ;;  %v1292_v53 = vsel %vm419_vm4, %v1290_v56, %v1288_v2 }
 0x598   : > { %v1297_v13 = vmul.f32 %v2745_v36, %v1292_v53  ;;  %v1298_v21 = vmul.f32 %v1291_v45, %v2759_v44  ;;  %v1342_v9 = vpop.permute.xlu0 %1341 }
 0x59a   : > { %v1299_v17 = vadd.f32 %v1297_v13, %v1279_v22  ;;  %v1300_v36 = vadd.f32 %v1298_v21, %v1280_v62  ;;  %v1344_v25 = vpop.permute.xlu1 %1343  ;;  %v3204_v22 = vcombine.high %v3194_v14, %v3194_v14  ;;  %v3209_v62 = vld [vmem:[%s3590_s3 + $0x30] sm:$0xff] }
 0x59b   : > { %v1345_v44 = vsel %vm481_vm5, %v1342_v9, %v1344_v25  ;;  %v1346_v26 = vsel %vm481_vm5, %v1344_v25, %v1342_v9 }
 0x59c   : > { %v1319_v20 = vadd.f32 %v1317_v11, %v1299_v17  ;;  %v1320_v33 = vadd.f32 %v1318_v12, %v1300_v36  ;;  %v1351_v39 = vmul.f32 %v2750_v37, %v1345_v44  ;;  %v1352_v40 = vmul.f32 %v1346_v26, %v2771_v48  ;;  %v1356_v16 = vpop.permute.xlu0 %1355  ;;  %v3224_v17 = vld [vmem:[%s3590_s3 + $0x18] sm:$0xff] }
 0x59d   : > { %v3219_v12 = vcombine.high %v3209_v62, %v3209_v62 }
 0x59e   : > { %v1333_v27 = vadd.f32 %v1331_v31, %v1319_v20  ;;  %v1334_v38 = vadd.f32 %v1332_v32, %v1320_v33  ;;  %v1358_v19 = vpop.permute.xlu1 %1357 }
 0x59f   : > { %v1359_v42 = vsel %vm503_vm0, %v1356_v16, %v1358_v19  ;;  %v1360_v43 = vsel %vm503_vm0, %v1358_v19, %v1356_v16 }
 0x5a0   : > { %v1353_v46 = vadd.f32 %v1351_v39, %v1333_v27  ;;  %v1354_v28 = vadd.f32 %v1352_v40, %v1334_v38  ;;  %v1365_v35 = vmul.f32 %v3113_v23, %v1359_v42  ;;  %v1366_v47 = vmul.f32 %v3127_v30, %v1360_v43  ;;  %v3239_v40 = vld [vmem:[%s3590_s3 + $0x8] sm:$0xff] }
 0x5a1   : > { %v3234_v27 = vcombine.high %v3224_v17, %v3224_v17 }
 0x5a2   : > { %v1367_v49 = vadd.f32 %v1365_v35, %v1353_v46  ;;  %v1368_v54 = vadd.f32 %v1366_v47, %v1354_v28  ;;  %v3251_v35 = vcombine.high %v3239_v40, %v3239_v40  ;;  %v3256_v47 = vld [vmem:[%s3590_s3 + $0x10] sm:$0xff] }
 0x5a4   : > { %v1371_v57 = vcombine.low %v1367_v49, %v1368_v54 }
 0x5a6   : > { %v1373_v37 = vadd.f32 %v1371_v57, %v2960_v41  ;;  %v3172_v41 = vld [vmem:[%s3592_s5] sm:$0xff] }
 0x5a7   : > { %v1603_v55 = vmul.f32 0.25, %v3172_v41 }
 0x5a8   : > { %v3141_v48 = vadd.f32 %v1373_v37, %v2956_v58 }
 0x5aa   : > { %1442 = vst [vmem:[#allocation2 + $0x48] sm:$0xf] %v3141_v48  ;;  %1478 = vrot.lane.b32.xlu0 %v3141_v48, %s2563_s24  ;;  %v1376_v7 = vcombine.high %v3141_v48, %v3141_v48 }
 0x5ac   : > { %1480 = vrot.lane.b32.xlu1 %v1376_v7, %s2563_s24  ;;  %1443 = vst [vmem:[#allocation2 + $0x28] sm:$0xf] %v1376_v7 }
 0x5ae   : > { %1498 = vrot.lane.b32.xlu0 %v3141_v48, %s2562_s23 }
 0x5b0   : > { %1500 = vrot.lane.b32.xlu1 %v1376_v7, %s2562_s23 }
 0x5b2   : > { %1444 = vrot.lane.b32.xlu0 %v3141_v48, %s2564_s25 }
 0x5b4   : > { %1446 = vrot.lane.b32.xlu1 %v1376_v7, %s2564_s25 }
 0x5b6   : > { %1464 = vrot.lane.b32.xlu0 %v3141_v48, %s2565_s26 }
 0x5b8   : > { %1466 = vrot.lane.b32.xlu1 %v1376_v7, %s2565_s26 }
 0x5ba   : > { %1422 = vrot.lane.b32.xlu0 %v3141_v48, %s2566_s27 }
 0x5bc   : > { %1424 = vrot.lane.b32.xlu1 %v1376_v7, %s2566_s27 }
 0x5be   : > { %1388 = vrot.lane.b32.xlu0 %v3141_v48, %s2567_s28 }
 0x5c0   : > { %1390 = vrot.lane.b32.xlu1 %v1376_v7, %s2567_s28 }
 0x5c2   : > { %1408 = vrot.lane.b32.xlu0 %v3141_v48, %s2568_s29 }
 0x5c4   : > { %1410 = vrot.lane.b32.xlu1 %v1376_v7, %s2568_s29 }
 0x5c6   : > { %1378 = vrot.lane.b32.xlu0 %v3141_v48, %s2570_s30 }
 0x5c8   : > { %1380 = vrot.lane.b32.xlu1 %v1376_v7, %s2570_s30 }
 0x5ca   : > { %1606 = vperm.xlu0 %2527, %v1603_v55  }
 0x61c   : > { %v1479_v59 = vpop.permute.xlu0 %1478 }
 0x61e   : > { %v1481_v50 = vpop.permute.xlu1 %1480 }
 0x61f   : > { %v1482_v60 = vsel %vm481_vm5, %v1479_v59, %v1481_v50  ;;  %v1483_v61 = vsel %vm481_vm5, %v1481_v50, %v1479_v59 }
 0x620   : > { %v1488_v63 = vmul.f32 %v3179_v34, %v1482_v60  ;;  %v1489_v0 = vmul.f32 %v3183_v6, %v1483_v61  ;;  %v1499_v1 = vpop.permute.xlu0 %1498  ;;  %v3266_v60 = vcombine.high %v3256_v47, %v3256_v47 }
 0x622   : > { %v1492_v2 = vrot.slane %v1488_v63, 4  ;;  %v1493_v3 = vrot.slane %v1489_v0, 4  ;;  %v1501_v4 = vpop.permute.xlu1 %1500 }
 0x623   : > { %v1502_v56 = vsel %vm503_vm0, %v1499_v1, %v1501_v4  ;;  %v1503_v18 = vsel %vm503_vm0, %v1501_v4, %v1499_v1 }
 0x624   : > { %1496 = vst [vmem:[#allocation2 + $0x8] sm:$0xf0] %v1492_v2  ;;  %1497 = vst [vmem:[#allocation2 + $0x20] sm:$0xf0] %v1493_v3  ;;  %v1508_v5 = vmul.f32 %v3113_v23, %v1502_v56  ;;  %v1509_v45 = vmul.f32 %v1503_v18, %v3127_v30  ;;  %v1445_v53 = vpop.permute.xlu0 %1444 }
 0x626   : > { %1510 = vst [vmem:[#allocation2 + $0x40] sm:$0xf] %v1508_v5  ;;  %1511 = vst [vmem:[#allocation2 + $0x38] sm:$0xf] %v1509_v45  ;;  %v1447_v13 = vpop.permute.xlu1 %1446 }
 0x627   : > { %v1448_v21 = vsel %vm443_vm1, %v1445_v53, %v1447_v13  ;;  %v1449_v9 = vsel %vm443_vm1, %v1447_v13, %v1445_v53 }
 0x628   : > { %v1454_v10 = vmul.f32 %v3194_v14, %v1448_v21  ;;  %v1455_v24 = vmul.f32 %v3204_v22, %v1449_v9  ;;  %v1465_v11 = vpop.permute.xlu0 %1464 }
 0x62a   : > { %v1458_v36 = vrot.slane %v1454_v10, 4  ;;  %v1459_v25 = vrot.slane %v1455_v24, 4  ;;  %v1467_v44 = vpop.permute.xlu1 %1466  ;;  %v2547_v10 = vld [vmem:[%s3590_s3] sm:$0xff] }
 0x62b   : > { %v1468_v26 = vsel %vm465_vm2, %v1465_v11, %v1467_v44  ;;  %v1469_v31 = vsel %vm465_vm2, %v1467_v44, %v1465_v11 }
 0x62c   : > { %1462 = vst [vmem:[#allocation2 + $0x48] sm:$0xf0] %v1458_v36  ;;  %1463 = vst [vmem:[#allocation2 + $0x28] sm:$0xf0] %v1459_v25  ;;  %v1474_v32 = vmul.f32 %v3209_v62, %v1468_v26  ;;  %v1475_v20 = vmul.f32 %v3219_v12, %v1469_v31  ;;  %v1423_v33 = vpop.permute.xlu0 %1422  ;;  %v3285_v31 = vld [vmem:[%s3591_s4] sm:$0xff] }
 0x62d   : > { %v1521_v38 = vld [vmem:[#allocation2 + $0x38] sm:$0xf]  ;;  %v1520_v39 = vld [vmem:[#allocation2 + $0x40] sm:$0xf] }
 0x62e   : > { %1476 = vst [vmem:[#allocation2 + $0x8] sm:$0xf] %v1474_v32  ;;  %1477 = vst [vmem:[#allocation2 + $0x20] sm:$0xf] %v1475_v20  ;;  %2465 = vmatprep.subr.msk.mxu0 %vm534_vm3, %v1521_v38  ;;  %v1425_v16 = vpop.permute.xlu1 %1424 }
 0x62f   : > { %v1426_v19 = vsel %vm419_vm4, %v1423_v33, %v1425_v16  ;;  %v1427_v42 = vsel %vm419_vm4, %v1425_v16, %v1423_v33  ;;  %2466 = vmatpush1.msk.msra.mxu0 %vm534_vm3, %v1520_v39 }
 0x630   : > { %v1432_v43 = vmul.f32 %v3224_v17, %v1427_v42  ;;  %v1433_v46 = vmul.f32 %v3234_v27, %v1426_v19  ;;  %v1389_v28 = vpop.permute.xlu0 %1388 }
 0x632   : > { %v1436_v49 = vrot.slane %v1432_v43, 4  ;;  %v1437_v54 = vrot.slane %v1433_v46, 4  ;;  %v1391_v57 = vpop.permute.xlu1 %1390 }
 0x633   : > { %v1392_v37 = vsel %vm381_vm6, %v1389_v28, %v1391_v57  ;;  %v1393_v7 = vsel %vm381_vm6, %v1391_v57, %v1389_v28  ;;  %v1517_v56 = vld [vmem:[#allocation2 + $0x28] sm:$0xff] }
 0x634   : > { %1440 = vst [vmem:[#allocation2 + $0x18] sm:$0xf0] %v1436_v49  ;;  %1441 = vst [vmem:[#allocation2 + $0x10] sm:$0xf0] %v1437_v54  ;;  %v1398_v55 = vmul.f32 %v3239_v40, %v1393_v7  ;;  %v1399_v59 = vmul.f32 %v3251_v35, %v1392_v37  ;;  %v1409_v50 = vpop.permute.xlu0 %1408  ;;  %v1516_v45 = vld [vmem:[#allocation2 + $0x48] sm:$0xff] }
 0x635   : > { %v1519_v61 = vld [vmem:[#allocation2 + $0x20] sm:$0xff]  ;;  %v1518_v63 = vld [vmem:[#allocation2 + $0x8] sm:$0xff] }
 0x636   : > { %v1402_v0 = vrot.slane %v1398_v55, 4  ;;  %v1403_v1 = vrot.slane %v1399_v59, 4  ;;  %1552 = vmatprep.subr.mxu0 %v1519_v61  ;;  %v1411_v2 = vpop.permute.xlu1 %1410  ;;  %v3317_v61 = vld [vmem:[%s3594_s7 + $0x10] sm:$0xff] }
 0x637   : > { %v1412_v3 = vsel %vm403_vm7, %v1409_v50, %v1411_v2  ;;  %v1413_v4 = vsel %vm403_vm7, %v1411_v2, %v1409_v50  ;;  %1553 = vmatpush1.msra.mxu0 %v1518_v63  ;;  %v3301_v50 = vld [vmem:[%s3594_s7] sm:$0xff]  ;;  %v3325_v63 = vld [vmem:[%s3594_s7 + $0x18] sm:$0xff] }
 0x638   : > { %1406 = vst [vmem:[#allocation2 + $0x30] sm:$0xf0] %v1402_v0  ;;  %1407 = vst [vmem:[#allocation2] sm:$0xf0] %v1403_v1  ;;  %v1418_v18 = vmul.f32 %v3256_v47, %v1413_v4  ;;  %v1419_v5 = vmul.f32 %v3266_v60, %v1412_v3  ;;  %1554 = vmatprep.subr.mxu0 %v1517_v56  ;;  %v1379_v53 = vpop.permute.xlu0 %1378  ;;  %v3333_v0 = vld [vmem:[%s3594_s7 + $0x20] sm:$0xf] }
 0x639   : > { %1555 = vmatpush1.msra.mxu0 %v1516_v45 }
 0x63a   : > { %1420 = vst [vmem:[#allocation2 + $0x18] sm:$0xf] %v1418_v18  ;;  %1421 = vst [vmem:[#allocation2 + $0x10] sm:$0xf] %v1419_v5  ;;  %v1381_v13 = vpop.permute.xlu1 %1380 }
 0x63b   : > { %v1382_v21 = vsel %vm366_vm8, %v1379_v53, %v1381_v13  ;;  %v1383_v9 = vsel %vm366_vm8, %v1381_v13, %v1379_v53 }
 0x63c   : > { %v1384_v24 = vmul.f32 %v2547_v10, %v1383_v9  ;;  %v1385_v11 = vmul.f32 %v1382_v21, %v2822_v29 }
 0x63e   : > { %1386 = vst [vmem:[#allocation2 + $0x30] sm:$0xf] %v1384_v24  ;;  %1387 = vst [vmem:[#allocation2] sm:$0xf] %v1385_v11 }
 0x641   : > { %v1515_v36 = vld [vmem:[#allocation2 + $0x10] sm:$0xff]  ;;  %v1514_v25 = vld [vmem:[#allocation2 + $0x18] sm:$0xff] }
 0x642   : > { %1556 = vmatprep.subr.mxu0 %v1515_v36 }
 0x643   : > { %1557 = vmatpush1.msra.mxu0 %v1514_v25 }
 0x645   : > { %v1513_v44 = vld [vmem:[#allocation2] sm:$0xff]  ;;  %v1512_v26 = vld [vmem:[#allocation2 + $0x30] sm:$0xff]  ;;  %v3291_v20 = vpop.permute.xlu0 %1606 }
 0x646   : > { %1558 = vmatprep.subr.mxu0 %v1513_v44 }
 0x647   : > { %1559 = vmatpush1.msra.mxu0 %v1512_v26 }
 0x648   : > { %2467 = vmatmul.mubr.msk.f32.vlgmr.msra.gmra.mxu0 %vm530_vm9, %v3285_v31 }
 0x649   : > { %1683 = vmatprep.mubr.f32.mxu0 %v2569_v8 }
 0x708   : > { %v1594_v29 = vpop.f32.mrf.mxu0 }
 0x709   : > { %v1595_v32 = vadd.f32 %v1594_v29, %v2838_v52 }
 0x70a   : > { %v1596_v33 = vpop.f32.mrf.mxu0 }
 0x70b   : > { %v1599_v38 = vadd.f32 %v1595_v32, %v3044_v51  ;;  %v1609_v39 = vadd.f32 %v3291_v20, %v1595_v32  ;;  %v1597_v16 = vadd.f32 %v1596_v33, %v2838_v52 }
 0x70d   : > { %v1601_v19 = vmax.f32 %v1599_v38, 0.0  ;;  %v1611_v42 = vmax.f32 %v1609_v39, 0.0  ;;  %v1600_v43 = vadd.f32 %v1597_v16, %v3044_v51  ;;  %v1610_v46 = vadd.f32 %v3291_v20, %v1597_v16  ;;  %v3309_v51 = vld [vmem:[%s3594_s7 + $0x8] sm:$0xff]  ;;  %v3356_v39 = vld [vmem:[%s3590_s3] sm:$0xff] }
 0x70f   : > { %v1602_v28 = vmax.f32 %v1600_v43, 0.0  ;;  %v1612_v49 = vmax.f32 %v1610_v46, 0.0  ;;  %v1613_v54 = vmul.f32 0.75, %v1611_v42  ;;  %v1615_v57 = vmul.f32 0.5, %v1601_v19 }
 0x710   : > { %v3360_v19 = vcombine.high %v3356_v39, %v3356_v39 }
 0x711   : > { %v1614_v37 = vmul.f32 0.75, %v1612_v49  ;;  %v1616_v7 = vmul.f32 0.5, %v1602_v28  ;;  %v1617_v59 = vsub.f32 %v1613_v54, %v1615_v57 }
 0x713   : > { %v1618_v55 = vsub.f32 %v1614_v37, %v1616_v7 }
 0x715   : > { %1649 = vmatprep.subr.mxu0 %v1618_v55 }
 0x716   : > { %1650 = vmatpush1.msra.mxu0 %v1617_v59 }
 0x717   : > { %2468 = vmatmul.mubr.msk.f32.vlgmr.msra.gmra.mxu0 %vm637_vm10, %v3301_v50 }
 0x718   : > { %1689 = vmatprep.mubr.f32.mxu0 %v2569_v8 }
 0x71b   : > { %2469 = vmatmul.mubr.msk.f32.gmra.mxu0 %vm637_vm10, %v3309_v51 }
 0x71c   : > { %1695 = vmatprep.mubr.f32.mxu0 %v2569_v8 }
 0x71f   : > { %2470 = vmatmul.mubr.msk.f32.gmra.mxu0 %vm637_vm10, %v3317_v61 }
 0x720   : > { %1701 = vmatprep.mubr.f32.mxu0 %v2569_v8 }
 0x723   : > { %2471 = vmatmul.mubr.msk.f32.gmra.mxu0 %vm637_vm10, %v3325_v63 }
 0x724   : > { %1707 = vmatprep.mubr.f32.mxu0 %v2569_v8 }
 0x727   : > { %2472 = vmatmul.mubr.msk.f32.gmra.mxu0 %vm637_vm10, %v3333_v0 }
 0x7d7   : > { %v1685_v1 = vpop.f32.mrf.mxu0 }
 0x7d8   : > { %1714 = vrot.lane.b32.xlu1 %v1685_v1, %s2570_s30  ;;  %v1730_v3 = vrot.slane %v1685_v1, 4 }
 0x7d9   : > { %v1687_v2 = vpop.f32.mrf.mxu0 }
 0x7da   : > { %1716 = vrot.lane.b32.xlu0 %v1687_v2, %s2570_s30  ;;  %v1731_v56 = vrot.slane %v1687_v2, 4 }
 0x7db   : > { %v1691_v4 = vpop.f32.mrf.mxu0 }
 0x7dc   : > { %1734 = vrot.lane.b32.xlu1 %v1730_v3, %s2567_s28  ;;  %v1764_v45 = vrot.slane %v1691_v4, 4 }
 0x7dd   : > { %v1693_v18 = vpop.f32.mrf.mxu0 }
 0x7de   : > { %1736 = vrot.lane.b32.xlu0 %v1731_v56, %s2567_s28  ;;  %v1765_v53 = vrot.slane %v1693_v18, 4 }
 0x7df   : > { %v1697_v5 = vpop.f32.mrf.mxu0 }
 0x7e0   : > { %1748 = vrot.lane.b32.xlu1 %v1691_v4, %s2568_s29  ;;  %v1784_v13 = vrot.slane %v1697_v5, 4 }
 0x7e1   : > { %v1699_v21 = vpop.f32.mrf.mxu0 }
 0x7e2   : > { %1750 = vrot.lane.b32.xlu0 %v1693_v18, %s2568_s29  ;;  %v1785_v9 = vrot.slane %v1699_v21, 4 }
 0x7e3   : > { %v1703_v10 = vpop.f32.mrf.mxu0 }
 0x7e4   : > { %1768 = vrot.lane.b32.xlu1 %v1764_v45, %s2566_s27  ;;  %v1818_v11 = vrot.slane %v1703_v10, 4 }
 0x7e5   : > { %v1705_v24 = vpop.f32.mrf.mxu0 }
 0x7e6   : > { %1770 = vrot.lane.b32.xlu0 %v1765_v53, %s2566_s27  ;;  %v1819_v36 = vrot.slane %v1705_v24, 4 }
 0x7e7   : > { %v1709_v25 = vpop.f32.mrf.mxu0 }
 0x7e8   : > { %1788 = vrot.lane.b32.xlu1 %v1784_v13, %s2564_s25 }
 0x7e9   : > { %v1711_v44 = vpop.f32.mrf.mxu0 }
 0x7ea   : > { %1790 = vrot.lane.b32.xlu0 %v1785_v9, %s2564_s25 }
 0x7ec   : > { %1802 = vrot.lane.b32.xlu1 %v1703_v10, %s2565_s26 }
 0x7ee   : > { %1804 = vrot.lane.b32.xlu0 %v1705_v24, %s2565_s26 }
 0x7f0   : > { %1822 = vrot.lane.b32.xlu1 %v1818_v11, %s2563_s24 }
 0x7f2   : > { %1824 = vrot.lane.b32.xlu0 %v1819_v36, %s2563_s24 }
 0x7f4   : > { %1836 = vrot.lane.b32.xlu1 %v1709_v25, %s2562_s23 }
 0x7f6   : > { %1838 = vrot.lane.b32.xlu0 %v1711_v44, %s2562_s23 }
 0x84a   : > { %v1715_v26 = vpop.permute.xlu1 %1714 }
 0x84c   : > { %v1717_v29 = vpop.permute.xlu0 %1716 }
 0x84d   : > { %v1718_v43 = vsel %vm366_vm8, %v1715_v26, %v1717_v29  ;;  %v1719_v46 = vsel %vm366_vm8, %v1717_v29, %v1715_v26 }
 0x84e   : > { %v1735_v32 = vpop.permute.xlu1 %1734  ;;  %v1724_v57 = vmul.f32 %v3356_v39, %v1719_v46  ;;  %v1725_v37 = vmul.f32 %v3360_v19, %v1718_v43 }
 0x850   : > { %v1737_v33 = vpop.permute.xlu0 %1736  ;;  %v1726_v18 = vadd.f32 %v1724_v57, %v1697_v5  ;;  %v1727_v45 = vadd.f32 %v1725_v37, %v1699_v21 }
 0x851   : > { %v1738_v49 = vsel %vm381_vm6, %v1735_v32, %v1737_v33  ;;  %v1739_v54 = vsel %vm381_vm6, %v1737_v33, %v1735_v32 }
 0x852   : > { %v1749_v38 = vpop.permute.xlu1 %1748  ;;  %v1744_v1 = vmul.f32 %v3239_v40, %v1739_v54  ;;  %v1745_v2 = vmul.f32 %v1738_v49, %v3251_v35 }
 0x854   : > { %v1751_v16 = vpop.permute.xlu0 %1750  ;;  %v1746_v11 = vadd.f32 %v1744_v1, %v1726_v18  ;;  %v1747_v36 = vadd.f32 %v1745_v2, %v1727_v45 }
 0x855   : > { %v1752_v55 = vsel %vm403_vm7, %v1749_v38, %v1751_v16  ;;  %v1753_v59 = vsel %vm403_vm7, %v1751_v16, %v1749_v38 }
 0x856   : > { %v1769_v42 = vpop.permute.xlu1 %1768  ;;  %v1758_v53 = vmul.f32 %v3256_v47, %v1753_v59  ;;  %v1759_v13 = vmul.f32 %v1752_v55, %v3266_v60 }
 0x858   : > { %v1771_v28 = vpop.permute.xlu0 %1770  ;;  %v1760_v29 = vadd.f32 %v1758_v53, %v1746_v11  ;;  %v1761_v32 = vadd.f32 %v1759_v13, %v1747_v36 }
 0x859   : > { %v1772_v4 = vsel %vm419_vm4, %v1769_v42, %v1771_v28  ;;  %v1773_v56 = vsel %vm419_vm4, %v1771_v28, %v1769_v42 }
 0x85a   : > { %v1789_v7 = vpop.permute.xlu1 %1788  ;;  %v1778_v25 = vmul.f32 %v3224_v17, %v1773_v56  ;;  %v1779_v44 = vmul.f32 %v1772_v4, %v3234_v27 }
 0x85c   : > { %v1791_v3 = vpop.permute.xlu0 %1790  ;;  %v1780_v42 = vadd.f32 %v1778_v25, %v1760_v29  ;;  %v1781_v43 = vadd.f32 %v1779_v44, %v1761_v32 }
 0x85d   : > { %v1792_v10 = vsel %vm443_vm1, %v1789_v7, %v1791_v3  ;;  %v1793_v24 = vsel %vm443_vm1, %v1791_v3, %v1789_v7 }
 0x85e   : > { %v1803_v9 = vpop.permute.xlu1 %1802  ;;  %v1798_v33 = vmul.f32 %v3194_v14, %v1792_v10  ;;  %v1799_v38 = vmul.f32 %v1793_v24, %v3204_v22 }
 0x860   : > { %v1805_v26 = vpop.permute.xlu0 %1804  ;;  %v1800_v37 = vadd.f32 %v1798_v33, %v1780_v42  ;;  %v1801_v7 = vadd.f32 %v1799_v38, %v1781_v43 }
 0x861   : > { %v1806_v5 = vsel %vm465_vm2, %v1803_v9, %v1805_v26  ;;  %v1807_v21 = vsel %vm465_vm2, %v1805_v26, %v1803_v9 }
 0x862   : > { %v1823_v16 = vpop.permute.xlu1 %1822  ;;  %v1812_v46 = vmul.f32 %v3209_v62, %v1806_v5  ;;  %v1813_v28 = vmul.f32 %v1807_v21, %v3219_v12 }
 0x864   : > { %v1825_v49 = vpop.permute.xlu0 %1824  ;;  %v1814_v1 = vadd.f32 %v1812_v46, %v1800_v37  ;;  %v1815_v2 = vadd.f32 %v1813_v28, %v1801_v7 }
 0x865   : > { %v1826_v54 = vsel %vm481_vm5, %v1823_v16, %v1825_v49  ;;  %v1827_v57 = vsel %vm481_vm5, %v1825_v49, %v1823_v16 }
 0x866   : > { %v1832_v55 = vmul.f32 %v3179_v34, %v1826_v54  ;;  %v1833_v59 = vmul.f32 %v1827_v57, %v3183_v6  ;;  %v1837_v3 = vpop.permute.xlu1 %1836 }
 0x868   : > { %v1839_v4 = vpop.permute.xlu0 %1838  ;;  %v1834_v45 = vadd.f32 %v1832_v55, %v1814_v1  ;;  %v1835_v53 = vadd.f32 %v1833_v59, %v1815_v2 }
 0x869   : > { %v1840_v56 = vsel %vm503_vm0, %v1837_v3, %v1839_v4  ;;  %v1841_v18 = vsel %vm503_vm0, %v1839_v4, %v1837_v3 }
 0x86a   : > { %v1846_v13 = vmul.f32 %v3113_v23, %v1840_v56  ;;  %v1847_v9 = vmul.f32 %v1841_v18, %v3127_v30 }
 0x86c   : > { %v1848_v10 = vadd.f32 %v1846_v13, %v1834_v45  ;;  %v1849_v24 = vadd.f32 %v1847_v9, %v1835_v53 }
 0x86e   : > { %v1852_v11 = vcombine.low %v1848_v10, %v1849_v24 }
 0x870   : > { %v1854_v36 = vadd.f32 %v1852_v11, %v3141_v48  ;;  %v2084_v48 = vmul.f32 0.0, %v3172_v41 }
 0x872   : > { %v3412_v25 = vadd.f32 %v1854_v36, %v2956_v58 }
 0x874   : > { %1923 = vst [vmem:[#allocation2 + $0x48] sm:$0xf] %v3412_v25  ;;  %1959 = vrot.lane.b32.xlu1 %v3412_v25, %s2563_s24  ;;  %v1857_v44 = vcombine.high %v3412_v25, %v3412_v25 }
 0x876   : > { %1961 = vrot.lane.b32.xlu0 %v1857_v44, %s2563_s24  ;;  %1924 = vst [vmem:[#allocation2 + $0x28] sm:$0xf] %v1857_v44 }
 0x878   : > { %1979 = vrot.lane.b32.xlu1 %v3412_v25, %s2562_s23 }
 0x87a   : > { %1981 = vrot.lane.b32.xlu0 %v1857_v44, %s2562_s23 }
 0x87c   : > { %1925 = vrot.lane.b32.xlu1 %v3412_v25, %s2564_s25 }
 0x87e   : > { %1927 = vrot.lane.b32.xlu0 %v1857_v44, %s2564_s25 }
 0x880   : > { %1945 = vrot.lane.b32.xlu1 %v3412_v25, %s2565_s26 }
 0x882   : > { %1947 = vrot.lane.b32.xlu0 %v1857_v44, %s2565_s26 }
 0x884   : > { %1903 = vrot.lane.b32.xlu1 %v3412_v25, %s2566_s27 }
 0x886   : > { %1905 = vrot.lane.b32.xlu0 %v1857_v44, %s2566_s27 }
 0x888   : > { %1869 = vrot.lane.b32.xlu1 %v3412_v25, %s2567_s28 }
 0x88a   : > { %1871 = vrot.lane.b32.xlu0 %v1857_v44, %s2567_s28 }
 0x88c   : > { %1889 = vrot.lane.b32.xlu1 %v3412_v25, %s2568_s29 }
 0x88e   : > { %1891 = vrot.lane.b32.xlu0 %v1857_v44, %s2568_s29 }
 0x890   : > { %1859 = vrot.lane.b32.xlu1 %v3412_v25, %s2570_s30 }
 0x892   : > { %1861 = vrot.lane.b32.xlu0 %v1857_v44, %s2570_s30 }
 0x894   : > { %2087 = vperm.xlu1 %2528, %v2084_v48  }
 0x8e6   : > { %v1960_v26 = vpop.permute.xlu1 %1959 }
 0x8e8   : > { %v1962_v5 = vpop.permute.xlu0 %1961 }
 0x8e9   : > { %v1963_v21 = vsel %vm481_vm5, %v1960_v26, %v1962_v5  ;;  %v1964_v29 = vsel %vm481_vm5, %v1962_v5, %v1960_v26 }
 0x8ea   : > { %v1969_v32 = vmul.f32 %v3179_v34, %v1963_v21  ;;  %v1970_v33 = vmul.f32 %v1964_v29, %v3183_v6  ;;  %v1980_v38 = vpop.permute.xlu1 %1979 }
 0x8ec   : > { %v1973_v16 = vrot.slane %v1969_v32, 4  ;;  %v1974_v42 = vrot.slane %v1970_v33, 4  ;;  %v1982_v43 = vpop.permute.xlu0 %1981 }
 0x8ed   : > { %v1983_v41 = vsel %vm503_vm0, %v1980_v38, %v1982_v43  ;;  %v1984_v46 = vsel %vm503_vm0, %v1982_v43, %v1980_v38 }
 0x8ee   : > { %1977 = vst [vmem:[#allocation2 + $0x8] sm:$0xf0] %v1973_v16  ;;  %1978 = vst [vmem:[#allocation2 + $0x20] sm:$0xf0] %v1974_v42  ;;  %v1989_v28 = vmul.f32 %v3113_v23, %v1983_v41  ;;  %v1990_v49 = vmul.f32 %v1984_v46, %v3127_v30  ;;  %v1926_v54 = vpop.permute.xlu1 %1925 }
 0x8f0   : > { %1991 = vst [vmem:[#allocation2 + $0x40] sm:$0xf] %v1989_v28  ;;  %1992 = vst [vmem:[#allocation2 + $0x38] sm:$0xf] %v1990_v49  ;;  %v1928_v57 = vpop.permute.xlu0 %1927 }
 0x8f1   : > { %v1929_v37 = vsel %vm443_vm1, %v1926_v54, %v1928_v57  ;;  %v1930_v7 = vsel %vm443_vm1, %v1928_v57, %v1926_v54 }
 0x8f2   : > { %v1935_v55 = vmul.f32 %v3194_v14, %v1929_v37  ;;  %v1936_v59 = vmul.f32 %v1930_v7, %v3204_v22  ;;  %v1946_v1 = vpop.permute.xlu1 %1945 }
 0x8f4   : > { %v1939_v2 = vrot.slane %v1935_v55, 4  ;;  %v1940_v3 = vrot.slane %v1936_v59, 4  ;;  %v1948_v23 = vpop.permute.xlu0 %1947 }
 0x8f5   : > { %v1949_v30 = vsel %vm465_vm2, %v1946_v1, %v1948_v23  ;;  %v1950_v4 = vsel %vm465_vm2, %v1948_v23, %v1946_v1 }
 0x8f6   : > { %1943 = vst [vmem:[#allocation2 + $0x48] sm:$0xf0] %v1939_v2  ;;  %1944 = vst [vmem:[#allocation2 + $0x28] sm:$0xf0] %v1940_v3  ;;  %v1955_v56 = vmul.f32 %v3209_v62, %v1949_v30  ;;  %v1956_v18 = vmul.f32 %v1950_v4, %v3219_v12  ;;  %v1904_v45 = vpop.permute.xlu1 %1903 }
 0x8f7   : > { %v2002_v53 = vld [vmem:[#allocation2 + $0x38] sm:$0xf]  ;;  %v2001_v13 = vld [vmem:[#allocation2 + $0x40] sm:$0xf] }
 0x8f8   : > { %1957 = vst [vmem:[#allocation2 + $0x8] sm:$0xf] %v1955_v56  ;;  %1958 = vst [vmem:[#allocation2 + $0x20] sm:$0xf] %v1956_v18  ;;  %2487 = vmatprep.subr.msk.mxu1 %vm534_vm3, %v2002_v53  ;;  %v1906_v9 = vpop.permute.xlu0 %1905 }
 0x8f9   : > { %v1907_v10 = vsel %vm419_vm4, %v1904_v45, %v1906_v9  ;;  %v1908_v24 = vsel %vm419_vm4, %v1906_v9, %v1904_v45  ;;  %2488 = vmatpush1.msk.msra.mxu1 %vm534_vm3, %v2001_v13 }
 0x8fa   : > { %v1913_v11 = vmul.f32 %v3224_v17, %v1908_v24  ;;  %v1914_v36 = vmul.f32 %v1907_v10, %v3234_v27  ;;  %v1870_v44 = vpop.permute.xlu1 %1869 }
 0x8fc   : > { %v1917_v48 = vrot.slane %v1913_v11, 4  ;;  %v1918_v26 = vrot.slane %v1914_v36, 4  ;;  %v1872_v5 = vpop.permute.xlu0 %1871 }
 0x8fd   : > { %v1873_v21 = vsel %vm381_vm6, %v1870_v44, %v1872_v5  ;;  %v1874_v29 = vsel %vm381_vm6, %v1872_v5, %v1870_v44  ;;  %v1998_v54 = vld [vmem:[#allocation2 + $0x28] sm:$0xff] }
 0x8fe   : > { %1921 = vst [vmem:[#allocation2 + $0x18] sm:$0xf0] %v1917_v48  ;;  %1922 = vst [vmem:[#allocation2 + $0x10] sm:$0xf0] %v1918_v26  ;;  %v1879_v32 = vmul.f32 %v3239_v40, %v1874_v29  ;;  %v1880_v33 = vmul.f32 %v1873_v21, %v3251_v35  ;;  %v1890_v38 = vpop.permute.xlu1 %1889  ;;  %v1997_v7 = vld [vmem:[#allocation2 + $0x48] sm:$0xff] }
 0x8ff   : > { %v2000_v16 = vld [vmem:[#allocation2 + $0x20] sm:$0xff]  ;;  %v1999_v42 = vld [vmem:[#allocation2 + $0x8] sm:$0xff] }
 0x900   : > { %v1883_v43 = vrot.slane %v1879_v32, 4  ;;  %v1884_v41 = vrot.slane %v1880_v33, 4  ;;  %2033 = vmatprep.subr.mxu1 %v2000_v16  ;;  %v1892_v46 = vpop.permute.xlu0 %1891 }
 0x901   : > { %v1893_v28 = vsel %vm403_vm7, %v1890_v38, %v1892_v46  ;;  %v1894_v49 = vsel %vm403_vm7, %v1892_v46, %v1890_v38  ;;  %2034 = vmatpush1.msra.mxu1 %v1999_v42 }
 0x902   : > { %1887 = vst [vmem:[#allocation2 + $0x30] sm:$0xf0] %v1883_v43  ;;  %1888 = vst [vmem:[#allocation2] sm:$0xf0] %v1884_v41  ;;  %v1899_v57 = vmul.f32 %v3256_v47, %v1894_v49  ;;  %v1900_v37 = vmul.f32 %v1893_v28, %v3266_v60  ;;  %2035 = vmatprep.subr.mxu1 %v1998_v54  ;;  %v1860_v55 = vpop.permute.xlu1 %1859 }
 0x903   : > { %2036 = vmatpush1.msra.mxu1 %v1997_v7 }
 0x904   : > { %1901 = vst [vmem:[#allocation2 + $0x18] sm:$0xf] %v1899_v57  ;;  %1902 = vst [vmem:[#allocation2 + $0x10] sm:$0xf] %v1900_v37  ;;  %v1862_v59 = vpop.permute.xlu0 %1861 }
 0x905   : > { %v1863_v1 = vsel %vm366_vm8, %v1860_v55, %v1862_v59  ;;  %v1864_v2 = vsel %vm366_vm8, %v1862_v59, %v1860_v55 }
 0x906   : > { %v1865_v3 = vmul.f32 %v1864_v2, %v3356_v39  ;;  %v1866_v23 = vmul.f32 %v1863_v1, %v3360_v19 }
 0x908   : > { %1867 = vst [vmem:[#allocation2 + $0x30] sm:$0xf] %v1865_v3  ;;  %1868 = vst [vmem:[#allocation2] sm:$0xf] %v1866_v23 }
 0x90b   : > { %v1996_v30 = vld [vmem:[#allocation2 + $0x10] sm:$0xff]  ;;  %v1995_v4 = vld [vmem:[#allocation2 + $0x18] sm:$0xff] }
 0x90c   : > { %2037 = vmatprep.subr.mxu1 %v1996_v30 }
 0x90d   : > { %2038 = vmatpush1.msra.mxu1 %v1995_v4 }
 0x90f   : > { %v1994_v56 = vld [vmem:[#allocation2] sm:$0xff]  ;;  %v1993_v18 = vld [vmem:[#allocation2 + $0x30] sm:$0xff]  ;;  %v2088_v24 = vpop.permute.xlu1 %2087 }
 0x910   : > { %2039 = vmatprep.subr.mxu1 %v1994_v56 }
 0x911   : > { %2040 = vmatpush1.msra.mxu1 %v1993_v18 }
 0x912   : > { %2489 = vmatmul.mubr.msk.f32.vlgmr.msra.gmra.mxu1 %vm530_vm9, %v3285_v31 }
 0x913   : > { %2162 = vmatprep.mubr.f32.mxu1 %v2569_v8 }
 0x9d2   : > { %v2075_v45 = vpop.f32.mrf.mxu1 }
 0x9d3   : > { %v2076_v53 = vadd.f32 %v2075_v45, %v2838_v52 }
 0x9d4   : > { %v2077_v13 = vpop.f32.mrf.mxu1 }
 0x9d5   : > { %v2080_v9 = vadd.f32 %v2076_v53, %v3291_v20  ;;  %v2078_v10 = vadd.f32 %v2077_v13, %v2838_v52  ;;  %v2090_v48 = vadd.f32 %v2088_v24, %v2076_v53 }
 0x9d7   : > { %v2082_v11 = vmax.f32 %v2080_v9, 0.0  ;;  %v2081_v36 = vadd.f32 %v2078_v10, %v3291_v20  ;;  %v2091_v44 = vadd.f32 %v2088_v24, %v2078_v10  ;;  %v2092_v29 = vmax.f32 %v2090_v48, 0.0 }
 0x9d9   : > { %v2083_v26 = vmax.f32 %v2081_v36, 0.0  ;;  %v2094_v5 = vmul.f32 0.75, %v2082_v11  ;;  %v2093_v21 = vmax.f32 %v2091_v44, 0.0 }
 0x9db   : > { %v2095_v31 = vmul.f32 0.75, %v2083_v26  ;;  %v2096_v33 = vsub.f32 %v2092_v29, %v2094_v5 }
 0x9dd   : > { %v2097_v32 = vsub.f32 %v2093_v21, %v2095_v31 }
 0x9df   : > { %2128 = vmatprep.subr.mxu1 %v2097_v32 }
 0x9e0   : > { %2129 = vmatpush1.msra.mxu1 %v2096_v33 }
 0x9e1   : > { %2490 = vmatmul.mubr.msk.f32.vlgmr.msra.gmra.mxu1 %vm637_vm10, %v3301_v50 }
 0x9e2   : > { %2168 = vmatprep.mubr.f32.mxu1 %v2569_v8 }
 0x9e5   : > { %2491 = vmatmul.mubr.msk.f32.gmra.mxu1 %vm637_vm10, %v3309_v51 }
 0x9e6   : > { %2174 = vmatprep.mubr.f32.mxu1 %v2569_v8 }
 0x9e9   : > { %2492 = vmatmul.mubr.msk.f32.gmra.mxu1 %vm637_vm10, %v3317_v61 }
 0x9ea   : > { %2180 = vmatprep.mubr.f32.mxu1 %v2569_v8 }
 0x9ed   : > { %2493 = vmatmul.mubr.msk.f32.gmra.mxu1 %vm637_vm10, %v3325_v63 }
 0x9ee   : > { %2186 = vmatprep.mubr.f32.mxu1 %v2569_v8 }
 0x9f1   : > { %2494 = vmatmul.mubr.msk.f32.gmra.mxu1 %vm637_vm10, %v3333_v0 }
 0xaa1   : > { %v2164_v52 = vpop.f32.mrf.mxu1 }
 0xaa2   : > { %2193 = vrot.lane.b32.xlu0 %v2164_v52, %s2570_s30  ;;  %v2209_v50 = vrot.slane %v2164_v52, 4 }
 0xaa3   : > { %v2166_v20 = vpop.f32.mrf.mxu1 }
 0xaa4   : > { %2195 = vrot.lane.b32.xlu1 %v2166_v20, %s2570_s30  ;;  %v2210_v38 = vrot.slane %v2166_v20, 4 }
 0xaa5   : > { %v2170_v51 = vpop.f32.mrf.mxu1 }
 0xaa6   : > { %2213 = vrot.lane.b32.xlu0 %v2209_v50, %s2567_s28  ;;  %v2243_v63 = vrot.slane %v2170_v51, 4 }
 0xaa7   : > { %v2172_v61 = vpop.f32.mrf.mxu1 }
 0xaa8   : > { %2215 = vrot.lane.b32.xlu1 %v2210_v38, %s2567_s28  ;;  %v2244_v0 = vrot.slane %v2172_v61, 4 }
 0xaa9   : > { %v2176_v8 = vpop.f32.mrf.mxu1 }
 0xaaa   : > { %2227 = vrot.lane.b32.xlu0 %v2170_v51, %s2568_s29  ;;  %v2263_v16 = vrot.slane %v2176_v8, 4 }
 0xaab   : > { %v2178_v42 = vpop.f32.mrf.mxu1 }
 0xaac   : > { %2229 = vrot.lane.b32.xlu1 %v2172_v61, %s2568_s29  ;;  %v2264_v43 = vrot.slane %v2178_v42, 4 }
 0xaad   : > { %v2182_v41 = vpop.f32.mrf.mxu1 }
 0xaae   : > { %2247 = vrot.lane.b32.xlu0 %v2243_v63, %s2566_s27  ;;  %v2297_v28 = vrot.slane %v2182_v41, 4 }
 0xaaf   : > { %v2184_v46 = vpop.f32.mrf.mxu1 }
 0xab0   : > { %2249 = vrot.lane.b32.xlu1 %v2244_v0, %s2566_s27  ;;  %v2298_v49 = vrot.slane %v2184_v46, 4  ;;  %s327_s27 = scalar_lea.vmem %s3596_s9, %s2633_s14 }
 0xab1   : > { %v2188_v54 = vpop.f32.mrf.mxu1 }
 0xab2   : > { %2267 = vrot.lane.b32.xlu0 %v2263_v16, %s2564_s25 }
 0xab3   : > { %v2190_v57 = vpop.f32.mrf.mxu1 }
 0xab4   : > { %2269 = vrot.lane.b32.xlu1 %v2264_v43, %s2564_s25 }
 0xab6   : > { %2281 = vrot.lane.b32.xlu0 %v2182_v41, %s2565_s26 }
 0xab8   : > { %2283 = vrot.lane.b32.xlu1 %v2184_v46, %s2565_s26 }
 0xaba   : > { %2301 = vrot.lane.b32.xlu0 %v2297_v28, %s2563_s24 }
 0xabc   : > { %2303 = vrot.lane.b32.xlu1 %v2298_v49, %s2563_s24 }
 0xabe   : > { %2315 = vrot.lane.b32.xlu0 %v2188_v54, %s2562_s23 }
 0xac0   : > { %2317 = vrot.lane.b32.xlu1 %v2190_v57, %s2562_s23 }
 0xb14   : > { %v2194_v37 = vpop.permute.xlu0 %2193 }
 0xb16   : > { %v2196_v7 = vpop.permute.xlu1 %2195 }
 0xb17   : > { %v2197_v23 = vsel %vm366_vm8, %v2194_v37, %v2196_v7  ;;  %v2198_v30 = vsel %vm366_vm8, %v2196_v7, %v2194_v37 }
 0xb18   : > { %v2214_v55 = vpop.permute.xlu0 %2213  ;;  %v2203_v45 = vmul.f32 %v2198_v30, %v3356_v39  ;;  %v2204_v53 = vmul.f32 %v2197_v23, %v3360_v19 }
 0xb1a   : > { %v2216_v59 = vpop.permute.xlu1 %2215  ;;  %v2205_v48 = vadd.f32 %v2203_v45, %v2176_v8  ;;  %v2206_v19 = vadd.f32 %v2204_v53, %v2178_v42 }
 0xb1b   : > { %v2217_v56 = vsel %vm381_vm6, %v2214_v55, %v2216_v59  ;;  %v2218_v18 = vsel %vm381_vm6, %v2216_v59, %v2214_v55 }
 0xb1c   : > { %v2228_v1 = vpop.permute.xlu0 %2227  ;;  %v2223_v24 = vmul.f32 %v3239_v40, %v2218_v18  ;;  %v2224_v11 = vmul.f32 %v2217_v56, %v3251_v35 }
 0xb1e   : > { %v2230_v2 = vpop.permute.xlu1 %2229  ;;  %v2225_v35 = vadd.f32 %v2223_v24, %v2205_v48  ;;  %v2226_v29 = vadd.f32 %v2224_v11, %v2206_v19 }
 0xb1f   : > { %v2231_v9 = vsel %vm403_vm7, %v2228_v1, %v2230_v2  ;;  %v2232_v10 = vsel %vm403_vm7, %v2230_v2, %v2228_v1 }
 0xb20   : > { %v2248_v3 = vpop.permute.xlu0 %2247  ;;  %v2237_v26 = vmul.f32 %v3256_v47, %v2232_v10  ;;  %v2238_v5 = vmul.f32 %v2231_v9, %v3266_v60 }
 0xb22   : > { %v2250_v4 = vpop.permute.xlu1 %2249  ;;  %v2239_v60 = vadd.f32 %v2237_v26, %v2225_v35  ;;  %v2240_v50 = vadd.f32 %v2238_v5, %v2226_v29 }
 0xb23   : > { %v2251_v44 = vsel %vm419_vm4, %v2248_v3, %v2250_v4  ;;  %v2252_v39 = vsel %vm419_vm4, %v2250_v4, %v2248_v3 }
 0xb24   : > { %v2268_v13 = vpop.permute.xlu0 %2267  ;;  %v2257_v32 = vmul.f32 %v3224_v17, %v2252_v39  ;;  %v2258_v33 = vmul.f32 %v2251_v44, %v3234_v27  ;;  %v2501_v17 = vld [vmem:[%s3590_s3 + $0x40] sm:$0xff] }
 0xb25   : > { %v2323_v43 = vcombine.high %v2501_v17, %v2501_v17 }
 0xb26   : > { %v2270_v36 = vpop.permute.xlu1 %2269  ;;  %v2259_v8 = vadd.f32 %v2257_v32, %v2239_v60  ;;  %v2260_v27 = vadd.f32 %v2258_v33, %v2240_v50 }
 0xb27   : > { %v2271_v31 = vsel %vm443_vm1, %v2268_v13, %v2270_v36  ;;  %v2272_v40 = vsel %vm443_vm1, %v2270_v36, %v2268_v13 }
 0xb28   : > { %v2282_v21 = vpop.permute.xlu0 %2281  ;;  %v2277_v51 = vmul.f32 %v3194_v14, %v2271_v31  ;;  %v2278_v38 = vmul.f32 %v2272_v40, %v3204_v22 }
 0xb2a   : > { %v2284_v52 = vpop.permute.xlu1 %2283  ;;  %v2279_v22 = vadd.f32 %v2277_v51, %v2259_v8  ;;  %v2280_v41 = vadd.f32 %v2278_v38, %v2260_v27 }
 0xb2b   : > { %v2285_v20 = vsel %vm465_vm2, %v2282_v21, %v2284_v52  ;;  %v2286_v47 = vsel %vm465_vm2, %v2284_v52, %v2282_v21 }
 0xb2c   : > { %v2302_v61 = vpop.permute.xlu0 %2301  ;;  %v2291_v63 = vmul.f32 %v3209_v62, %v2285_v20  ;;  %v2292_v0 = vmul.f32 %v2286_v47, %v3219_v12 }
 0xb2e   : > { %v2304_v16 = vpop.permute.xlu1 %2303  ;;  %v2293_v49 = vadd.f32 %v2291_v63, %v2279_v22  ;;  %v2294_v54 = vadd.f32 %v2292_v0, %v2280_v41 }
 0xb2f   : > { %v2305_v42 = vsel %vm481_vm5, %v2302_v61, %v2304_v16  ;;  %v2306_v14 = vsel %vm481_vm5, %v2304_v16, %v2302_v61 }
 0xb30   : > { %v2311_v46 = vmul.f32 %v3179_v34, %v2305_v42  ;;  %v2312_v28 = vmul.f32 %v2306_v14, %v3183_v6  ;;  %v2316_v62 = vpop.permute.xlu0 %2315 }
 0xb32   : > { %v2318_v57 = vpop.permute.xlu1 %2317  ;;  %v2313_v7 = vadd.f32 %v2311_v46, %v2293_v49  ;;  %v2314_v55 = vadd.f32 %v2312_v28, %v2294_v54 }
 0xb33   : > { %v2319_v12 = vsel %vm503_vm0, %v2316_v62, %v2318_v57  ;;  %v2320_v37 = vsel %vm503_vm0, %v2318_v57, %v2316_v62 }
 0xb34   : > { %v2325_v59 = vmul.f32 %v2501_v17, %v2319_v12  ;;  %v2326_v1 = vmul.f32 %v2323_v43, %v2320_v37 }
 0xb36   : > { %v2327_v2 = vadd.f32 %v2325_v59, %v2313_v7  ;;  %v2328_v3 = vadd.f32 %v2326_v1, %v2314_v55 }
 0xb38   : > { %v2331_v34 = vcombine.low %v2327_v2, %v2328_v3 }
 0xb3a   : > { %v2333_v23 = vadd.f32 %v2331_v34, %v3412_v25 }
 0xb3c   : > { %v2334_v6 = vadd.f32 %v2333_v23, %v2956_v58 }
 0xb3e   : > { %2335 = vst [vmem:[%s327_s27] sm:$0xff] %v2334_v6 }
 0xb3f PF: > { %s20_s11 = sadd.s32 1, %s2560_s11  }
 0xb40   : > { %p17_p4 = scmp.ge.s32.totalorder %s20_s11, 4  }
 0xb42   :  { %19 = sbr.rel (!%p17_p4) target bundleno = 2 (0x2), region = 92 }

</bundles_post_ra>
